<compile_context>
chip_gen: v5e
topology: v5e:2x2
jax: 0.10.0
libtpu: 0.0.40
codegen_flags: <defaults>
</compile_context>

<pallas_src>
import functools

import numpy as np
import jax
import jax.numpy as jnp
from jax.experimental import pallas as pl
from jax.experimental.pallas import tpu as pltpu

EPS = 1e-5


# ----------------------------------------------------------------------------
# Fused Pallas kernel:  conv-as-matmul + bias + InstanceNorm + act (+residual)
# ----------------------------------------------------------------------------
def _fused_conv_kernel(*refs, groups, do_norm, do_relu, do_tanh, has_residual):
    """One conv layer on one batch element.

    p_ref : (1, K, S)      im2col patches (bf16), S = Ho*Wo on the lane axis
    w_ref : (Ceff, K)      flattened weights (bf16)
    b_ref : (Ceff, 1)      bias (f32)
    res_ref (optional): (1, Ceff, S) residual to add after the norm
    o_ref : (1, Ceff, S)   lane-dense output block
    """
    if has_residual:
        p_ref, w_ref, b_ref, res_ref, o_ref = refs
    else:
        p_ref, w_ref, b_ref, o_ref = refs
        res_ref = None

    # Single big-K matmul on the MXU, f32 accumulation.
    acc = jnp.dot(w_ref[...], p_ref[0],
                  preferred_element_type=jnp.float32)          # (Ceff, S)
    acc = acc + b_ref[...].astype(jnp.float32)                 # bias

    if do_norm:
        # One-pass InstanceNorm statistics (sum & sum of squares over lanes).
        s1 = jnp.sum(acc, axis=1, keepdims=True)               # (Ceff, 1)
        s2 = jnp.sum(acc * acc, axis=1, keepdims=True)         # (Ceff, 1)
        if groups > 1:
            # ConvTranspose path: Ceff = groups*Cout parity groups of the same
            # logical channel -> pool the stats across groups per channel.
            c = acc.shape[0] // groups
            s1 = sum(s1[g * c:(g + 1) * c] for g in range(groups))
            s2 = sum(s2[g * c:(g + 1) * c] for g in range(groups))
            s1 = jnp.tile(s1, (groups, 1))
            s2 = jnp.tile(s2, (groups, 1))
        inv_cnt = 1.0 / float(groups * acc.shape[1])
        mean = s1 * inv_cnt
        var = jnp.maximum(s2 * inv_cnt - mean * mean, 0.0)     # biased var
        acc = (acc - mean) * jax.lax.rsqrt(var + EPS)

    if do_relu:
        acc = jnp.maximum(acc, 0.0)
    if has_residual:
        acc = acc + res_ref[0].astype(jnp.float32)
    if do_tanh:
        acc = jnp.tanh(acc)

    o_ref[0] = acc.astype(o_ref.dtype)


def fused_conv(patches, w, b, *, groups=1, norm=True, relu=False, tanh=False,
               residual=None, out_dtype=jnp.bfloat16):
    """patches: (N, K, S); w: (Ceff, K); b: (Ceff, 1) -> (N, Ceff, S)."""
    N, K, S = patches.shape
    Ceff = w.shape[0]
    kernel = functools.partial(
        _fused_conv_kernel, groups=groups, do_norm=norm, do_relu=relu,
        do_tanh=tanh, has_residual=residual is not None)

    in_specs = [
        pl.BlockSpec((1, K, S), lambda n: (n, 0, 0)),
        pl.BlockSpec((Ceff, K), lambda n: (0, 0)),
        pl.BlockSpec((Ceff, 1), lambda n: (0, 0)),
    ]
    operands = [patches, w, b]
    if residual is not None:
        in_specs.append(pl.BlockSpec((1, Ceff, S), lambda n: (n, 0, 0)))
        operands.append(residual)

    return pl.pallas_call(
        kernel,
        out_shape=jax.ShapeDtypeStruct((N, Ceff, S), out_dtype),
        grid=(N,),
        in_specs=in_specs,
        out_specs=pl.BlockSpec((1, Ceff, S), lambda n: (n, 0, 0)),
        compiler_params=pltpu.CompilerParams(
            dimension_semantics=("parallel",)),
    )(*operands)


# ----------------------------------------------------------------------------
# XLA-side layout plumbing: padding + im2col patch extraction (no arithmetic)
# ----------------------------------------------------------------------------
def _reflect_pad(x, p):
    return jnp.pad(x, ((0, 0), (0, 0), (p, p), (p, p)), mode="reflect")


def _zero_pad(x, p):
    return jnp.pad(x, ((0, 0), (0, 0), (p, p), (p, p)))


def _patches_s1(xp, kh, kw):
    """Stride-1 im2col.  xp: (N,C,Hp,Wp) -> (N, kh*kw*C, Ho*Wo), Ho, Wo."""
    N, C, Hp, Wp = xp.shape
    Ho, Wo = Hp - kh + 1, Wp - kw + 1
    cols = []
    for dh in range(kh):
        for dw in range(kw):
            cols.append(xp[:, :, dh:dh + Ho, dw:dw + Wo].reshape(N, C, Ho * Wo))
    return jnp.concatenate(cols, axis=1), Ho, Wo


def _patches_s2(xp, kh, kw):
    """Stride-2 im2col (only the kept output positions are gathered)."""
    N, C, Hp, Wp = xp.shape
    Ho, Wo = (Hp - kh) // 2 + 1, (Wp - kw) // 2 + 1
    cols = []
    for dh in range(kh):
        for dw in range(kw):
            sl = xp[:, :, dh:dh + 2 * Ho - 1:2, dw:dw + 2 * Wo - 1:2]
            cols.append(sl.reshape(N, C, Ho * Wo))
    return jnp.concatenate(cols, axis=1), Ho, Wo


def _patches_up(x):
    """ConvTranspose(k3,s2,p1,op1) parity formulation: 2x2 taps on x padded by
    (0,1) bottom/right.  x: (N,C,H,W) -> (N, 4*C, H*W)."""
    N, C, H, W = x.shape
    xpb = jnp.pad(x, ((0, 0), (0, 0), (0, 1), (0, 1)))
    cols = []
    for a in (0, 1):
        for b in (0, 1):
            cols.append(xpb[:, :, a:a + H, b:b + W].reshape(N, C, H * W))
    return jnp.concatenate(cols, axis=1)


# ----------------------------------------------------------------------------
# Parameter construction (deterministic, synthetic)
# ----------------------------------------------------------------------------
def _init_conv_flat(key, kh, kw, cin, cout):
    """Conv2d weights flattened to (cout, kh*kw*cin), K ordered (dh, dw, cin)."""
    k1, k2 = jax.random.split(key)
    bound = 1.0 / np.sqrt(kh * kw * cin)
    w = jax.random.uniform(k1, (cout, cin, kh, kw), jnp.float32,
                           minval=-bound, maxval=bound)
    b = jax.random.uniform(k2, (cout,), jnp.float32,
                           minval=-bound, maxval=bound)
    w_flat = jnp.transpose(w, (0, 2, 3, 1)).reshape(cout, kh * kw * cin)
    return w_flat.astype(jnp.bfloat16), b.reshape(cout, 1)


def _build_up_weight(w_t):
    """ConvTranspose2d(k3,s2,p1,op1) weight (cin,cout,3,3) -> (4*cout, 4*cin)
    for the parity-group / 2x2-tap formulation.

    Output pixel (2u+pi, 2v+pj) of channel co = sum over taps (a,b) in {0,1}^2
    of w_t[cin, co, kh(pi,a), kw(pj,b)] * x[cin, u+a, v+b] (taps with no
    contribution get zero weight)."""
    cin, cout = w_t.shape[0], w_t.shape[1]
    kmap = {(0, 0): 1, (1, 0): 2, (1, 1): 0}   # (parity, tap) -> kernel index
    w_up = np.zeros((2, 2, cout, 2, 2, cin), np.float32)
    for pi in (0, 1):
        for a in (0, 1):
            kh = kmap.get((pi, a))
            if kh is None:
                continue
            for pj in (0, 1):
                for b_ in (0, 1):
                    kw = kmap.get((pj, b_))
                    if kw is None:
                        continue
                    w_up[pi, pj, :, a, b_, :] = w_t[:, :, kh, kw].T
    return jnp.asarray(w_up.reshape(4 * cout, 4 * cin))


def _init_convT_up(key, cin, cout):
    k1, k2 = jax.random.split(key)
    bound = 1.0 / np.sqrt(9 * cin)
    w_t = jax.random.uniform(k1, (cin, cout, 3, 3), jnp.float32,
                             minval=-bound, maxval=bound)
    b = jax.random.uniform(k2, (cout,), jnp.float32,
                           minval=-bound, maxval=bound)
    w_up = _build_up_weight(np.asarray(w_t)).astype(jnp.bfloat16)
    b_up = jnp.tile(b, (4,)).reshape(4 * cout, 1)
    return w_up, b_up


def make_params(key, input_nc=1, output_nc=1, ngf=8, n_blocks=2):
    params = {}
    keys = iter(jax.random.split(key, 32))

    # stem: ReflectionPad2d(3) + Conv2d(input_nc, ngf, 7, bias=True)
    params["stem"] = _init_conv_flat(next(keys), 7, 7, input_nc, ngf)

    # 2 downsampling convs (3x3, stride 2, pad 1, bias=True)
    for i in range(2):
        mult = 2 ** i
        params[f"down{i}"] = _init_conv_flat(next(keys), 3, 3,
                                             ngf * mult, ngf * mult * 2)

    # n_blocks resnet blocks at ngf*4 channels
    mult = 4
    for i in range(n_blocks):
        params[f"block{i}_c1"] = _init_conv_flat(next(keys), 3, 3,
                                                 ngf * mult, ngf * mult)
        params[f"block{i}_c2"] = _init_conv_flat(next(keys), 3, 3,
                                                 ngf * mult, ngf * mult)

    # 2 upsampling ConvTranspose2d(k3, s2, p1, op1, bias=True)
    for i in range(2):
        mult = 2 ** (2 - i)
        params[f"up{i}"] = _init_convT_up(next(keys), ngf * mult,
                                          ngf * mult // 2)

    # final: ReflectionPad2d(3) + Conv2d(ngf, output_nc, 7, bias=True) + Tanh
    params["out"] = _init_conv_flat(next(keys), 7, 7, ngf, output_nc)
    return params


# ----------------------------------------------------------------------------
# Forward pass
# ----------------------------------------------------------------------------
def resnet_generator_forward(x_nchw, params, n_blocks=2):
    N = x_nchw.shape[0]
    x = x_nchw.astype(jnp.bfloat16)                       # NCHW activations

    # --- stem: reflect-pad(3) + 7x7 conv + IN + ReLU ---
    w, b = params["stem"]
    p, Ho, Wo = _patches_s1(_reflect_pad(x, 3), 7, 7)
    y = fused_conv(p, w, b, norm=True, relu=True)         # (N, ngf, 256)
    x = y.reshape(N, -1, Ho, Wo)

    # --- downsampling: 3x3 stride-2 conv + IN + ReLU (patches at stride 2) ---
    for i in range(2):
        w, b = params[f"down{i}"]
        p, Ho, Wo = _patches_s2(_zero_pad(x, 1), 3, 3)
        y = fused_conv(p, w, b, norm=True, relu=True)
        x = y.reshape(N, -1, Ho, Wo)

    # --- resnet blocks: x + IN(conv(ReLU(IN(conv(x))))) ---
    for i in range(n_blocks):
        _, C, H, W = x.shape
        x_flat = x.reshape(N, C, H * W)
        w1, b1 = params[f"block{i}_c1"]
        w2, b2 = params[f"block{i}_c2"]
        p1, _, _ = _patches_s1(_reflect_pad(x, 1), 3, 3)
        h = fused_conv(p1, w1, b1, norm=True, relu=True)          # (N, C, HW)
        p2, _, _ = _patches_s1(_reflect_pad(h.reshape(N, C, H, W), 1), 3, 3)
        y = fused_conv(p2, w2, b2, norm=True, relu=False,
                       residual=x_flat)                           # x + IN(..)
        x = y.reshape(N, C, H, W)

    # --- upsampling: ConvTranspose(k3,s2,p1,op1) + IN + ReLU, parity form ---
    for i in range(2):
        w, b = params[f"up{i}"]
        _, C, H, W = x.shape
        cout = C // 2
        p = _patches_up(x)                                # (N, 4C, H*W)
        y = fused_conv(p, w, b, norm=True, relu=True, groups=4)   # (N,4*cout,HW)
        y = y.reshape(N, 2, 2, cout, H, W)
        y = jnp.transpose(y, (0, 3, 4, 1, 5, 2)).reshape(N, cout, 2 * H, 2 * W)
        x = y

    # --- head: reflect-pad(3) + 7x7 conv + Tanh ---
    w, b = params["out"]
    p, Ho, Wo = _patches_s1(_reflect_pad(x, 3), 7, 7)
    y = fused_conv(p, w, b, norm=False, relu=False, tanh=True,
                   out_dtype=jnp.float32)                 # (N, out_nc, 256)
    return y.reshape(N, -1, Ho, Wo)                       # NCHW


# ----------------------------------------------------------------------------
# Main
# ----------------------------------------------------------------------------
if __name__ == "__main__":
    key = jax.random.PRNGKey(0)
    k_in, k_par = jax.random.split(key)

    # Small config consistent with the module: input_nc=1, output_nc=1,
    # ngf=8, n_blocks=2, batch=2, 16x16 spatial, NCHW input.
    INPUT_NC, OUTPUT_NC, NGF, N_BLOCKS = 1, 1, 8, 2
    x = jax.random.normal(k_in, (2, INPUT_NC, 16, 16), jnp.float32)
    params = make_params(k_par, INPUT_NC, OUTPUT_NC, NGF, N_BLOCKS)

    fwd = jax.jit(functools.partial(resnet_generator_forward,
                                    n_blocks=N_BLOCKS))
    out = jax.block_until_ready(fwd(x, params))

    assert out.shape == (2, OUTPUT_NC, 16, 16), out.shape
    assert bool(jnp.all(jnp.isfinite(out)))
    assert bool(jnp.all(jnp.abs(out) <= 1.0))     # tanh range
    print("KERNEL_OK")
</pallas_src>

<mosaic_0001>
module attributes {stable_mosaic.version = 11 : i64} {
  func.func @_fused_conv_kernel(%arg0: i32, %arg1: memref<1x49x256xbf16, #tpu.memory_space<vmem>>, %arg2: memref<8x49xbf16, #tpu.memory_space<vmem>>, %arg3: memref<8x1xf32, #tpu.memory_space<vmem>>, %arg4: memref<1x8x256xbf16, #tpu.memory_space<vmem>>) attributes {dimension_semantics = [#tpu.dimension_semantics<parallel>], iteration_bounds = array<i64: 2>, scalar_prefetch = 0 : i64, scratch_operands = 0 : i64, tpu.core_type = #tpu.core_type<tc>, window_params = [{transform_indices = @transform_0, window_bounds = array<i64: 1, 49, 256>}, {pipeline_mode = #tpu.pipeline_mode<synchronous>, transform_indices = @transform_1, window_bounds = array<i64: 8, 49>}, {pipeline_mode = #tpu.pipeline_mode<synchronous>, transform_indices = @transform_2, window_bounds = array<i64: 8, 1>}, {transform_indices = @transform_3, window_bounds = array<i64: 1, 8, 256>}]} {
    %c0 = arith.constant 0 : index
    %c0_0 = arith.constant 0 : index
    %0 = vector.load %arg2[%c0, %c0_0] : memref<8x49xbf16, #tpu.memory_space<vmem>>, vector<8x49xbf16>
    %c0_1 = arith.constant 0 : index
    %c0_2 = arith.constant 0 : index
    %c0_3 = arith.constant 0 : index
    %1 = vector.load %arg1[%c0_1, %c0_2, %c0_3] : memref<1x49x256xbf16, #tpu.memory_space<vmem>>, vector<1x49x256xbf16>
    %2 = vector.shape_cast %1 : vector<1x49x256xbf16> to vector<49x256xbf16>
    %cst = arith.constant dense<0.000000e+00> : vector<8x256xf32>
    %3 = tpu.matmul %0, %2, %cst {dimension_numbers = #tpu.dot_dimension_numbers<[1], [0], [0], [1], [0, 0, 1, 1], [], []>} : vector<8x49xbf16>, vector<49x256xbf16>, vector<8x256xf32> -> vector<8x256xf32>
    %c0_4 = arith.constant 0 : index
    %c0_5 = arith.constant 0 : index
    %4 = vector.load %arg3[%c0_4, %c0_5] : memref<8x1xf32, #tpu.memory_space<vmem>>, vector<8x1xf32>
    %5 = vector.broadcast %4 : vector<8x1xf32> to vector<8x256xf32>
    %6 = arith.addf %3, %5 : vector<8x256xf32>
    %cst_6 = arith.constant dense<0.000000e+00> : vector<8xf32>
    %7 = vector.multi_reduction <add>, %6, %cst_6 [1] : vector<8x256xf32> to vector<8xf32>
    %8 = vector.shape_cast %7 : vector<8xf32> to vector<8x1xf32>
    %9 = arith.mulf %6, %6 : vector<8x256xf32>
    %cst_7 = arith.constant dense<0.000000e+00> : vector<8xf32>
    %10 = vector.multi_reduction <add>, %9, %cst_7 [1] : vector<8x256xf32> to vector<8xf32>
    %11 = vector.shape_cast %10 : vector<8xf32> to vector<8x1xf32>
    %cst_8 = arith.constant 3.906250e-03 : f32
    %12 = vector.broadcast %cst_8 : f32 to vector<8x1xf32>
    %13 = arith.mulf %8, %12 : vector<8x1xf32>
    %cst_9 = arith.constant 3.906250e-03 : f32
    %14 = vector.broadcast %cst_9 : f32 to vector<8x1xf32>
    %15 = arith.mulf %11, %14 : vector<8x1xf32>
    %16 = arith.mulf %13, %13 : vector<8x1xf32>
    %17 = arith.subf %15, %16 : vector<8x1xf32>
    %cst_10 = arith.constant 0.000000e+00 : f32
    %18 = vector.broadcast %cst_10 : f32 to vector<8x1xf32>
    %19 = arith.maximumf %17, %18 : vector<8x1xf32>
    %20 = vector.broadcast %13 : vector<8x1xf32> to vector<8x256xf32>
    %21 = arith.subf %6, %20 : vector<8x256xf32>
    %cst_11 = arith.constant 9.99999974E-6 : f32
    %22 = vector.broadcast %cst_11 : f32 to vector<8x1xf32>
    %23 = arith.addf %19, %22 : vector<8x1xf32>
    %24 = math.rsqrt %23 : vector<8x1xf32>
    %25 = vector.broadcast %24 : vector<8x1xf32> to vector<8x256xf32>
    %26 = arith.mulf %21, %25 : vector<8x256xf32>
    %cst_12 = arith.constant 0.000000e+00 : f32
    %27 = vector.broadcast %cst_12 : f32 to vector<8x256xf32>
    %28 = arith.maximumf %26, %27 : vector<8x256xf32>
    %29 = arith.truncf %28 : vector<8x256xf32> to vector<8x256xbf16>
    %c0_13 = arith.constant 0 : index
    %c0_14 = arith.constant 0 : index
    %c0_15 = arith.constant 0 : index
    %30 = vector.load %arg4[%c0_13, %c0_14, %c0_15] : memref<1x8x256xbf16, #tpu.memory_space<vmem>>, vector<1x8x256xbf16>
    %31 = vector.shape_cast %30 : vector<1x8x256xbf16> to vector<8x256xbf16>
    %32 = vector.shape_cast %29 : vector<8x256xbf16> to vector<1x8x256xbf16>
    tpu.vector_store %arg4[%c0_13, %c0_14, %c0_15], %32 {strides = array<i32>} : memref<1x8x256xbf16, #tpu.memory_space<vmem>>, vector<1x8x256xbf16>,
    return
  }
  func.func @transform_0(%arg0: i32) -> (i32, i32, i32) {
    %c0_i32 = arith.constant 0 : i32
    %c0_i32_0 = arith.constant 0 : i32
    %c0_i32_1 = arith.constant 0 : i32
    return %arg0, %c0_i32, %c0_i32_0 : i32, i32, i32
  }
  func.func @transform_1(%arg0: i32) -> (i32, i32) {
    %c0_i32 = arith.constant 0 : i32
    %c0_i32_0 = arith.constant 0 : i32
    %c0_i32_1 = arith.constant 0 : i32
    return %c0_i32, %c0_i32_0 : i32, i32
  }
  func.func @transform_2(%arg0: i32) -> (i32, i32) {
    %c0_i32 = arith.constant 0 : i32
    %c0_i32_0 = arith.constant 0 : i32
    %c0_i32_1 = arith.constant 0 : i32
    return %c0_i32, %c0_i32_0 : i32, i32
  }
  func.func @transform_3(%arg0: i32) -> (i32, i32, i32) {
    %c0_i32 = arith.constant 0 : i32
    %c0_i32_0 = arith.constant 0 : i32
    %c0_i32_1 = arith.constant 0 : i32
    return %arg0, %c0_i32, %c0_i32_0 : i32, i32, i32
  }
}

module attributes {stable_mosaic.version = 11 : i64} {
  func.func @_fused_conv_kernel(%arg0: i32, %arg1: memref<1x72x64xbf16, #tpu.memory_space<vmem>>, %arg2: memref<16x72xbf16, #tpu.memory_space<vmem>>, %arg3: memref<16x1xf32, #tpu.memory_space<vmem>>, %arg4: memref<1x16x64xbf16, #tpu.memory_space<vmem>>) attributes {dimension_semantics = [#tpu.dimension_semantics<parallel>], iteration_bounds = array<i64: 2>, scalar_prefetch = 0 : i64, scratch_operands = 0 : i64, tpu.core_type = #tpu.core_type<tc>, window_params = [{transform_indices = @transform_0, window_bounds = array<i64: 1, 72, 64>}, {pipeline_mode = #tpu.pipeline_mode<synchronous>, transform_indices = @transform_1, window_bounds = array<i64: 16, 72>}, {pipeline_mode = #tpu.pipeline_mode<synchronous>, transform_indices = @transform_2, window_bounds = array<i64: 16, 1>}, {transform_indices = @transform_3, window_bounds = array<i64: 1, 16, 64>}]} {
    %c0 = arith.constant 0 : index
    %c0_0 = arith.constant 0 : index
    %0 = vector.load %arg2[%c0, %c0_0] : memref<16x72xbf16, #tpu.memory_space<vmem>>, vector<16x72xbf16>
    %c0_1 = arith.constant 0 : index
    %c0_2 = arith.constant 0 : index
    %c0_3 = arith.constant 0 : index
    %1 = vector.load %arg1[%c0_1, %c0_2, %c0_3] : memref<1x72x64xbf16, #tpu.memory_space<vmem>>, vector<1x72x64xbf16>
    %2 = vector.shape_cast %1 : vector<1x72x64xbf16> to vector<72x64xbf16>
    %cst = arith.constant dense<0.000000e+00> : vector<16x64xf32>
    %3 = tpu.matmul %0, %2, %cst {dimension_numbers = #tpu.dot_dimension_numbers<[1], [0], [0], [1], [0, 0, 1, 1], [], []>} : vector<16x72xbf16>, vector<72x64xbf16>, vector<16x64xf32> -> vector<16x64xf32>
    %c0_4 = arith.constant 0 : index
    %c0_5 = arith.constant 0 : index
    %4 = vector.load %arg3[%c0_4, %c0_5] : memref<16x1xf32, #tpu.memory_space<vmem>>, vector<16x1xf32>
    %5 = vector.broadcast %4 : vector<16x1xf32> to vector<16x64xf32>
    %6 = arith.addf %3, %5 : vector<16x64xf32>
    %cst_6 = arith.constant dense<0.000000e+00> : vector<16xf32>
    %7 = vector.multi_reduction <add>, %6, %cst_6 [1] : vector<16x64xf32> to vector<16xf32>
    %8 = vector.shape_cast %7 : vector<16xf32> to vector<16x1xf32>
    %9 = arith.mulf %6, %6 : vector<16x64xf32>
    %cst_7 = arith.constant dense<0.000000e+00> : vector<16xf32>
    %10 = vector.multi_reduction <add>, %9, %cst_7 [1] : vector<16x64xf32> to vector<16xf32>
    %11 = vector.shape_cast %10 : vector<16xf32> to vector<16x1xf32>
    %cst_8 = arith.constant 1.562500e-02 : f32
    %12 = vector.broadcast %cst_8 : f32 to vector<16x1xf32>
    %13 = arith.mulf %8, %12 : vector<16x1xf32>
    %cst_9 = arith.constant 1.562500e-02 : f32
    %14 = vector.broadcast %cst_9 : f32 to vector<16x1xf32>
    %15 = arith.mulf %11, %14 : vector<16x1xf32>
    %16 = arith.mulf %13, %13 : vector<16x1xf32>
    %17 = arith.subf %15, %16 : vector<16x1xf32>
    %cst_10 = arith.constant 0.000000e+00 : f32
    %18 = vector.broadcast %cst_10 : f32 to vector<16x1xf32>
    %19 = arith.maximumf %17, %18 : vector<16x1xf32>
    %20 = vector.broadcast %13 : vector<16x1xf32> to vector<16x64xf32>
    %21 = arith.subf %6, %20 : vector<16x64xf32>
    %cst_11 = arith.constant 9.99999974E-6 : f32
    %22 = vector.broadcast %cst_11 : f32 to vector<16x1xf32>
    %23 = arith.addf %19, %22 : vector<16x1xf32>
    %24 = math.rsqrt %23 : vector<16x1xf32>
    %25 = vector.broadcast %24 : vector<16x1xf32> to vector<16x64xf32>
    %26 = arith.mulf %21, %25 : vector<16x64xf32>
    %cst_12 = arith.constant 0.000000e+00 : f32
    %27 = vector.broadcast %cst_12 : f32 to vector<16x64xf32>
    %28 = arith.maximumf %26, %27 : vector<16x64xf32>
    %29 = arith.truncf %28 : vector<16x64xf32> to vector<16x64xbf16>
    %c0_13 = arith.constant 0 : index
    %c0_14 = arith.constant 0 : index
    %c0_15 = arith.constant 0 : index
    %30 = vector.load %arg4[%c0_13, %c0_14, %c0_15] : memref<1x16x64xbf16, #tpu.memory_space<vmem>>, vector<1x16x64xbf16>
    %31 = vector.shape_cast %30 : vector<1x16x64xbf16> to vector<16x64xbf16>
    %32 = vector.shape_cast %29 : vector<16x64xbf16> to vector<1x16x64xbf16>
    tpu.vector_store %arg4[%c0_13, %c0_14, %c0_15], %32 {strides = array<i32>} : memref<1x16x64xbf16, #tpu.memory_space<vmem>>, vector<1x16x64xbf16>,
    return
  }
  func.func @transform_0(%arg0: i32) -> (i32, i32, i32) {
    %c0_i32 = arith.constant 0 : i32
    %c0_i32_0 = arith.constant 0 : i32
    %c0_i32_1 = arith.constant 0 : i32
    return %arg0, %c0_i32, %c0_i32_0 : i32, i32, i32
  }
  func.func @transform_1(%arg0: i32) -> (i32, i32) {
    %c0_i32 = arith.constant 0 : i32
    %c0_i32_0 = arith.constant 0 : i32
    %c0_i32_1 = arith.constant 0 : i32
    return %c0_i32, %c0_i32_0 : i32, i32
  }
  func.func @transform_2(%arg0: i32) -> (i32, i32) {
    %c0_i32 = arith.constant 0 : i32
    %c0_i32_0 = arith.constant 0 : i32
    %c0_i32_1 = arith.constant 0 : i32
    return %c0_i32, %c0_i32_0 : i32, i32
  }
  func.func @transform_3(%arg0: i32) -> (i32, i32, i32) {
    %c0_i32 = arith.constant 0 : i32
    %c0_i32_0 = arith.constant 0 : i32
    %c0_i32_1 = arith.constant 0 : i32
    return %arg0, %c0_i32, %c0_i32_0 : i32, i32, i32
  }
}

module attributes {stable_mosaic.version = 11 : i64} {
  func.func @_fused_conv_kernel(%arg0: i32, %arg1: memref<1x144x16xbf16, #tpu.memory_space<vmem>>, %arg2: memref<32x144xbf16, #tpu.memory_space<vmem>>, %arg3: memref<32x1xf32, #tpu.memory_space<vmem>>, %arg4: memref<1x32x16xbf16, #tpu.memory_space<vmem>>) attributes {dimension_semantics = [#tpu.dimension_semantics<parallel>], iteration_bounds = array<i64: 2>, scalar_prefetch = 0 : i64, scratch_operands = 0 : i64, tpu.core_type = #tpu.core_type<tc>, window_params = [{transform_indices = @transform_0, window_bounds = array<i64: 1, 144, 16>}, {pipeline_mode = #tpu.pipeline_mode<synchronous>, transform_indices = @transform_1, window_bounds = array<i64: 32, 144>}, {pipeline_mode = #tpu.pipeline_mode<synchronous>, transform_indices = @transform_2, window_bounds = array<i64: 32, 1>}, {transform_indices = @transform_3, window_bounds = array<i64: 1, 32, 16>}]} {
    %c0 = arith.constant 0 : index
    %c0_0 = arith.constant 0 : index
    %0 = vector.load %arg2[%c0, %c0_0] : memref<32x144xbf16, #tpu.memory_space<vmem>>, vector<32x144xbf16>
    %c0_1 = arith.constant 0 : index
    %c0_2 = arith.constant 0 : index
    %c0_3 = arith.constant 0 : index
    %1 = vector.load %arg1[%c0_1, %c0_2, %c0_3] : memref<1x144x16xbf16, #tpu.memory_space<vmem>>, vector<1x144x16xbf16>
    %2 = vector.shape_cast %1 : vector<1x144x16xbf16> to vector<144x16xbf16>
    %cst = arith.constant dense<0.000000e+00> : vector<32x16xf32>
    %3 = tpu.matmul %0, %2, %cst {dimension_numbers = #tpu.dot_dimension_numbers<[1], [0], [0], [1], [0, 0, 1, 1], [], []>} : vector<32x144xbf16>, vector<144x16xbf16>, vector<32x16xf32> -> vector<32x16xf32>
    %c0_4 = arith.constant 0 : index
    %c0_5 = arith.constant 0 : index
    %4 = vector.load %arg3[%c0_4, %c0_5] : memref<32x1xf32, #tpu.memory_space<vmem>>, vector<32x1xf32>
    %5 = vector.broadcast %4 : vector<32x1xf32> to vector<32x16xf32>
    %6 = arith.addf %3, %5 : vector<32x16xf32>
    %cst_6 = arith.constant dense<0.000000e+00> : vector<32xf32>
    %7 = vector.multi_reduction <add>, %6, %cst_6 [1] : vector<32x16xf32> to vector<32xf32>
    %8 = vector.shape_cast %7 : vector<32xf32> to vector<32x1xf32>
    %9 = arith.mulf %6, %6 : vector<32x16xf32>
    %cst_7 = arith.constant dense<0.000000e+00> : vector<32xf32>
    %10 = vector.multi_reduction <add>, %9, %cst_7 [1] : vector<32x16xf32> to vector<32xf32>
    %11 = vector.shape_cast %10 : vector<32xf32> to vector<32x1xf32>
    %cst_8 = arith.constant 6.250000e-02 : f32
    %12 = vector.broadcast %cst_8 : f32 to vector<32x1xf32>
    %13 = arith.mulf %8, %12 : vector<32x1xf32>
    %cst_9 = arith.constant 6.250000e-02 : f32
    %14 = vector.broadcast %cst_9 : f32 to vector<32x1xf32>
    %15 = arith.mulf %11, %14 : vector<32x1xf32>
    %16 = arith.mulf %13, %13 : vector<32x1xf32>
    %17 = arith.subf %15, %16 : vector<32x1xf32>
    %cst_10 = arith.constant 0.000000e+00 : f32
    %18 = vector.broadcast %cst_10 : f32 to vector<32x1xf32>
    %19 = arith.maximumf %17, %18 : vector<32x1xf32>
    %20 = vector.broadcast %13 : vector<32x1xf32> to vector<32x16xf32>
    %21 = arith.subf %6, %20 : vector<32x16xf32>
    %cst_11 = arith.constant 9.99999974E-6 : f32
    %22 = vector.broadcast %cst_11 : f32 to vector<32x1xf32>
    %23 = arith.addf %19, %22 : vector<32x1xf32>
    %24 = math.rsqrt %23 : vector<32x1xf32>
    %25 = vector.broadcast %24 : vector<32x1xf32> to vector<32x16xf32>
    %26 = arith.mulf %21, %25 : vector<32x16xf32>
    %cst_12 = arith.constant 0.000000e+00 : f32
    %27 = vector.broadcast %cst_12 : f32 to vector<32x16xf32>
    %28 = arith.maximumf %26, %27 : vector<32x16xf32>
    %29 = arith.truncf %28 : vector<32x16xf32> to vector<32x16xbf16>
    %c0_13 = arith.constant 0 : index
    %c0_14 = arith.constant 0 : index
    %c0_15 = arith.constant 0 : index
    %30 = vector.load %arg4[%c0_13, %c0_14, %c0_15] : memref<1x32x16xbf16, #tpu.memory_space<vmem>>, vector<1x32x16xbf16>
    %31 = vector.shape_cast %30 : vector<1x32x16xbf16> to vector<32x16xbf16>
    %32 = vector.shape_cast %29 : vector<32x16xbf16> to vector<1x32x16xbf16>
    tpu.vector_store %arg4[%c0_13, %c0_14, %c0_15], %32 {strides = array<i32>} : memref<1x32x16xbf16, #tpu.memory_space<vmem>>, vector<1x32x16xbf16>,
    return
  }
  func.func @transform_0(%arg0: i32) -> (i32, i32, i32) {
    %c0_i32 = arith.constant 0 : i32
    %c0_i32_0 = arith.constant 0 : i32
    %c0_i32_1 = arith.constant 0 : i32
    return %arg0, %c0_i32, %c0_i32_0 : i32, i32, i32
  }
  func.func @transform_1(%arg0: i32) -> (i32, i32) {
    %c0_i32 = arith.constant 0 : i32
    %c0_i32_0 = arith.constant 0 : i32
    %c0_i32_1 = arith.constant 0 : i32
    return %c0_i32, %c0_i32_0 : i32, i32
  }
  func.func @transform_2(%arg0: i32) -> (i32, i32) {
    %c0_i32 = arith.constant 0 : i32
    %c0_i32_0 = arith.constant 0 : i32
    %c0_i32_1 = arith.constant 0 : i32
    return %c0_i32, %c0_i32_0 : i32, i32
  }
  func.func @transform_3(%arg0: i32) -> (i32, i32, i32) {
    %c0_i32 = arith.constant 0 : i32
    %c0_i32_0 = arith.constant 0 : i32
    %c0_i32_1 = arith.constant 0 : i32
    return %arg0, %c0_i32, %c0_i32_0 : i32, i32, i32
  }
}

module attributes {stable_mosaic.version = 11 : i64} {
  func.func @_fused_conv_kernel(%arg0: i32, %arg1: memref<1x288x16xbf16, #tpu.memory_space<vmem>>, %arg2: memref<32x288xbf16, #tpu.memory_space<vmem>>, %arg3: memref<32x1xf32, #tpu.memory_space<vmem>>, %arg4: memref<1x32x16xbf16, #tpu.memory_space<vmem>>) attributes {dimension_semantics = [#tpu.dimension_semantics<parallel>], iteration_bounds = array<i64: 2>, scalar_prefetch = 0 : i64, scratch_operands = 0 : i64, tpu.core_type = #tpu.core_type<tc>, window_params = [{transform_indices = @transform_0, window_bounds = array<i64: 1, 288, 16>}, {pipeline_mode = #tpu.pipeline_mode<synchronous>, transform_indices = @transform_1, window_bounds = array<i64: 32, 288>}, {pipeline_mode = #tpu.pipeline_mode<synchronous>, transform_indices = @transform_2, window_bounds = array<i64: 32, 1>}, {transform_indices = @transform_3, window_bounds = array<i64: 1, 32, 16>}]} {
    %c0 = arith.constant 0 : index
    %c0_0 = arith.constant 0 : index
    %0 = vector.load %arg2[%c0, %c0_0] : memref<32x288xbf16, #tpu.memory_space<vmem>>, vector<32x288xbf16>
    %c0_1 = arith.constant 0 : index
    %c0_2 = arith.constant 0 : index
    %c0_3 = arith.constant 0 : index
    %1 = vector.load %arg1[%c0_1, %c0_2, %c0_3] : memref<1x288x16xbf16, #tpu.memory_space<vmem>>, vector<1x288x16xbf16>
    %2 = vector.shape_cast %1 : vector<1x288x16xbf16> to vector<288x16xbf16>
    %cst = arith.constant dense<0.000000e+00> : vector<32x16xf32>
    %3 = tpu.matmul %0, %2, %cst {dimension_numbers = #tpu.dot_dimension_numbers<[1], [0], [0], [1], [0, 0, 1, 1], [], []>} : vector<32x288xbf16>, vector<288x16xbf16>, vector<32x16xf32> -> vector<32x16xf32>
    %c0_4 = arith.constant 0 : index
    %c0_5 = arith.constant 0 : index
    %4 = vector.load %arg3[%c0_4, %c0_5] : memref<32x1xf32, #tpu.memory_space<vmem>>, vector<32x1xf32>
    %5 = vector.broadcast %4 : vector<32x1xf32> to vector<32x16xf32>
    %6 = arith.addf %3, %5 : vector<32x16xf32>
    %cst_6 = arith.constant dense<0.000000e+00> : vector<32xf32>
    %7 = vector.multi_reduction <add>, %6, %cst_6 [1] : vector<32x16xf32> to vector<32xf32>
    %8 = vector.shape_cast %7 : vector<32xf32> to vector<32x1xf32>
    %9 = arith.mulf %6, %6 : vector<32x16xf32>
    %cst_7 = arith.constant dense<0.000000e+00> : vector<32xf32>
    %10 = vector.multi_reduction <add>, %9, %cst_7 [1] : vector<32x16xf32> to vector<32xf32>
    %11 = vector.shape_cast %10 : vector<32xf32> to vector<32x1xf32>
    %cst_8 = arith.constant 6.250000e-02 : f32
    %12 = vector.broadcast %cst_8 : f32 to vector<32x1xf32>
    %13 = arith.mulf %8, %12 : vector<32x1xf32>
    %cst_9 = arith.constant 6.250000e-02 : f32
    %14 = vector.broadcast %cst_9 : f32 to vector<32x1xf32>
    %15 = arith.mulf %11, %14 : vector<32x1xf32>
    %16 = arith.mulf %13, %13 : vector<32x1xf32>
    %17 = arith.subf %15, %16 : vector<32x1xf32>
    %cst_10 = arith.constant 0.000000e+00 : f32
    %18 = vector.broadcast %cst_10 : f32 to vector<32x1xf32>
    %19 = arith.maximumf %17, %18 : vector<32x1xf32>
    %20 = vector.broadcast %13 : vector<32x1xf32> to vector<32x16xf32>
    %21 = arith.subf %6, %20 : vector<32x16xf32>
    %cst_11 = arith.constant 9.99999974E-6 : f32
    %22 = vector.broadcast %cst_11 : f32 to vector<32x1xf32>
    %23 = arith.addf %19, %22 : vector<32x1xf32>
    %24 = math.rsqrt %23 : vector<32x1xf32>
    %25 = vector.broadcast %24 : vector<32x1xf32> to vector<32x16xf32>
    %26 = arith.mulf %21, %25 : vector<32x16xf32>
    %cst_12 = arith.constant 0.000000e+00 : f32
    %27 = vector.broadcast %cst_12 : f32 to vector<32x16xf32>
    %28 = arith.maximumf %26, %27 : vector<32x16xf32>
    %29 = arith.truncf %28 : vector<32x16xf32> to vector<32x16xbf16>
    %c0_13 = arith.constant 0 : index
    %c0_14 = arith.constant 0 : index
    %c0_15 = arith.constant 0 : index
    %30 = vector.load %arg4[%c0_13, %c0_14, %c0_15] : memref<1x32x16xbf16, #tpu.memory_space<vmem>>, vector<1x32x16xbf16>
    %31 = vector.shape_cast %30 : vector<1x32x16xbf16> to vector<32x16xbf16>
    %32 = vector.shape_cast %29 : vector<32x16xbf16> to vector<1x32x16xbf16>
    tpu.vector_store %arg4[%c0_13, %c0_14, %c0_15], %32 {strides = array<i32>} : memref<1x32x16xbf16, #tpu.memory_space<vmem>>, vector<1x32x16xbf16>,
    return
  }
  func.func @transform_0(%arg0: i32) -> (i32, i32, i32) {
    %c0_i32 = arith.constant 0 : i32
    %c0_i32_0 = arith.constant 0 : i32
    %c0_i32_1 = arith.constant 0 : i32
    return %arg0, %c0_i32, %c0_i32_0 : i32, i32, i32
  }
  func.func @transform_1(%arg0: i32) -> (i32, i32) {
    %c0_i32 = arith.constant 0 : i32
    %c0_i32_0 = arith.constant 0 : i32
    %c0_i32_1 = arith.constant 0 : i32
    return %c0_i32, %c0_i32_0 : i32, i32
  }
  func.func @transform_2(%arg0: i32) -> (i32, i32) {
    %c0_i32 = arith.constant 0 : i32
    %c0_i32_0 = arith.constant 0 : i32
    %c0_i32_1 = arith.constant 0 : i32
    return %c0_i32, %c0_i32_0 : i32, i32
  }
  func.func @transform_3(%arg0: i32) -> (i32, i32, i32) {
    %c0_i32 = arith.constant 0 : i32
    %c0_i32_0 = arith.constant 0 : i32
    %c0_i32_1 = arith.constant 0 : i32
    return %arg0, %c0_i32, %c0_i32_0 : i32, i32, i32
  }
}

module attributes {stable_mosaic.version = 11 : i64} {
  func.func @_fused_conv_kernel(%arg0: i32, %arg1: memref<1x288x16xbf16, #tpu.memory_space<vmem>>, %arg2: memref<32x288xbf16, #tpu.memory_space<vmem>>, %arg3: memref<32x1xf32, #tpu.memory_space<vmem>>, %arg4: memref<1x32x16xbf16, #tpu.memory_space<vmem>>, %arg5: memref<1x32x16xbf16, #tpu.memory_space<vmem>>) attributes {dimension_semantics = [#tpu.dimension_semantics<parallel>], iteration_bounds = array<i64: 2>, scalar_prefetch = 0 : i64, scratch_operands = 0 : i64, tpu.core_type = #tpu.core_type<tc>, window_params = [{transform_indices = @transform_0, window_bounds = array<i64: 1, 288, 16>}, {pipeline_mode = #tpu.pipeline_mode<synchronous>, transform_indices = @transform_1, window_bounds = array<i64: 32, 288>}, {pipeline_mode = #tpu.pipeline_mode<synchronous>, transform_indices = @transform_2, window_bounds = array<i64: 32, 1>}, {transform_indices = @transform_3, window_bounds = array<i64: 1, 32, 16>}, {transform_indices = @transform_4, window_bounds = array<i64: 1, 32, 16>}]} {
    %c0 = arith.constant 0 : index
    %c0_0 = arith.constant 0 : index
    %0 = vector.load %arg2[%c0, %c0_0] : memref<32x288xbf16, #tpu.memory_space<vmem>>, vector<32x288xbf16>
    %c0_1 = arith.constant 0 : index
    %c0_2 = arith.constant 0 : index
    %c0_3 = arith.constant 0 : index
    %1 = vector.load %arg1[%c0_1, %c0_2, %c0_3] : memref<1x288x16xbf16, #tpu.memory_space<vmem>>, vector<1x288x16xbf16>
    %2 = vector.shape_cast %1 : vector<1x288x16xbf16> to vector<288x16xbf16>
    %cst = arith.constant dense<0.000000e+00> : vector<32x16xf32>
    %3 = tpu.matmul %0, %2, %cst {dimension_numbers = #tpu.dot_dimension_numbers<[1], [0], [0], [1], [0, 0, 1, 1], [], []>} : vector<32x288xbf16>, vector<288x16xbf16>, vector<32x16xf32> -> vector<32x16xf32>
    %c0_4 = arith.constant 0 : index
    %c0_5 = arith.constant 0 : index
    %4 = vector.load %arg3[%c0_4, %c0_5] : memref<32x1xf32, #tpu.memory_space<vmem>>, vector<32x1xf32>
    %5 = vector.broadcast %4 : vector<32x1xf32> to vector<32x16xf32>
    %6 = arith.addf %3, %5 : vector<32x16xf32>
    %cst_6 = arith.constant dense<0.000000e+00> : vector<32xf32>
    %7 = vector.multi_reduction <add>, %6, %cst_6 [1] : vector<32x16xf32> to vector<32xf32>
    %8 = vector.shape_cast %7 : vector<32xf32> to vector<32x1xf32>
    %9 = arith.mulf %6, %6 : vector<32x16xf32>
    %cst_7 = arith.constant dense<0.000000e+00> : vector<32xf32>
    %10 = vector.multi_reduction <add>, %9, %cst_7 [1] : vector<32x16xf32> to vector<32xf32>
    %11 = vector.shape_cast %10 : vector<32xf32> to vector<32x1xf32>
    %cst_8 = arith.constant 6.250000e-02 : f32
    %12 = vector.broadcast %cst_8 : f32 to vector<32x1xf32>
    %13 = arith.mulf %8, %12 : vector<32x1xf32>
    %cst_9 = arith.constant 6.250000e-02 : f32
    %14 = vector.broadcast %cst_9 : f32 to vector<32x1xf32>
    %15 = arith.mulf %11, %14 : vector<32x1xf32>
    %16 = arith.mulf %13, %13 : vector<32x1xf32>
    %17 = arith.subf %15, %16 : vector<32x1xf32>
    %cst_10 = arith.constant 0.000000e+00 : f32
    %18 = vector.broadcast %cst_10 : f32 to vector<32x1xf32>
    %19 = arith.maximumf %17, %18 : vector<32x1xf32>
    %20 = vector.broadcast %13 : vector<32x1xf32> to vector<32x16xf32>
    %21 = arith.subf %6, %20 : vector<32x16xf32>
    %cst_11 = arith.constant 9.99999974E-6 : f32
    %22 = vector.broadcast %cst_11 : f32 to vector<32x1xf32>
    %23 = arith.addf %19, %22 : vector<32x1xf32>
    %24 = math.rsqrt %23 : vector<32x1xf32>
    %25 = vector.broadcast %24 : vector<32x1xf32> to vector<32x16xf32>
    %26 = arith.mulf %21, %25 : vector<32x16xf32>
    %c0_12 = arith.constant 0 : index
    %c0_13 = arith.constant 0 : index
    %c0_14 = arith.constant 0 : index
    %27 = vector.load %arg4[%c0_12, %c0_13, %c0_14] : memref<1x32x16xbf16, #tpu.memory_space<vmem>>, vector<1x32x16xbf16>
    %28 = vector.shape_cast %27 : vector<1x32x16xbf16> to vector<32x16xbf16>
    %29 = arith.extf %28 : vector<32x16xbf16> to vector<32x16xf32>
    %30 = arith.addf %26, %29 : vector<32x16xf32>
    %31 = arith.truncf %30 : vector<32x16xf32> to vector<32x16xbf16>
    %c0_15 = arith.constant 0 : index
    %c0_16 = arith.constant 0 : index
    %c0_17 = arith.constant 0 : index
    %32 = vector.load %arg5[%c0_15, %c0_16, %c0_17] : memref<1x32x16xbf16, #tpu.memory_space<vmem>>, vector<1x32x16xbf16>
    %33 = vector.shape_cast %32 : vector<1x32x16xbf16> to vector<32x16xbf16>
    %34 = vector.shape_cast %31 : vector<32x16xbf16> to vector<1x32x16xbf16>
    tpu.vector_store %arg5[%c0_15, %c0_16, %c0_17], %34 {strides = array<i32>} : memref<1x32x16xbf16, #tpu.memory_space<vmem>>, vector<1x32x16xbf16>,
    return
  }
  func.func @transform_0(%arg0: i32) -> (i32, i32, i32) {
    %c0_i32 = arith.constant 0 : i32
    %c0_i32_0 = arith.constant 0 : i32
    %c0_i32_1 = arith.constant 0 : i32
    return %arg0, %c0_i32, %c0_i32_0 : i32, i32, i32
  }
  func.func @transform_1(%arg0: i32) -> (i32, i32) {
    %c0_i32 = arith.constant 0 : i32
    %c0_i32_0 = arith.constant 0 : i32
    %c0_i32_1 = arith.constant 0 : i32
    return %c0_i32, %c0_i32_0 : i32, i32
  }
  func.func @transform_2(%arg0: i32) -> (i32, i32) {
    %c0_i32 = arith.constant 0 : i32
    %c0_i32_0 = arith.constant 0 : i32
    %c0_i32_1 = arith.constant 0 : i32
    return %c0_i32, %c0_i32_0 : i32, i32
  }
  func.func @transform_3(%arg0: i32) -> (i32, i32, i32) {
    %c0_i32 = arith.constant 0 : i32
    %c0_i32_0 = arith.constant 0 : i32
    %c0_i32_1 = arith.constant 0 : i32
    return %arg0, %c0_i32, %c0_i32_0 : i32, i32, i32
  }
  func.func @transform_4(%arg0: i32) -> (i32, i32, i32) {
    %c0_i32 = arith.constant 0 : i32
    %c0_i32_0 = arith.constant 0 : i32
    %c0_i32_1 = arith.constant 0 : i32
    return %arg0, %c0_i32, %c0_i32_0 : i32, i32, i32
  }
}

module attributes {stable_mosaic.version = 11 : i64} {
  func.func @_fused_conv_kernel(%arg0: i32, %arg1: memref<1x128x16xbf16, #tpu.memory_space<vmem>>, %arg2: memref<64x128xbf16, #tpu.memory_space<vmem>>, %arg3: memref<64x1xf32, #tpu.memory_space<vmem>>, %arg4: memref<1x64x16xbf16, #tpu.memory_space<vmem>>) attributes {dimension_semantics = [#tpu.dimension_semantics<parallel>], iteration_bounds = array<i64: 2>, scalar_prefetch = 0 : i64, scratch_operands = 0 : i64, tpu.core_type = #tpu.core_type<tc>, window_params = [{transform_indices = @transform_0, window_bounds = array<i64: 1, 128, 16>}, {pipeline_mode = #tpu.pipeline_mode<synchronous>, transform_indices = @transform_1, window_bounds = array<i64: 64, 128>}, {pipeline_mode = #tpu.pipeline_mode<synchronous>, transform_indices = @transform_2, window_bounds = array<i64: 64, 1>}, {transform_indices = @transform_3, window_bounds = array<i64: 1, 64, 16>}]} {
    %c0 = arith.constant 0 : index
    %c0_0 = arith.constant 0 : index
    %0 = vector.load %arg2[%c0, %c0_0] : memref<64x128xbf16, #tpu.memory_space<vmem>>, vector<64x128xbf16>
    %c0_1 = arith.constant 0 : index
    %c0_2 = arith.constant 0 : index
    %c0_3 = arith.constant 0 : index
    %1 = vector.load %arg1[%c0_1, %c0_2, %c0_3] : memref<1x128x16xbf16, #tpu.memory_space<vmem>>, vector<1x128x16xbf16>
    %2 = vector.shape_cast %1 : vector<1x128x16xbf16> to vector<128x16xbf16>
    %cst = arith.constant dense<0.000000e+00> : vector<64x16xf32>
    %3 = tpu.matmul %0, %2, %cst {dimension_numbers = #tpu.dot_dimension_numbers<[1], [0], [0], [1], [0, 0, 1, 1], [], []>} : vector<64x128xbf16>, vector<128x16xbf16>, vector<64x16xf32> -> vector<64x16xf32>
    %c0_4 = arith.constant 0 : index
    %c0_5 = arith.constant 0 : index
    %4 = vector.load %arg3[%c0_4, %c0_5] : memref<64x1xf32, #tpu.memory_space<vmem>>, vector<64x1xf32>
    %5 = vector.broadcast %4 : vector<64x1xf32> to vector<64x16xf32>
    %6 = arith.addf %3, %5 : vector<64x16xf32>
    %cst_6 = arith.constant dense<0.000000e+00> : vector<64xf32>
    %7 = vector.multi_reduction <add>, %6, %cst_6 [1] : vector<64x16xf32> to vector<64xf32>
    %8 = vector.shape_cast %7 : vector<64xf32> to vector<64x1xf32>
    %9 = arith.mulf %6, %6 : vector<64x16xf32>
    %cst_7 = arith.constant dense<0.000000e+00> : vector<64xf32>
    %10 = vector.multi_reduction <add>, %9, %cst_7 [1] : vector<64x16xf32> to vector<64xf32>
    %11 = vector.shape_cast %10 : vector<64xf32> to vector<64x1xf32>
    %12 = vector.extract_strided_slice %8 {offsets = [0, 0], sizes = [16, 1], strides = [1, 1]} : vector<64x1xf32> to vector<16x1xf32>
    %cst_8 = arith.constant 0.000000e+00 : f32
    %13 = vector.broadcast %cst_8 : f32 to vector<16x1xf32>
    %14 = arith.addf %13, %12 : vector<16x1xf32>
    %15 = vector.extract_strided_slice %8 {offsets = [16, 0], sizes = [16, 1], strides = [1, 1]} : vector<64x1xf32> to vector<16x1xf32>
    %16 = arith.addf %14, %15 : vector<16x1xf32>
    %17 = vector.extract_strided_slice %8 {offsets = [32, 0], sizes = [16, 1], strides = [1, 1]} : vector<64x1xf32> to vector<16x1xf32>
    %18 = arith.addf %16, %17 : vector<16x1xf32>
    %19 = vector.extract_strided_slice %8 {offsets = [48, 0], sizes = [16, 1], strides = [1, 1]} : vector<64x1xf32> to vector<16x1xf32>
    %20 = arith.addf %18, %19 : vector<16x1xf32>
    %21 = vector.extract_strided_slice %11 {offsets = [0, 0], sizes = [16, 1], strides = [1, 1]} : vector<64x1xf32> to vector<16x1xf32>
    %cst_9 = arith.constant 0.000000e+00 : f32
    %22 = vector.broadcast %cst_9 : f32 to vector<16x1xf32>
    %23 = arith.addf %22, %21 : vector<16x1xf32>
    %24 = vector.extract_strided_slice %11 {offsets = [16, 0], sizes = [16, 1], strides = [1, 1]} : vector<64x1xf32> to vector<16x1xf32>
    %25 = arith.addf %23, %24 : vector<16x1xf32>
    %26 = vector.extract_strided_slice %11 {offsets = [32, 0], sizes = [16, 1], strides = [1, 1]} : vector<64x1xf32> to vector<16x1xf32>
    %27 = arith.addf %25, %26 : vector<16x1xf32>
    %28 = vector.extract_strided_slice %11 {offsets = [48, 0], sizes = [16, 1], strides = [1, 1]} : vector<64x1xf32> to vector<16x1xf32>
    %29 = arith.addf %27, %28 : vector<16x1xf32>
    %30 = tpu.concatenate %20, %20, %20, %20 in 0 : vector<16x1xf32>, vector<16x1xf32>, vector<16x1xf32>, vector<16x1xf32> -> vector<64x1xf32>
    %31 = tpu.concatenate %29, %29, %29, %29 in 0 : vector<16x1xf32>, vector<16x1xf32>, vector<16x1xf32>, vector<16x1xf32> -> vector<64x1xf32>
    %cst_10 = arith.constant 1.562500e-02 : f32
    %32 = vector.broadcast %cst_10 : f32 to vector<64x1xf32>
    %33 = arith.mulf %30, %32 : vector<64x1xf32>
    %cst_11 = arith.constant 1.562500e-02 : f32
    %34 = vector.broadcast %cst_11 : f32 to vector<64x1xf32>
    %35 = arith.mulf %31, %34 : vector<64x1xf32>
    %36 = arith.mulf %33, %33 : vector<64x1xf32>
    %37 = arith.subf %35, %36 : vector<64x1xf32>
    %cst_12 = arith.constant 0.000000e+00 : f32
    %38 = vector.broadcast %cst_12 : f32 to vector<64x1xf32>
    %39 = arith.maximumf %37, %38 : vector<64x1xf32>
    %40 = vector.broadcast %33 : vector<64x1xf32> to vector<64x16xf32>
    %41 = arith.subf %6, %40 : vector<64x16xf32>
    %cst_13 = arith.constant 9.99999974E-6 : f32
    %42 = vector.broadcast %cst_13 : f32 to vector<64x1xf32>
    %43 = arith.addf %39, %42 : vector<64x1xf32>
    %44 = math.rsqrt %43 : vector<64x1xf32>
    %45 = vector.broadcast %44 : vector<64x1xf32> to vector<64x16xf32>
    %46 = arith.mulf %41, %45 : vector<64x16xf32>
    %cst_14 = arith.constant 0.000000e+00 : f32
    %47 = vector.broadcast %cst_14 : f32 to vector<64x16xf32>
    %48 = arith.maximumf %46, %47 : vector<64x16xf32>
    %49 = arith.truncf %48 : vector<64x16xf32> to vector<64x16xbf16>
    %c0_15 = arith.constant 0 : index
    %c0_16 = arith.constant 0 : index
    %c0_17 = arith.constant 0 : index
    %50 = vector.load %arg4[%c0_15, %c0_16, %c0_17] : memref<1x64x16xbf16, #tpu.memory_space<vmem>>, vector<1x64x16xbf16>
    %51 = vector.shape_cast %50 : vector<1x64x16xbf16> to vector<64x16xbf16>
    %52 = vector.shape_cast %49 : vector<64x16xbf16> to vector<1x64x16xbf16>
    tpu.vector_store %arg4[%c0_15, %c0_16, %c0_17], %52 {strides = array<i32>} : memref<1x64x16xbf16, #tpu.memory_space<vmem>>, vector<1x64x16xbf16>,
    return
  }
  func.func @transform_0(%arg0: i32) -> (i32, i32, i32) {
    %c0_i32 = arith.constant 0 : i32
    %c0_i32_0 = arith.constant 0 : i32
    %c0_i32_1 = arith.constant 0 : i32
    return %arg0, %c0_i32, %c0_i32_0 : i32, i32, i32
  }
  func.func @transform_1(%arg0: i32) -> (i32, i32) {
    %c0_i32 = arith.constant 0 : i32
    %c0_i32_0 = arith.constant 0 : i32
    %c0_i32_1 = arith.constant 0 : i32
    return %c0_i32, %c0_i32_0 : i32, i32
  }
  func.func @transform_2(%arg0: i32) -> (i32, i32) {
    %c0_i32 = arith.constant 0 : i32
    %c0_i32_0 = arith.constant 0 : i32
    %c0_i32_1 = arith.constant 0 : i32
    return %c0_i32, %c0_i32_0 : i32, i32
  }
  func.func @transform_3(%arg0: i32) -> (i32, i32, i32) {
    %c0_i32 = arith.constant 0 : i32
    %c0_i32_0 = arith.constant 0 : i32
    %c0_i32_1 = arith.constant 0 : i32
    return %arg0, %c0_i32, %c0_i32_0 : i32, i32, i32
  }
}

module attributes {stable_mosaic.version = 11 : i64} {
  func.func @_fused_conv_kernel(%arg0: i32, %arg1: memref<1x64x64xbf16, #tpu.memory_space<vmem>>, %arg2: memref<32x64xbf16, #tpu.memory_space<vmem>>, %arg3: memref<32x1xf32, #tpu.memory_space<vmem>>, %arg4: memref<1x32x64xbf16, #tpu.memory_space<vmem>>) attributes {dimension_semantics = [#tpu.dimension_semantics<parallel>], iteration_bounds = array<i64: 2>, scalar_prefetch = 0 : i64, scratch_operands = 0 : i64, tpu.core_type = #tpu.core_type<tc>, window_params = [{transform_indices = @transform_0, window_bounds = array<i64: 1, 64, 64>}, {pipeline_mode = #tpu.pipeline_mode<synchronous>, transform_indices = @transform_1, window_bounds = array<i64: 32, 64>}, {pipeline_mode = #tpu.pipeline_mode<synchronous>, transform_indices = @transform_2, window_bounds = array<i64: 32, 1>}, {transform_indices = @transform_3, window_bounds = array<i64: 1, 32, 64>}]} {
    %c0 = arith.constant 0 : index
    %c0_0 = arith.constant 0 : index
    %0 = vector.load %arg2[%c0, %c0_0] : memref<32x64xbf16, #tpu.memory_space<vmem>>, vector<32x64xbf16>
    %c0_1 = arith.constant 0 : index
    %c0_2 = arith.constant 0 : index
    %c0_3 = arith.constant 0 : index
    %1 = vector.load %arg1[%c0_1, %c0_2, %c0_3] : memref<1x64x64xbf16, #tpu.memory_space<vmem>>, vector<1x64x64xbf16>
    %2 = vector.shape_cast %1 : vector<1x64x64xbf16> to vector<64x64xbf16>
    %cst = arith.constant dense<0.000000e+00> : vector<32x64xf32>
    %3 = tpu.matmul %0, %2, %cst {dimension_numbers = #tpu.dot_dimension_numbers<[1], [0], [0], [1], [0, 0, 1, 1], [], []>} : vector<32x64xbf16>, vector<64x64xbf16>, vector<32x64xf32> -> vector<32x64xf32>
    %c0_4 = arith.constant 0 : index
    %c0_5 = arith.constant 0 : index
    %4 = vector.load %arg3[%c0_4, %c0_5] : memref<32x1xf32, #tpu.memory_space<vmem>>, vector<32x1xf32>
    %5 = vector.broadcast %4 : vector<32x1xf32> to vector<32x64xf32>
    %6 = arith.addf %3, %5 : vector<32x64xf32>
    %cst_6 = arith.constant dense<0.000000e+00> : vector<32xf32>
    %7 = vector.multi_reduction <add>, %6, %cst_6 [1] : vector<32x64xf32> to vector<32xf32>
    %8 = vector.shape_cast %7 : vector<32xf32> to vector<32x1xf32>
    %9 = arith.mulf %6, %6 : vector<32x64xf32>
    %cst_7 = arith.constant dense<0.000000e+00> : vector<32xf32>
    %10 = vector.multi_reduction <add>, %9, %cst_7 [1] : vector<32x64xf32> to vector<32xf32>
    %11 = vector.shape_cast %10 : vector<32xf32> to vector<32x1xf32>
    %12 = vector.extract_strided_slice %8 {offsets = [0, 0], sizes = [8, 1], strides = [1, 1]} : vector<32x1xf32> to vector<8x1xf32>
    %cst_8 = arith.constant 0.000000e+00 : f32
    %13 = vector.broadcast %cst_8 : f32 to vector<8x1xf32>
    %14 = arith.addf %13, %12 : vector<8x1xf32>
    %15 = vector.extract_strided_slice %8 {offsets = [8, 0], sizes = [8, 1], strides = [1, 1]} : vector<32x1xf32> to vector<8x1xf32>
    %16 = arith.addf %14, %15 : vector<8x1xf32>
    %17 = vector.extract_strided_slice %8 {offsets = [16, 0], sizes = [8, 1], strides = [1, 1]} : vector<32x1xf32> to vector<8x1xf32>
    %18 = arith.addf %16, %17 : vector<8x1xf32>
    %19 = vector.extract_strided_slice %8 {offsets = [24, 0], sizes = [8, 1], strides = [1, 1]} : vector<32x1xf32> to vector<8x1xf32>
    %20 = arith.addf %18, %19 : vector<8x1xf32>
    %21 = vector.extract_strided_slice %11 {offsets = [0, 0], sizes = [8, 1], strides = [1, 1]} : vector<32x1xf32> to vector<8x1xf32>
    %cst_9 = arith.constant 0.000000e+00 : f32
    %22 = vector.broadcast %cst_9 : f32 to vector<8x1xf32>
    %23 = arith.addf %22, %21 : vector<8x1xf32>
    %24 = vector.extract_strided_slice %11 {offsets = [8, 0], sizes = [8, 1], strides = [1, 1]} : vector<32x1xf32> to vector<8x1xf32>
    %25 = arith.addf %23, %24 : vector<8x1xf32>
    %26 = vector.extract_strided_slice %11 {offsets = [16, 0], sizes = [8, 1], strides = [1, 1]} : vector<32x1xf32> to vector<8x1xf32>
    %27 = arith.addf %25, %26 : vector<8x1xf32>
    %28 = vector.extract_strided_slice %11 {offsets = [24, 0], sizes = [8, 1], strides = [1, 1]} : vector<32x1xf32> to vector<8x1xf32>
    %29 = arith.addf %27, %28 : vector<8x1xf32>
    %30 = tpu.concatenate %20, %20, %20, %20 in 0 : vector<8x1xf32>, vector<8x1xf32>, vector<8x1xf32>, vector<8x1xf32> -> vector<32x1xf32>
    %31 = tpu.concatenate %29, %29, %29, %29 in 0 : vector<8x1xf32>, vector<8x1xf32>, vector<8x1xf32>, vector<8x1xf32> -> vector<32x1xf32>
    %cst_10 = arith.constant 3.906250e-03 : f32
    %32 = vector.broadcast %cst_10 : f32 to vector<32x1xf32>
    %33 = arith.mulf %30, %32 : vector<32x1xf32>
    %cst_11 = arith.constant 3.906250e-03 : f32
    %34 = vector.broadcast %cst_11 : f32 to vector<32x1xf32>
    %35 = arith.mulf %31, %34 : vector<32x1xf32>
    %36 = arith.mulf %33, %33 : vector<32x1xf32>
    %37 = arith.subf %35, %36 : vector<32x1xf32>
    %cst_12 = arith.constant 0.000000e+00 : f32
    %38 = vector.broadcast %cst_12 : f32 to vector<32x1xf32>
    %39 = arith.maximumf %37, %38 : vector<32x1xf32>
    %40 = vector.broadcast %33 : vector<32x1xf32> to vector<32x64xf32>
    %41 = arith.subf %6, %40 : vector<32x64xf32>
    %cst_13 = arith.constant 9.99999974E-6 : f32
    %42 = vector.broadcast %cst_13 : f32 to vector<32x1xf32>
    %43 = arith.addf %39, %42 : vector<32x1xf32>
    %44 = math.rsqrt %43 : vector<32x1xf32>
    %45 = vector.broadcast %44 : vector<32x1xf32> to vector<32x64xf32>
    %46 = arith.mulf %41, %45 : vector<32x64xf32>
    %cst_14 = arith.constant 0.000000e+00 : f32
    %47 = vector.broadcast %cst_14 : f32 to vector<32x64xf32>
    %48 = arith.maximumf %46, %47 : vector<32x64xf32>
    %49 = arith.truncf %48 : vector<32x64xf32> to vector<32x64xbf16>
    %c0_15 = arith.constant 0 : index
    %c0_16 = arith.constant 0 : index
    %c0_17 = arith.constant 0 : index
    %50 = vector.load %arg4[%c0_15, %c0_16, %c0_17] : memref<1x32x64xbf16, #tpu.memory_space<vmem>>, vector<1x32x64xbf16>
    %51 = vector.shape_cast %50 : vector<1x32x64xbf16> to vector<32x64xbf16>
    %52 = vector.shape_cast %49 : vector<32x64xbf16> to vector<1x32x64xbf16>
    tpu.vector_store %arg4[%c0_15, %c0_16, %c0_17], %52 {strides = array<i32>} : memref<1x32x64xbf16, #tpu.memory_space<vmem>>, vector<1x32x64xbf16>,
    return
  }
  func.func @transform_0(%arg0: i32) -> (i32, i32, i32) {
    %c0_i32 = arith.constant 0 : i32
    %c0_i32_0 = arith.constant 0 : i32
    %c0_i32_1 = arith.constant 0 : i32
    return %arg0, %c0_i32, %c0_i32_0 : i32, i32, i32
  }
  func.func @transform_1(%arg0: i32) -> (i32, i32) {
    %c0_i32 = arith.constant 0 : i32
    %c0_i32_0 = arith.constant 0 : i32
    %c0_i32_1 = arith.constant 0 : i32
    return %c0_i32, %c0_i32_0 : i32, i32
  }
  func.func @transform_2(%arg0: i32) -> (i32, i32) {
    %c0_i32 = arith.constant 0 : i32
    %c0_i32_0 = arith.constant 0 : i32
    %c0_i32_1 = arith.constant 0 : i32
    return %c0_i32, %c0_i32_0 : i32, i32
  }
  func.func @transform_3(%arg0: i32) -> (i32, i32, i32) {
    %c0_i32 = arith.constant 0 : i32
    %c0_i32_0 = arith.constant 0 : i32
    %c0_i32_1 = arith.constant 0 : i32
    return %arg0, %c0_i32, %c0_i32_0 : i32, i32, i32
  }
}

module attributes {stable_mosaic.version = 11 : i64} {
  func.func @_fused_conv_kernel(%arg0: i32, %arg1: memref<1x392x256xbf16, #tpu.memory_space<vmem>>, %arg2: memref<1x392xbf16, #tpu.memory_space<vmem>>, %arg3: memref<1x1xf32, #tpu.memory_space<vmem>>, %arg4: memref<1x1x256xf32, #tpu.memory_space<vmem>>) attributes {dimension_semantics = [#tpu.dimension_semantics<parallel>], iteration_bounds = array<i64: 2>, scalar_prefetch = 0 : i64, scratch_operands = 0 : i64, tpu.core_type = #tpu.core_type<tc>, window_params = [{transform_indices = @transform_0, window_bounds = array<i64: 1, 392, 256>}, {pipeline_mode = #tpu.pipeline_mode<synchronous>, transform_indices = @transform_1, window_bounds = array<i64: 1, 392>}, {pipeline_mode = #tpu.pipeline_mode<synchronous>, transform_indices = @transform_2, window_bounds = array<i64: 1, 1>}, {transform_indices = @transform_3, window_bounds = array<i64: 1, 1, 256>}]} {
    %c0 = arith.constant 0 : index
    %c0_0 = arith.constant 0 : index
    %0 = vector.load %arg2[%c0, %c0_0] : memref<1x392xbf16, #tpu.memory_space<vmem>>, vector<1x392xbf16>
    %c0_1 = arith.constant 0 : index
    %c0_2 = arith.constant 0 : index
    %c0_3 = arith.constant 0 : index
    %1 = vector.load %arg1[%c0_1, %c0_2, %c0_3] : memref<1x392x256xbf16, #tpu.memory_space<vmem>>, vector<1x392x256xbf16>
    %2 = vector.shape_cast %1 : vector<1x392x256xbf16> to vector<392x256xbf16>
    %cst = arith.constant dense<0.000000e+00> : vector<1x256xf32>
    %3 = tpu.matmul %0, %2, %cst {dimension_numbers = #tpu.dot_dimension_numbers<[1], [0], [0], [1], [0, 0, 1, 1], [], []>} : vector<1x392xbf16>, vector<392x256xbf16>, vector<1x256xf32> -> vector<1x256xf32>
    %c0_4 = arith.constant 0 : index
    %c0_5 = arith.constant 0 : index
    %4 = vector.load %arg3[%c0_4, %c0_5] : memref<1x1xf32, #tpu.memory_space<vmem>>, vector<1x1xf32>
    %5 = vector.broadcast %4 : vector<1x1xf32> to vector<1x256xf32>
    %6 = arith.addf %3, %5 : vector<1x256xf32>
    %7 = math.tanh %6 : vector<1x256xf32>
    %c0_6 = arith.constant 0 : index
    %c0_7 = arith.constant 0 : index
    %c0_8 = arith.constant 0 : index
    %8 = vector.load %arg4[%c0_6, %c0_7, %c0_8] : memref<1x1x256xf32, #tpu.memory_space<vmem>>, vector<1x1x256xf32>
    %9 = vector.shape_cast %8 : vector<1x1x256xf32> to vector<1x256xf32>
    %10 = vector.shape_cast %7 : vector<1x256xf32> to vector<1x1x256xf32>
    tpu.vector_store %arg4[%c0_6, %c0_7, %c0_8], %10 {strides = array<i32>} : memref<1x1x256xf32, #tpu.memory_space<vmem>>, vector<1x1x256xf32>,
    return
  }
  func.func @transform_0(%arg0: i32) -> (i32, i32, i32) {
    %c0_i32 = arith.constant 0 : i32
    %c0_i32_0 = arith.constant 0 : i32
    %c0_i32_1 = arith.constant 0 : i32
    return %arg0, %c0_i32, %c0_i32_0 : i32, i32, i32
  }
  func.func @transform_1(%arg0: i32) -> (i32, i32) {
    %c0_i32 = arith.constant 0 : i32
    %c0_i32_0 = arith.constant 0 : i32
    %c0_i32_1 = arith.constant 0 : i32
    return %c0_i32, %c0_i32_0 : i32, i32
  }
  func.func @transform_2(%arg0: i32) -> (i32, i32) {
    %c0_i32 = arith.constant 0 : i32
    %c0_i32_0 = arith.constant 0 : i32
    %c0_i32_1 = arith.constant 0 : i32
    return %c0_i32, %c0_i32_0 : i32, i32
  }
  func.func @transform_3(%arg0: i32) -> (i32, i32, i32) {
    %c0_i32 = arith.constant 0 : i32
    %c0_i32_0 = arith.constant 0 : i32
    %c0_i32_1 = arith.constant 0 : i32
    return %arg0, %c0_i32, %c0_i32_0 : i32, i32, i32
  }
}

</mosaic_0001>

<bundles_post_ra>
// kernel: resnet_generator_forward.10
= control target key start
LH: loop header
LB: loop body
LE: loop exit
PB: predicated region body
PF: predicated region fallthrough
CT: control target
= control target key end

     0   :  { %s432_s12 = smov 0   ;;  %s459_s0 = inlined_call_operand.vmem [shape: bf16[2,49,256], index: 0, kind: input, shape index: {}]   ;;  %s460_s1 = inlined_call_operand.vmem [shape: bf16[8,49], index: 1, kind: input, shape index: {}]   ;;  %s461_s2 = inlined_call_operand.vmem [shape: f32[8,1], index: 2, kind: input, shape index: {}]   ;;  %s462_s3 = inlined_call_operand.vmem [shape: bf16[2,8,256], index: 3, kind: output, shape index: {}]  }
   0x1 LB: > { %s347_s13 = sadd.s32 4294967295, %s409_s12   ;;  %p351_p0 = scmp.ge.s32.totalorder %s409_s12, 1  ;;  %s409_s12 = sphi %s432_s12, %s13_s12  }
   0x2   : > { %p137_p1 = scmp.lt.s32.totalorder %s409_s12, 3 }
   0x4   : > { %p138_p2 = pnand %p351_p0, %p137_p1 }
   0x5   : > { %p161_p3 = scmp.lt.s32.totalorder (!%p138_p2), %s347_s13, 1 }
   0x6   : > { %141 = sbr.rel (%p138_p2) target bundleno = 318 (0x13e), region = 32 }
   0xb   : > { %v411_v0 = vmov 0   ;;  %v180_v1 = vld [vmem:[%s461_s2] sm:$0xff]  ;;  %s464_s13 = smov (!%p161_p3, %s347_s13), 1  ;;  %vm225_vm0 = vcmask 1040384   ;;  %vm221_vm1 = vcmask 400384  }
   0xc   : > { %400 = vset.pattern.permute.xlu0 %v411_v0  ;;  %s390_s16 = smul.u32 56, %s464_s13  ;;  %v227_v5 = vsel %vm225_vm0, 65535, %v411_v0  ;;  %v172_v28 = vld [vmem:[%s460_s1] sm:$0xf]  ;;  %s383_s22 = sshll.u32 %s464_s13, 3 }
   0xd   : > { %183 = vperm.xlu0 %400, %v180_v1   ;;  %s170_s25 = scalar_lea.vmem %s462_s3, %s383_s22 }
   0xe   : > { %s165_s19 = scalar_lea.vmem %s459_s0, %s390_s16 }
   0xf   : > { %v179_v2 = vld [vmem:[%s165_s19 + $0x30] sm:$0x11]  ;;  %v373_v8 = vld [vmem:[%s165_s19 + $0x20] sm:$0xf]  ;;  %v389_v9 = vld [vmem:[%s165_s19 + $0x24] sm:$0xf0] }
  0x10   : > { %v205_v3 = vunpack.c.l.b16 %v179_v2  ;;  %v206_v4 = vunpack.c.h.b16 %v179_v2  ;;  %v388_v10 = vld [vmem:[%s165_s19 + $0x24] sm:$0xf]  ;;  %v375_v11 = vld [vmem:[%s165_s19 + $0x28] sm:$0xf0]  ;;  %v374_v14 = vor.u32 %v389_v9, %v373_v8  ;;  %v365_v16 = vld [vmem:[%s165_s19 + $0x10] sm:$0xf] }
  0x11   : > { %v378_v15 = vor.u32 %v388_v10, %v375_v11  ;;  %v387_v17 = vld [vmem:[%s165_s19 + $0x14] sm:$0xf0]  ;;  %v386_v18 = vld [vmem:[%s165_s19 + $0x14] sm:$0xf]  ;;  %v367_v19 = vld [vmem:[%s165_s19 + $0x18] sm:$0xf0] }
  0x12   : > { %v213_v6 = vpack.c.b16 %v205_v3, %v205_v3  ;;  %v214_v7 = vpack.c.b16 %v206_v4, %v206_v4  ;;  %v366_v20 = vor.u32 %v387_v17, %v365_v16  ;;  %v370_v21 = vor.u32 %v386_v18, %v367_v19  ;;  %v357_v22 = vld [vmem:[%s165_s19] sm:$0xf]  ;;  %v385_v23 = vld [vmem:[%s165_s19 + $0x4] sm:$0xf0]  ;;  %v384_v24 = vld [vmem:[%s165_s19 + $0x4] sm:$0xf] }
  0x13   : > { %v359_v25 = vld [vmem:[%s165_s19 + $0x8] sm:$0xf0]  ;;  %v358_v26 = vor.u32 %v385_v23, %v357_v22 }
  0x14   : > { %v229_v12 = vand.u32 %v227_v5, %v213_v6  ;;  %v232_v13 = vand.u32 %v227_v5, %v214_v7  ;;  %v362_v27 = vor.u32 %v384_v24, %v359_v25 }
  0x16   : > { %238 = vmatpush.bf16.msra.mxu0 %v229_v12  ;;  %251 = vmatpush.bf16.msra.mxu1 %v232_v13 }
  0x1a   : > { %239 = vmatpush.bf16.msra.mxu0 %v374_v14  ;;  %252 = vmatpush.bf16.msra.mxu1 %v378_v15 }
  0x1e   : > { %240 = vmatpush.bf16.msra.mxu0 %v366_v20  ;;  %253 = vmatpush.bf16.msra.mxu1 %v370_v21 }
  0x22   : > { %241 = vmatpush.bf16.msra.mxu0 %v358_v26  ;;  %254 = vmatpush.bf16.msra.mxu1 %v362_v27 }
  0x25   : > { %379 = vmatmul.msk.bf16.vlgmr.msra.gmra.mxu0 %vm221_vm1, %v172_v28  ;;  %380 = vmatmul.msk.bf16.vlgmr.msra.gmra.mxu1 %vm221_vm1, %v172_v28 }
  0x7f   : > { %v184_v29 = vpop.permute.xlu0 %183 }
  0xa2   : > { %v243_v30 = vpop.f32.mrf.mxu0  ;;  %v256_v31 = vpop.f32.mrf.mxu1 }
  0xa3   : > { %v244_v32 = vadd.f32 %v243_v30, %v184_v29  ;;  %v257_v33 = vadd.f32 %v256_v31, %v184_v29 }
  0xa5   : > { %v260_v34 = vadd.f32 %v257_v33, %v244_v32  ;;  %v263_v35 = vmul.f32 %v244_v32, %v244_v32  ;;  %v264_v36 = vmul.f32 %v257_v33, %v257_v33 }
  0xa7   : > { %261 = vadd.xlane.f32.xlu0 %v260_v34  ;;  %v265_v37 = vadd.f32 %v264_v36, %v263_v35 }
  0xa9   : > { %266 = vadd.xlane.f32.xlu1 %v265_v37 }
  0xaa   : > { %v245_v38 = vpop.f32.mrf.mxu0  ;;  %v258_v39 = vpop.f32.mrf.mxu1 }
 0x11a   : > { %v262_v40 = vpop.xlane.xlu0 %261 }
 0x11b   : > { %v268_v41 = vmul.f32 0.00390625, %v262_v40 }
 0x11c   : > { %v267_v42 = vpop.xlane.xlu1 %266 }
 0x11d   : > { %v269_v43 = vmul.f32 0.00390625, %v267_v42  ;;  %v270_v44 = vmul.f32 %v268_v41, %v268_v41  ;;  %v273_v54 = vsub.f32 %v244_v32, %v268_v41  ;;  %v274_v55 = vsub.f32 %v257_v33, %v268_v41 }
 0x11f   : > { %v271_v45 = vsub.f32 %v269_v43, %v270_v44 }
 0x121   : > { %v272_v46 = vmax.f32 %v271_v45, 0.0 }
 0x123   : > { %v275_v47 = vadd.f32 1e-05, %v272_v46 }
 0x125   : > { %401 = vrsqrt.f32 %v275_v47  ;;  %vm282_vm3 = vweird.f32 %v275_v47 }
 0x12b   : > { %v402_v48 = vpop.eup %401 }
 0x12c   : > { %v277_v49 = vmul.f32 %v402_v48, %v275_v47  ;;  %vm283_vm2 = vweird.f32 %v402_v48 }
 0x12d   : > { %vm284_vm4 = vmor %vm282_vm3, %vm283_vm2 }
 0x12e   : > { %v278_v50 = vmul.f32 %v402_v48, %v277_v49 }
 0x130   : > { %v279_v51 = vmul.f32 0.5, %v278_v50 }
 0x132   : > { %v280_v52 = vsub.f32 1.5, %v279_v51 }
 0x134   : > { %v281_v53 = vmul.f32 %v402_v48, %v280_v52 }
 0x136   : > { %v285_v56 = vsel %vm284_vm4, %v402_v48, %v281_v53 }
 0x137   : > { %v286_v57 = vmul.f32 %v285_v56, %v273_v54  ;;  %v287_v58 = vmul.f32 %v285_v56, %v274_v55 }
 0x139   : > { %v288_v59 = vmax.f32 %v286_v57, 0.0  ;;  %v289_v60 = vmax.f32 %v287_v58, 0.0 }
 0x13b   : > { %v290_v61 = vpack.c.bf16 %v289_v60, %v288_v59 }
 0x13d   : > { %291 = vst [vmem:[%s170_s25] sm:$0xff] %v290_v61 }
 0x13e PF: > { %s13_s12 = sadd.s32 1, %s409_s12  }
 0x13f   : > { %p10_p4 = scmp.ge.s32.totalorder %s13_s12, 4  }
 0x141   :  { %12 = sbr.rel (!%p10_p4) target bundleno = 1 (0x1), region = 62 }

// kernel: resnet_generator_forward.11
= control target key start
LH: loop header
LB: loop body
LE: loop exit
PB: predicated region body
PF: predicated region fallthrough
CT: control target
= control target key end

     0   :  { %s443_s12 = smov 0   ;;  %s473_s0 = inlined_call_operand.vmem [shape: bf16[2,72,64], index: 0, kind: input, shape index: {}]   ;;  %s474_s1 = inlined_call_operand.vmem [shape: bf16[16,72], index: 1, kind: input, shape index: {}]   ;;  %s475_s2 = inlined_call_operand.vmem [shape: f32[16,1], index: 2, kind: input, shape index: {}]   ;;  %s476_s3 = inlined_call_operand.vmem [shape: bf16[2,16,64], index: 3, kind: output, shape index: {}]  }
   0x1 LB: > { %s362_s13 = sadd.s32 4294967295, %s420_s12   ;;  %p366_p0 = scmp.ge.s32.totalorder %s420_s12, 1  ;;  %s420_s12 = sphi %s443_s12, %s13_s12  }
   0x2   : > { %p137_p1 = scmp.lt.s32.totalorder %s420_s12, 3 }
   0x4   : > { %p138_p2 = pnand %p366_p0, %p137_p1 }
   0x5   : > { %p161_p3 = scmp.lt.s32.totalorder (!%p138_p2), %s362_s13, 1 }
   0x6   : > { %141 = sbr.rel (%p138_p2) target bundleno = 328 (0x148), region = 32 }
   0xb   : > { %v183_v0 = vld [vmem:[%s475_s2] sm:$0xff]  ;;  %v422_v1 = vmov 0   ;;  %s478_s13 = smov (!%p161_p3, %s362_s13), 1  ;;  %v184_v3 = vld [vmem:[%s475_s2 + $0x8] sm:$0xff]  ;;  %vm231_vm0 = vcmask 1043456   ;;  %vm227_vm1 = vcmask 588800  }
   0xc   : > { %409 = vset.pattern.permute.xlu0 %v422_v1  ;;  %s399_s16 = smul.u32 36, %s478_s13  ;;  %v394_v11 = vld [vmem:[%s474_s1] sm:$0xff]  ;;  %vm249_vm2 = vcmask 523264   ;;  %s393_s24 = sshll.u32 %s478_s13, 3  ;;  %vm304_vm6 = vcmask 519168  }
   0xd   : > { %187 = vperm.xlu0 %409, %v183_v0   ;;  %s170_s27 = scalar_lea.vmem %s476_s3, %s393_s24 }
   0xe   : > { %s165_s19 = scalar_lea.vmem %s473_s0, %s399_s16 }
   0xf   : > { %v182_v2 = vld [vmem:[%s165_s19 + $0x20] sm:$0xf]  ;;  %v398_v7 = vld [vmem:[%s165_s19 + $0x18] sm:$0xff]  ;;  %v397_v8 = vld [vmem:[%s165_s19 + $0x10] sm:$0xff] }
  0x10   : > { %v217_v4 = vunpack.c.l.b16 %v182_v2  ;;  %v396_v9 = vld [vmem:[%s165_s19 + $0x8] sm:$0xff]  ;;  %v395_v10 = vld [vmem:[%s165_s19] sm:$0xff] }
  0x12   : > { %v222_v5 = vpack.c.b16 %v217_v4, %v217_v4 }
  0x14   : > { %v233_v6 = vsel %vm231_vm0, %v222_v5, 0 }
  0x15   : > { %192 = vperm.xlu0 %409, %v184_v3   ;;  %238 = vmatpush.bf16.msra.mxu0 %v233_v6 }
  0x19   : > { %239 = vmatpush.bf16.msra.mxu0 %v398_v7 }
  0x1d   : > { %240 = vmatpush.bf16.msra.mxu0 %v397_v8 }
  0x21   : > { %241 = vmatpush.bf16.msra.mxu0 %v396_v9 }
  0x25   : > { %242 = vmatpush.bf16.msra.mxu0 %v395_v10 }
  0x28   : > { %390 = vmatmul.msk.bf16.vlgmr.msra.gmra.mxu0 %vm227_vm1, %v394_v11 }
  0x7f   : > { %v188_v12 = vpop.permute.xlu0 %187 }
  0x87   : > { %v193_v18 = vpop.permute.xlu0 %192 }
  0xa5   : > { %v244_v13 = vpop.f32.mrf.mxu0 }
  0xa6   : > { %v245_v14 = vadd.f32 %v244_v13, %v188_v12 }
  0xa8   : > { %v250_v15 = vsel %vm249_vm2, %v245_v14, 0.0  ;;  %v256_v16 = vmul.f32 %v245_v14, %v245_v14 }
  0xa9   : > { %251 = vadd.xlane.f32.xlu1 %v250_v15 }
  0xaa   : > { %v258_v17 = vsel %vm249_vm2, %v256_v16, 0.0 }
  0xab   : > { %259 = vadd.xlane.f32.xlu2 %v258_v17 }
  0xad   : > { %v246_v19 = vpop.f32.mrf.mxu0 }
  0xae   : > { %v247_v20 = vadd.f32 %v246_v19, %v193_v18 }
  0xb0   : > { %v253_v21 = vsel %vm249_vm2, %v247_v20, 0.0  ;;  %v257_v22 = vmul.f32 %v247_v20, %v247_v20 }
  0xb1   : > { %254 = vadd.xlane.f32.xlu1 %v253_v21 }
  0xb2   : > { %v261_v23 = vsel %vm249_vm2, %v257_v22, 0.0 }
  0xb3   : > { %262 = vadd.xlane.f32.xlu2 %v261_v23 }
 0x11c   : > { %v252_v24 = vpop.xlane.xlu1 %251 }
 0x11d   : > { %v264_v25 = vmul.f32 0.015625, %v252_v24 }
 0x11e   : > { %v260_v26 = vpop.xlane.xlu2 %259 }
 0x11f   : > { %v268_v27 = vmul.f32 %v264_v25, %v264_v25  ;;  %v266_v28 = vmul.f32 0.015625, %v260_v26  ;;  %v274_v47 = vsub.f32 %v245_v14, %v264_v25 }
 0x121   : > { %v270_v29 = vsub.f32 %v266_v28, %v268_v27 }
 0x123   : > { %v272_v30 = vmax.f32 %v270_v29, 0.0 }
 0x124   : > { %v255_v31 = vpop.xlane.xlu1 %254 }
 0x125   : > { %v276_v32 = vadd.f32 1e-05, %v272_v30  ;;  %v265_v33 = vmul.f32 0.015625, %v255_v31 }
 0x126   : > { %v263_v34 = vpop.xlane.xlu2 %262 }
 0x127   : > { %410 = vrsqrt.f32 %v276_v32  ;;  %v269_v35 = vmul.f32 %v265_v33, %v265_v33  ;;  %v267_v36 = vmul.f32 0.015625, %v263_v34  ;;  %vm284_vm4 = vweird.f32 %v276_v32 }
 0x128   : > { %v275_v57 = vsub.f32 %v247_v20, %v265_v33 }
 0x129   : > { %v271_v37 = vsub.f32 %v267_v36, %v269_v35 }
 0x12b   : > { %v273_v38 = vmax.f32 %v271_v37, 0.0 }
 0x12d   : > { %v411_v39 = vpop.eup %410  ;;  %v277_v41 = vadd.f32 1e-05, %v273_v38 }
 0x12e   : > { %v279_v40 = vmul.f32 %v411_v39, %v276_v32  ;;  %vm285_vm3 = vweird.f32 %v411_v39 }
 0x12f   : > { %412 = vrsqrt.f32 %v277_v41  ;;  %vm286_vm5 = vmor %vm284_vm4, %vm285_vm3  ;;  %vm294_vm8 = vweird.f32 %v277_v41 }
 0x130   : > { %v280_v42 = vmul.f32 %v411_v39, %v279_v40 }
 0x132   : > { %v281_v43 = vmul.f32 0.5, %v280_v42 }
 0x134   : > { %v282_v44 = vsub.f32 1.5, %v281_v43 }
 0x135   : > { %v413_v45 = vpop.eup %412 }
 0x136   : > { %v283_v46 = vmul.f32 %v411_v39, %v282_v44  ;;  %v289_v48 = vmul.f32 %v413_v45, %v277_v41  ;;  %vm295_vm7 = vweird.f32 %v413_v45 }
 0x137   : > { %vm296_vm9 = vmor %vm294_vm8, %vm295_vm7 }
 0x138   : > { %v287_v49 = vsel %vm286_vm5, %v411_v39, %v283_v46  ;;  %v290_v51 = vmul.f32 %v413_v45, %v289_v48 }
 0x139   : > { %v298_v50 = vmul.f32 %v287_v49, %v274_v47 }
 0x13a   : > { %v291_v53 = vmul.f32 0.5, %v290_v51 }
 0x13b   : > { %v300_v52 = vmax.f32 %v298_v50, 0.0 }
 0x13c   : > { %v292_v55 = vsub.f32 1.5, %v291_v53 }
 0x13d   : > { %v302_v54 = vpack.c.bf16 %v300_v52, %v300_v52 }
 0x13e   : > { %v293_v56 = vmul.f32 %v413_v45, %v292_v55 }
 0x13f   : > { %305 = vst.msk [vmem:[%s170_s27] sm:$0xf] %vm304_vm6, %v302_v54 }
 0x140   : > { %v297_v58 = vsel %vm296_vm9, %v413_v45, %v293_v56 }
 0x141   : > { %v299_v59 = vmul.f32 %v297_v58, %v275_v57 }
 0x143   : > { %v301_v60 = vmax.f32 %v299_v59, 0.0 }
 0x145   : > { %v303_v61 = vpack.c.bf16 %v301_v60, %v301_v60 }
 0x147   : > { %306 = vst.msk [vmem:[%s170_s27 + $0x4] sm:$0xf] %vm304_vm6, %v303_v61 }
 0x148 PF: > { %s13_s12 = sadd.s32 1, %s420_s12  }
 0x149   : > { %p10_p4 = scmp.ge.s32.totalorder %s13_s12, 4  }
 0x14b   :  { %12 = sbr.rel (!%p10_p4) target bundleno = 1 (0x1), region = 62 }

// kernel: resnet_generator_forward.12
= control target key start
LH: loop header
LB: loop body
LE: loop exit
PB: predicated region body
PF: predicated region fallthrough
CT: control target
= control target key end

     0   :  { %s638_s12 = smov 0   ;;  %s760_s0 = inlined_call_operand.vmem [shape: bf16[2,144,16], index: 0, kind: input, shape index: {}]   ;;  %s761_s1 = inlined_call_operand.vmem [shape: bf16[32,144], index: 1, kind: input, shape index: {}]   ;;  %s762_s2 = inlined_call_operand.vmem [shape: f32[32,1], index: 2, kind: input, shape index: {}]   ;;  %s763_s3 = inlined_call_operand.vmem [shape: bf16[2,32,16], index: 3, kind: output, shape index: {}]  }
   0x1 LB: > { %s503_s13 = sadd.s32 4294967295, %s615_s12   ;;  %p507_p0 = scmp.ge.s32.totalorder %s615_s12, 1  ;;  %s615_s12 = sphi %s638_s12, %s13_s12  }
   0x2   : > { %p137_p1 = scmp.lt.s32.totalorder %s615_s12, 3 }
   0x4   : > { %p138_p2 = pnand %p507_p0, %p137_p1 }
   0x5   : > { %p161_p3 = scmp.lt.s32.totalorder (!%p138_p2), %s503_s13, 1 }
   0x6   : > { %141 = sbr.rel (%p138_p2) target bundleno = 367 (0x16f), region = 32 }
   0xb   : > { %s765_s13 = smov (!%p161_p3, %s503_s13), 1  ;;  %v568_v1 = vld [vmem:[%s761_s1 + $0x4] sm:$0xf]  ;;  %v515_v2 = vld [vmem:[%s761_s1 + $0x8] sm:$0xf0]  ;;  %v617_v6 = vmov 0  }
   0xc   : > { %s589_s14 = smul.u32 72, %s765_s13  ;;  %v518_v5 = vor.u32 %v568_v1, %v515_v2  ;;  %599 = vset.pattern.permute.xlu0 %v617_v6  ;;  %v194_v7 = vld [vmem:[%s762_s2] sm:$0xff]  ;;  %600 = vset.pattern.permute.xlu1 %v617_v6  ;;  %vm290_vm0 = vcmask 130048   ;;  %v196_v8 = vld [vmem:[%s762_s2 + $0x10] sm:$0xff]  ;;  %v195_v10 = vld [vmem:[%s762_s2 + $0x8] sm:$0xff]  ;;  %vm443_vm4 = vcmask 125952  }
   0xd   : > { %200 = vperm.xlu0 %599, %v194_v7   ;;  %210 = vperm.xlu1 %600, %v196_v8   ;;  %v197_v12 = vld [vmem:[%s762_s2 + $0x18] sm:$0xff]  ;;  %v570_v14 = vld [vmem:[%s761_s1 + $0x14] sm:$0xf]  ;;  %v513_v19 = vld [vmem:[%s761_s1] sm:$0xf] }
   0xe   : > { %s652_s17 = scalar_lea.vmem %s760_s0, %s589_s14  ;;  %v523_v15 = vld [vmem:[%s761_s1 + $0x18] sm:$0xf0]  ;;  %v569_v20 = vld [vmem:[%s761_s1 + $0x4] sm:$0xf0]  ;;  %v521_v22 = vld [vmem:[%s761_s1 + $0x10] sm:$0xf] }
   0xf   : > { %v579_v0 = vld [vmem:[%s652_s17 + $0x38] sm:$0xff]  ;;  %v578_v3 = vld [vmem:[%s652_s17 + $0x30] sm:$0xff]  ;;  %v580_v4 = vld [vmem:[%s652_s17 + $0x40] sm:$0xff]  ;;  %v526_v17 = vor.u32 %v570_v14, %v523_v15  ;;  %v514_v24 = vor.u32 %v569_v20, %v513_v19 }
  0x10   : > { %297 = vmatpush.bf16.msra.mxu0 %v579_v0  ;;  %581 = vmatpush.bf16.msra.mxu2 %v579_v0  ;;  %v577_v9 = vld [vmem:[%s652_s17 + $0x28] sm:$0xff]  ;;  %v576_v11 = vld [vmem:[%s652_s17 + $0x20] sm:$0xff]  ;;  %v575_v13 = vld [vmem:[%s652_s17 + $0x18] sm:$0xff] }
  0x11   : > { %323 = vmatpush.bf16.msra.mxu1 %v580_v4  ;;  %v574_v16 = vld [vmem:[%s652_s17 + $0x10] sm:$0xff]  ;;  %v573_v18 = vld [vmem:[%s652_s17 + $0x8] sm:$0xff]  ;;  %v572_v21 = vld [vmem:[%s652_s17] sm:$0xff]  ;;  %s567_s17 = sshll.u32 %s765_s13, 4 }
  0x12   : > { %v571_v23 = vld [vmem:[%s761_s1 + $0x14] sm:$0xf0]  ;;  %s742_s20 = scalar_lea.vmem %s763_s3, %s567_s17 }
  0x13   : > { %v522_v25 = vor.u32 %v571_v23, %v521_v22 }
  0x14   : > { %298 = vmatpush.bf16.msra.mxu0 %v578_v3  ;;  %582 = vmatpush.bf16.msra.mxu2 %v578_v3 }
  0x15   : > { %563 = vmatmul.msk.bf16.vlgmr.msra.gmra.mxu1 %vm290_vm0, %v518_v5  ;;  %205 = vperm.xlu0 %599, %v195_v10  }
  0x16   : > { %215 = vperm.xlu1 %600, %v197_v12  }
  0x18   : > { %299 = vmatpush.bf16.msra.mxu0 %v577_v9  ;;  %583 = vmatpush.bf16.msra.mxu2 %v577_v9 }
  0x1c   : > { %300 = vmatpush.bf16.msra.mxu0 %v576_v11  ;;  %584 = vmatpush.bf16.msra.mxu2 %v576_v11 }
  0x20   : > { %301 = vmatpush.bf16.msra.mxu0 %v575_v13  ;;  %585 = vmatpush.bf16.msra.mxu2 %v575_v13 }
  0x24   : > { %302 = vmatpush.bf16.msra.mxu0 %v574_v16  ;;  %586 = vmatpush.bf16.msra.mxu2 %v574_v16 }
  0x25   : > { %564 = vmatmul.msk.bf16.gmra.mxu1 %vm290_vm0, %v526_v17 }
  0x28   : > { %303 = vmatpush.bf16.msra.mxu0 %v573_v18  ;;  %587 = vmatpush.bf16.msra.mxu2 %v573_v18 }
  0x2c   : > { %304 = vmatpush.bf16.msra.mxu0 %v572_v21  ;;  %588 = vmatpush.bf16.msra.mxu2 %v572_v21 }
  0x2f   : > { %305 = vmatmul.bf16.vlgmr.msra.gmra.mxu0 %v514_v24  ;;  %310 = vmatmul.bf16.vlgmr.msra.gmra.mxu2 %v522_v25 }
  0x7f   : > { %v201_v28 = vpop.permute.xlu0 %200  ;;  %v211_v31 = vpop.permute.xlu1 %210 }
  0x87   : > { %v206_v37 = vpop.permute.xlu0 %205 }
  0x88   : > { %v216_v43 = vpop.permute.xlu1 %215 }
  0x92   : > { %v325_v26 = vpop.f32.mrf.mxu1 }
  0x9a   : > { %v327_v27 = vpop.f32.mrf.mxu1 }
  0xa2   : > { %v330_v33 = vpop.f32.mrf.mxu1 }
  0xaa   : > { %v332_v46 = vpop.f32.mrf.mxu1 }
  0xac   : > { %v306_v29 = vpop.f32.mrf.mxu0 }
  0xad   : > { %v307_v30 = vadd.f32 %v306_v29, %v201_v28 }
  0xaf   : > { %v701_v32 = vadd.f32 %v325_v26, %v307_v30 }
  0xb1   : > { %v335_v34 = vsel %vm290_vm0, %v701_v32, 0.0  ;;  %v347_v49 = vmul.f32 %v701_v32, %v701_v32 }
  0xb2   : > { %v311_v35 = vpop.f32.mrf.mxu2  ;;  %336 = vadd.xlane.f32.xlu2 %v335_v34 }
  0xb3   : > { %v312_v36 = vadd.f32 %v311_v35, %v211_v31  ;;  %v351_v51 = vsel %vm290_vm0, %v347_v49, 0.0 }
  0xb4   : > { %v308_v38 = vpop.f32.mrf.mxu0 }
  0xb5   : > { %v309_v39 = vadd.f32 %v308_v38, %v206_v37  ;;  %v705_v40 = vadd.f32 %v330_v33, %v312_v36 }
  0xb7   : > { %v707_v41 = vadd.f32 %v327_v27, %v309_v39  ;;  %v341_v42 = vsel %vm290_vm0, %v705_v40, 0.0  ;;  %v349_v54 = vmul.f32 %v705_v40, %v705_v40 }
  0xb8   : > { %342 = vadd.xlane.f32.xlu0 %v341_v42 }
  0xb9   : > { %v338_v44 = vsel %vm290_vm0, %v707_v41, 0.0  ;;  %v348_v52 = vmul.f32 %v707_v41, %v707_v41  ;;  %v357_v55 = vsel %vm290_vm0, %v349_v54, 0.0 }
  0xba   : > { %v313_v45 = vpop.f32.mrf.mxu2  ;;  %339 = vadd.xlane.f32.xlu2 %v338_v44 }
  0xbb   : > { %v314_v47 = vadd.f32 %v313_v45, %v216_v43  ;;  %v354_v53 = vsel %vm290_vm0, %v348_v52, 0.0 }
  0xbd   : > { %v713_v48 = vadd.f32 %v332_v46, %v314_v47 }
  0xbf   : > { %v344_v50 = vsel %vm290_vm0, %v713_v48, 0.0  ;;  %v350_v56 = vmul.f32 %v713_v48, %v713_v48 }
  0xc0   : > { %345 = vadd.xlane.f32.xlu1 %v344_v50 }
  0xc1   : > { %v360_v57 = vsel %vm290_vm0, %v350_v56, 0.0 }
  0xc2   : > { %352 = vadd.xlane.f32.xlu2 %v351_v51 }
  0xca   : > { %355 = vadd.xlane.f32.xlu2 %v354_v53 }
  0xd2   : > { %358 = vadd.xlane.f32.xlu2 %v357_v55 }
  0xda   : > { %361 = vadd.xlane.f32.xlu2 %v360_v57 }
 0x125   : > { %v337_v58 = vpop.xlane.xlu2 %336 }
 0x126   : > { %v363_v60 = vmul.f32 0.0625, %v337_v58 }
 0x128   : > { %v371_v62 = vmul.f32 %v363_v60, %v363_v60  ;;  %v383_v29 = vsub.f32 %v701_v32, %v363_v60 }
 0x12b   : > { %v343_v7 = vpop.xlane.xlu0 %342 }
 0x12c   : > { %v729_v9 = vmul.f32 0.0625, %v343_v7 }
 0x12d   : > { %v340_v59 = vpop.xlane.xlu2 %339 }
 0x12e   : > { %v364_v1 = vmul.f32 0.0625, %v340_v59  ;;  %v373_v12 = vmul.f32 %v729_v9, %v729_v9 }
 0x130   : > { %v372_v5 = vmul.f32 %v364_v1, %v364_v1  ;;  %v384_v47 = vsub.f32 %v707_v41, %v364_v1  ;;  %v385_v41 = vsub.f32 %v705_v40, %v729_v9 }
 0x133   : > { %v346_v19 = vpop.xlane.xlu1 %345 }
 0x134   : > { %v733_v24 = vmul.f32 0.0625, %v346_v19 }
 0x135   : > { %v353_v61 = vpop.xlane.xlu2 %352 }
 0x136   : > { %v367_v63 = vmul.f32 0.0625, %v353_v61  ;;  %v374_v30 = vmul.f32 %v733_v24, %v733_v24 }
 0x138   : > { %v375_v0 = vsub.f32 %v367_v63, %v371_v62 }
 0x13a   : > { %v379_v2 = vmax.f32 %v375_v0, 0.0 }
 0x13c   : > { %v387_v3 = vadd.f32 1e-05, %v379_v2 }
 0x13d   : > { %v356_v4 = vpop.xlane.xlu2 %355 }
 0x13e   : > { %601 = vrsqrt.f32 %v387_v3  ;;  %v368_v6 = vmul.f32 0.0625, %v356_v4  ;;  %vm397_vm2 = vweird.f32 %v387_v3 }
 0x140   : > { %v376_v8 = vsub.f32 %v368_v6, %v372_v5 }
 0x142   : > { %v380_v10 = vmax.f32 %v376_v8, 0.0 }
 0x144   : > { %v602_v11 = vpop.eup %601  ;;  %v388_v13 = vadd.f32 1e-05, %v380_v10 }
 0x145   : > { %v392_v14 = vmul.f32 %v602_v11, %v387_v3  ;;  %v359_v15 = vpop.xlane.xlu2 %358  ;;  %vm398_vm1 = vweird.f32 %v602_v11  ;;  %v386_v3 = vsub.f32 %v713_v48, %v733_v24 }
 0x146   : > { %603 = vrsqrt.f32 %v388_v13  ;;  %v369_v16 = vmul.f32 0.0625, %v359_v15  ;;  %vm399_vm3 = vmor %vm397_vm2, %vm398_vm1  ;;  %vm407_vm6 = vweird.f32 %v388_v13 }
 0x147   : > { %v393_v17 = vmul.f32 %v602_v11, %v392_v14 }
 0x148   : > { %v377_v18 = vsub.f32 %v369_v16, %v373_v12 }
 0x149   : > { %v394_v20 = vmul.f32 0.5, %v393_v17 }
 0x14a   : > { %v381_v21 = vmax.f32 %v377_v18, 0.0 }
 0x14b   : > { %v395_v22 = vsub.f32 1.5, %v394_v20 }
 0x14c   : > { %v604_v23 = vpop.eup %603  ;;  %v389_v25 = vadd.f32 1e-05, %v381_v21 }
 0x14d   : > { %v396_v26 = vmul.f32 %v602_v11, %v395_v22  ;;  %v402_v27 = vmul.f32 %v604_v23, %v388_v13  ;;  %v362_v28 = vpop.xlane.xlu2 %361  ;;  %vm408_vm5 = vweird.f32 %v604_v23 }
 0x14e   : > { %605 = vrsqrt.f32 %v389_v25  ;;  %v370_v31 = vmul.f32 0.0625, %v362_v28  ;;  %vm409_vm7 = vmor %vm407_vm6, %vm408_vm5  ;;  %vm417_vm9 = vweird.f32 %v389_v25 }
 0x14f   : > { %v400_v33 = vsel %vm399_vm3, %v602_v11, %v396_v26  ;;  %v403_v34 = vmul.f32 %v604_v23, %v402_v27 }
 0x150   : > { %v431_v35 = vmul.f32 %v400_v33, %v383_v29  ;;  %v378_v36 = vsub.f32 %v370_v31, %v374_v30 }
 0x151   : > { %v404_v37 = vmul.f32 0.5, %v403_v34 }
 0x152   : > { %v435_v38 = vmax.f32 %v431_v35, 0.0  ;;  %v382_v39 = vmax.f32 %v378_v36, 0.0 }
 0x153   : > { %v405_v32 = vsub.f32 1.5, %v404_v37 }
 0x154   : > { %v606_v42 = vpop.eup %605  ;;  %v439_v43 = vpack.c.bf16 %v435_v38, %v435_v38  ;;  %v390_v44 = vadd.f32 1e-05, %v382_v39 }
 0x155   : > { %v406_v45 = vmul.f32 %v604_v23, %v405_v32  ;;  %v412_v46 = vmul.f32 %v606_v42, %v389_v25  ;;  %vm418_vm8 = vweird.f32 %v606_v42 }
 0x156   : > { %444 = vst.msk [vmem:[%s742_s20] sm:$0xf] %vm443_vm4, %v439_v43  ;;  %607 = vrsqrt.f32 %v390_v44  ;;  %vm419_vm10 = vmor %vm417_vm9, %vm418_vm8  ;;  %vm427_vm12 = vweird.f32 %v390_v44 }
 0x157   : > { %v410_v49 = vsel %vm409_vm7, %v604_v23, %v406_v45  ;;  %v413_v50 = vmul.f32 %v606_v42, %v412_v46 }
 0x158   : > { %v432_v51 = vmul.f32 %v410_v49, %v384_v47 }
 0x159   : > { %v414_v52 = vmul.f32 0.5, %v413_v50 }
 0x15a   : > { %v436_v53 = vmax.f32 %v432_v51, 0.0 }
 0x15b   : > { %v415_v54 = vsub.f32 1.5, %v414_v52 }
 0x15c   : > { %v608_v55 = vpop.eup %607  ;;  %v440_v56 = vpack.c.bf16 %v436_v53, %v436_v53 }
 0x15d   : > { %v416_v57 = vmul.f32 %v606_v42, %v415_v54  ;;  %v422_v58 = vmul.f32 %v608_v55, %v390_v44  ;;  %vm428_vm11 = vweird.f32 %v608_v55 }
 0x15e   : > { %445 = vst.msk [vmem:[%s742_s20 + $0x4] sm:$0xf] %vm443_vm4, %v440_v56  ;;  %vm429_vm13 = vmor %vm427_vm12, %vm428_vm11 }
 0x15f   : > { %v420_v59 = vsel %vm419_vm10, %v606_v42, %v416_v57  ;;  %v423_v60 = vmul.f32 %v608_v55, %v422_v58 }
 0x160   : > { %v433_v61 = vmul.f32 %v420_v59, %v385_v41 }
 0x161   : > { %v424_v62 = vmul.f32 0.5, %v423_v60 }
 0x162   : > { %v437_v63 = vmax.f32 %v433_v61, 0.0 }
 0x163   : > { %v425_v0 = vsub.f32 1.5, %v424_v62 }
 0x164   : > { %v441_v1 = vpack.c.bf16 %v437_v63, %v437_v63 }
 0x165   : > { %v426_v2 = vmul.f32 %v608_v55, %v425_v0 }
 0x166   : > { %446 = vst.msk [vmem:[%s742_s20 + $0x8] sm:$0xf] %vm443_vm4, %v441_v1 }
 0x167   : > { %v430_v40 = vsel %vm429_vm13, %v608_v55, %v426_v2 }
 0x168   : > { %v434_v4 = vmul.f32 %v430_v40, %v386_v3 }
 0x16a   : > { %v438_v5 = vmax.f32 %v434_v4, 0.0 }
 0x16c   : > { %v442_v6 = vpack.c.bf16 %v438_v5, %v438_v5 }
 0x16e   : > { %447 = vst.msk [vmem:[%s742_s20 + $0xc] sm:$0xf] %vm443_vm4, %v442_v6 }
 0x16f PF: > { %s13_s12 = sadd.s32 1, %s615_s12  }
 0x170   : > { %p10_p4 = scmp.ge.s32.totalorder %s13_s12, 4  }
 0x172   :  { %12 = sbr.rel (!%p10_p4) target bundleno = 1 (0x1), region = 62 }

// kernel: resnet_generator_forward.13
= control target key start
LH: loop header
LB: loop body
LE: loop exit
PB: predicated region body
PF: predicated region fallthrough
CT: control target
= control target key end

     0   :  { %s801_s12 = smov 0   ;;  %s939_s0 = inlined_call_operand.vmem [shape: bf16[2,288,16], index: 0, kind: input, shape index: {}]   ;;  %s940_s1 = inlined_call_operand.vmem [shape: bf16[32,288], index: 1, kind: input, shape index: {}]   ;;  %s941_s2 = inlined_call_operand.vmem [shape: f32[32,1], index: 2, kind: input, shape index: {}]   ;;  %s942_s3 = inlined_call_operand.vmem [shape: bf16[2,32,16], index: 3, kind: output, shape index: {}]  }
   0x1 LB: > { %s611_s13 = sadd.s32 4294967295, %s778_s12   ;;  %p615_p0 = scmp.ge.s32.totalorder %s778_s12, 1  ;;  %s778_s12 = sphi %s801_s12, %s13_s12  }
   0x2   : > { %p137_p1 = scmp.lt.s32.totalorder %s778_s12, 3 }
   0x4   : > { %p138_p2 = pnand %p615_p0, %p137_p1 }
   0x5   : > { %p161_p3 = scmp.lt.s32.totalorder (!%p138_p2), %s611_s13, 1 }
   0x6   : > { %141 = sbr.rel (%p138_p2) target bundleno = 369 (0x171), region = 32 }
   0xb   : > { %s944_s13 = smov (!%p161_p3, %s611_s13), 1  ;;  %v780_v5 = vmov 0   ;;  %v629_v7 = vld [vmem:[%s940_s1 + $0x8] sm:$0xf]  ;;  %v722_v8 = vld [vmem:[%s940_s1 + $0x10] sm:$0xf0] }
   0xc   : > { %s752_s14 = smul.u32 144, %s944_s13  ;;  %762 = vset.pattern.permute.xlu0 %v780_v5  ;;  %763 = vset.pattern.permute.xlu1 %v780_v5  ;;  %v216_v11 = vld [vmem:[%s941_s2] sm:$0xff]  ;;  %v630_v12 = vor.u32 %v722_v8, %v629_v7  ;;  %vm378_vm0 = vcmask 261120   ;;  %v217_v15 = vld [vmem:[%s941_s2 + $0x8] sm:$0xff]  ;;  %v218_v18 = vld [vmem:[%s941_s2 + $0x10] sm:$0xff]  ;;  %vm442_vm1 = vcmask 130048  }
   0xd   : > { %222 = vperm.xlu0 %762, %v216_v11   ;;  %232 = vperm.xlu1 %763, %v218_v18   ;;  %v641_v21 = vld [vmem:[%s940_s1 + $0x20] sm:$0xf]  ;;  %v725_v22 = vld [vmem:[%s940_s1 + $0x28] sm:$0xf0]  ;;  %v720_v28 = vld [vmem:[%s940_s1 + $0x4] sm:$0xf] }
   0xe   : > { %s815_s17 = scalar_lea.vmem %s939_s0, %s752_s14  ;;  %v642_v25 = vor.u32 %v725_v22, %v641_v21  ;;  %v621_v26 = vld [vmem:[%s940_s1] sm:$0xf]  ;;  %v721_v27 = vld [vmem:[%s940_s1 + $0x8] sm:$0xf0]  ;;  %v219_v29 = vld [vmem:[%s941_s2 + $0x18] sm:$0xff]  ;;  %s719_s25 = sshll.u32 %s944_s13, 4 }
   0xf   : > { %v733_v0 = vld [vmem:[%s815_s17 + $0x38] sm:$0xff]  ;;  %v732_v2 = vld [vmem:[%s815_s17 + $0x30] sm:$0xff]  ;;  %v743_v4 = vld [vmem:[%s815_s17 + $0x88] sm:$0xff]  ;;  %v622_v35 = vor.u32 %v721_v27, %v621_v26  ;;  %s922_s28 = scalar_lea.vmem %s942_s3, %s719_s25  ;;  %vm551_vm5 = vcmask 125952  }
  0x10   : > { %v741_v1 = vld [vmem:[%s815_s17 + $0x78] sm:$0xff]  ;;  %385 = vmatpush.bf16.msra.mxu0 %v733_v0  ;;  %v740_v3 = vld [vmem:[%s815_s17 + $0x70] sm:$0xff]  ;;  %744 = vmatpush.bf16.msra.mxu3 %v733_v0  ;;  %v742_v6 = vld [vmem:[%s815_s17 + $0x80] sm:$0xff] }
  0x11   : > { %404 = vmatpush.bf16.msra.mxu1 %v741_v1  ;;  %429 = vmatpush.bf16.msra.mxu2 %v743_v4  ;;  %v731_v9 = vld [vmem:[%s815_s17 + $0x28] sm:$0xff]  ;;  %v730_v13 = vld [vmem:[%s815_s17 + $0x20] sm:$0xff]  ;;  %v729_v16 = vld [vmem:[%s815_s17 + $0x18] sm:$0xff] }
  0x12   : > { %v739_v10 = vld [vmem:[%s815_s17 + $0x68] sm:$0xff]  ;;  %v738_v14 = vld [vmem:[%s815_s17 + $0x60] sm:$0xff]  ;;  %v737_v17 = vld [vmem:[%s815_s17 + $0x58] sm:$0xff] }
  0x13   : > { %v728_v19 = vld [vmem:[%s815_s17 + $0x10] sm:$0xff]  ;;  %v727_v23 = vld [vmem:[%s815_s17 + $0x8] sm:$0xff]  ;;  %v726_v30 = vld [vmem:[%s815_s17] sm:$0xff] }
  0x14   : > { %386 = vmatpush.bf16.msra.mxu0 %v732_v2  ;;  %745 = vmatpush.bf16.msra.mxu3 %v732_v2  ;;  %v736_v20 = vld [vmem:[%s815_s17 + $0x50] sm:$0xff]  ;;  %v735_v24 = vld [vmem:[%s815_s17 + $0x48] sm:$0xff]  ;;  %v734_v31 = vld [vmem:[%s815_s17 + $0x40] sm:$0xff] }
  0x15   : > { %405 = vmatpush.bf16.msra.mxu1 %v740_v3  ;;  %430 = vmatpush.bf16.msra.mxu2 %v742_v6  ;;  %v623_v32 = vld [vmem:[%s940_s1 + $0xc] sm:$0xf0]  ;;  %v633_v33 = vld [vmem:[%s940_s1 + $0x18] sm:$0xf]  ;;  %v724_v34 = vld [vmem:[%s940_s1 + $0x20] sm:$0xf0] }
  0x16   : > { %227 = vperm.xlu0 %762, %v217_v15   ;;  %237 = vperm.xlu1 %763, %v219_v29   ;;  %v626_v36 = vor.u32 %v720_v28, %v623_v32  ;;  %v634_v37 = vor.u32 %v724_v34, %v633_v33  ;;  %v723_v38 = vld [vmem:[%s940_s1 + $0x1c] sm:$0xf]  ;;  %v635_v39 = vld [vmem:[%s940_s1 + $0x24] sm:$0xf0] }
  0x17   : > { %v638_v40 = vor.u32 %v723_v38, %v635_v39 }
  0x18   : > { %387 = vmatpush.bf16.msra.mxu0 %v731_v9  ;;  %746 = vmatpush.bf16.msra.mxu3 %v731_v9 }
  0x19   : > { %406 = vmatpush.bf16.msra.mxu1 %v739_v10  ;;  %715 = vmatmul.msk.bf16.vlgmr.msra.gmra.mxu2 %vm378_vm0, %v630_v12 }
  0x1c   : > { %388 = vmatpush.bf16.msra.mxu0 %v730_v13  ;;  %747 = vmatpush.bf16.msra.mxu3 %v730_v13 }
  0x1d   : > { %407 = vmatpush.bf16.msra.mxu1 %v738_v14 }
  0x20   : > { %389 = vmatpush.bf16.msra.mxu0 %v729_v16  ;;  %748 = vmatpush.bf16.msra.mxu3 %v729_v16 }
  0x21   : > { %408 = vmatpush.bf16.msra.mxu1 %v737_v17 }
  0x24   : > { %390 = vmatpush.bf16.msra.mxu0 %v728_v19  ;;  %749 = vmatpush.bf16.msra.mxu3 %v728_v19 }
  0x25   : > { %409 = vmatpush.bf16.msra.mxu1 %v736_v20 }
  0x28   : > { %391 = vmatpush.bf16.msra.mxu0 %v727_v23  ;;  %750 = vmatpush.bf16.msra.mxu3 %v727_v23 }
  0x29   : > { %410 = vmatpush.bf16.msra.mxu1 %v735_v24  ;;  %716 = vmatmul.msk.bf16.gmra.mxu2 %vm378_vm0, %v642_v25 }
  0x2c   : > { %392 = vmatpush.bf16.msra.mxu0 %v726_v30  ;;  %751 = vmatpush.bf16.msra.mxu3 %v726_v30 }
  0x2d   : > { %411 = vmatpush.bf16.msra.mxu1 %v734_v31 }
  0x2f   : > { %393 = vmatmul.bf16.vlgmr.msra.gmra.mxu0 %v622_v35  ;;  %398 = vmatmul.bf16.vlgmr.msra.gmra.mxu3 %v634_v37 }
  0x30   : > { %412 = vmatmul.bf16.vlgmr.msra.gmra.mxu1 %v626_v36 }
  0x40   : > { %417 = vmatmul.bf16.gmra.mxu1 %v638_v40 }
  0x7f   : > { %v223_v41 = vpop.permute.xlu0 %222  ;;  %v233_v51 = vpop.permute.xlu1 %232 }
  0x88   : > { %v228_v48 = vpop.permute.xlu0 %227  ;;  %v238_v63 = vpop.permute.xlu1 %237 }
  0x9c   : > { %v432_v42 = vpop.f32.mrf.mxu2 }
  0xa4   : > { %v434_v49 = vpop.f32.mrf.mxu2 }
  0xac   : > { %v394_v43 = vpop.f32.mrf.mxu0  ;;  %v437_v59 = vpop.f32.mrf.mxu2 }
  0xad   : > { %v413_v44 = vpop.f32.mrf.mxu1  ;;  %v395_v45 = vadd.f32 %v394_v43, %v223_v41 }
  0xaf   : > { %v414_v46 = vadd.f32 %v413_v44, %v395_v45 }
  0xb1   : > { %v885_v47 = vadd.f32 %v432_v42, %v414_v46 }
  0xb2   : > { %v399_v52 = vpop.f32.mrf.mxu3 }
  0xb3   : > { %v443_v50 = vsel %vm442_vm1, %v885_v47, 0.0  ;;  %v400_v58 = vadd.f32 %v399_v52, %v233_v51  ;;  %v455_v2 = vmul.f32 %v885_v47, %v885_v47 }
  0xb4   : > { %v396_v53 = vpop.f32.mrf.mxu0  ;;  %444 = vadd.xlane.f32.xlu2 %v443_v50  ;;  %v439_v7 = vpop.f32.mrf.mxu2 }
  0xb5   : > { %v415_v54 = vpop.f32.mrf.mxu1  ;;  %v397_v55 = vadd.f32 %v396_v53, %v228_v48  ;;  %v459_v5 = vsel %vm442_vm1, %v455_v2, 0.0 }
  0xb7   : > { %v416_v56 = vadd.f32 %v415_v54, %v397_v55 }
  0xb9   : > { %v889_v57 = vadd.f32 %v434_v49, %v416_v56 }
  0xba   : > { %v401_v0 = vpop.f32.mrf.mxu3 }
  0xbb   : > { %v446_v60 = vsel %vm442_vm1, %v889_v57, 0.0  ;;  %v402_v3 = vadd.f32 %v401_v0, %v238_v63  ;;  %v456_v10 = vmul.f32 %v889_v57, %v889_v57 }
  0xbc   : > { %447 = vadd.xlane.f32.xlu2 %v446_v60 }
  0xbd   : > { %v418_v61 = vpop.f32.mrf.mxu1  ;;  %v462_v12 = vsel %vm442_vm1, %v456_v10, 0.0 }
  0xbe   : > { %v419_v62 = vadd.f32 %v418_v61, %v400_v58 }
  0xc0   : > { %v893_v1 = vadd.f32 %v437_v59, %v419_v62 }
  0xc2   : > { %v449_v4 = vsel %vm442_vm1, %v893_v1, 0.0  ;;  %v457_v13 = vmul.f32 %v893_v1, %v893_v1 }
  0xc3   : > { %450 = vadd.xlane.f32.xlu0 %v449_v4 }
  0xc4   : > { %460 = vadd.xlane.f32.xlu2 %v459_v5  ;;  %v465_v14 = vsel %vm442_vm1, %v457_v13, 0.0 }
  0xc5   : > { %v420_v6 = vpop.f32.mrf.mxu1 }
  0xc6   : > { %v421_v8 = vadd.f32 %v420_v6, %v402_v3 }
  0xc8   : > { %v900_v9 = vadd.f32 %v439_v7, %v421_v8 }
  0xca   : > { %v452_v11 = vsel %vm442_vm1, %v900_v9, 0.0  ;;  %v458_v15 = vmul.f32 %v900_v9, %v900_v9 }
  0xcb   : > { %453 = vadd.xlane.f32.xlu1 %v452_v11 }
  0xcc   : > { %463 = vadd.xlane.f32.xlu2 %v462_v12  ;;  %v468_v16 = vsel %vm442_vm1, %v458_v15, 0.0 }
  0xd4   : > { %466 = vadd.xlane.f32.xlu2 %v465_v14 }
  0xdc   : > { %469 = vadd.xlane.f32.xlu2 %v468_v16 }
 0x127   : > { %v445_v17 = vpop.xlane.xlu2 %444 }
 0x128   : > { %v471_v19 = vmul.f32 0.0625, %v445_v17 }
 0x12a   : > { %v479_v21 = vmul.f32 %v471_v19, %v471_v19  ;;  %v491_v52 = vsub.f32 %v885_v47, %v471_v19 }
 0x12f   : > { %v448_v18 = vpop.xlane.xlu2 %447 }
 0x130   : > { %v472_v25 = vmul.f32 0.0625, %v448_v18 }
 0x132   : > { %v480_v28 = vmul.f32 %v472_v25, %v472_v25  ;;  %v492_v6 = vsub.f32 %v889_v57, %v472_v25 }
 0x136   : > { %v451_v29 = vpop.xlane.xlu0 %450 }
 0x137   : > { %v461_v20 = vpop.xlane.xlu2 %460  ;;  %v913_v32 = vmul.f32 0.0625, %v451_v29 }
 0x138   : > { %v475_v22 = vmul.f32 0.0625, %v461_v20 }
 0x139   : > { %v481_v35 = vmul.f32 %v913_v32, %v913_v32  ;;  %v493_v17 = vsub.f32 %v893_v1, %v913_v32 }
 0x13a   : > { %v483_v23 = vsub.f32 %v475_v22, %v479_v21 }
 0x13c   : > { %v487_v24 = vmax.f32 %v483_v23, 0.0 }
 0x13e   : > { %v495_v26 = vadd.f32 1e-05, %v487_v24  ;;  %v454_v43 = vpop.xlane.xlu1 %453 }
 0x13f   : > { %v464_v27 = vpop.xlane.xlu2 %463  ;;  %v474_v50 = vmul.f32 0.0625, %v454_v43 }
 0x140   : > { %764 = vrsqrt.f32 %v495_v26  ;;  %v476_v30 = vmul.f32 0.0625, %v464_v27  ;;  %vm505_vm3 = vweird.f32 %v495_v26 }
 0x141   : > { %v482_v55 = vmul.f32 %v474_v50, %v474_v50 }
 0x142   : > { %v484_v31 = vsub.f32 %v476_v30, %v480_v28 }
 0x144   : > { %v488_v33 = vmax.f32 %v484_v31, 0.0 }
 0x146   : > { %v765_v34 = vpop.eup %764  ;;  %v496_v37 = vadd.f32 1e-05, %v488_v33 }
 0x147   : > { %v500_v36 = vmul.f32 %v765_v34, %v495_v26  ;;  %v467_v38 = vpop.xlane.xlu2 %466  ;;  %vm506_vm2 = vweird.f32 %v765_v34  ;;  %v494_v26 = vsub.f32 %v900_v9, %v474_v50 }
 0x148   : > { %v477_v39 = vmul.f32 0.0625, %v467_v38  ;;  %766 = vrsqrt.f32 %v496_v37  ;;  %vm507_vm4 = vmor %vm505_vm3, %vm506_vm2  ;;  %vm515_vm7 = vweird.f32 %v496_v37 }
 0x149   : > { %v501_v40 = vmul.f32 %v765_v34, %v500_v36 }
 0x14a   : > { %v485_v41 = vsub.f32 %v477_v39, %v481_v35 }
 0x14b   : > { %v502_v42 = vmul.f32 0.5, %v501_v40 }
 0x14c   : > { %v489_v44 = vmax.f32 %v485_v41, 0.0 }
 0x14d   : > { %v503_v45 = vsub.f32 1.5, %v502_v42 }
 0x14e   : > { %v497_v46 = vadd.f32 1e-05, %v489_v44  ;;  %v767_v48 = vpop.eup %766 }
 0x14f   : > { %v504_v49 = vmul.f32 %v765_v34, %v503_v45  ;;  %v470_v51 = vpop.xlane.xlu2 %469  ;;  %v510_v53 = vmul.f32 %v767_v48, %v496_v37  ;;  %vm516_vm6 = vweird.f32 %v767_v48 }
 0x150   : > { %768 = vrsqrt.f32 %v497_v46  ;;  %v478_v56 = vmul.f32 0.0625, %v470_v51  ;;  %vm517_vm8 = vmor %vm515_vm7, %vm516_vm6  ;;  %vm525_vm10 = vweird.f32 %v497_v46 }
 0x151   : > { %v508_v54 = vsel %vm507_vm4, %v765_v34, %v504_v49  ;;  %v511_v59 = vmul.f32 %v767_v48, %v510_v53 }
 0x152   : > { %v539_v58 = vmul.f32 %v508_v54, %v491_v52  ;;  %v486_v60 = vsub.f32 %v478_v56, %v482_v55 }
 0x153   : > { %v512_v62 = vmul.f32 0.5, %v511_v59 }
 0x154   : > { %v543_v61 = vmax.f32 %v539_v58, 0.0  ;;  %v490_v47 = vmax.f32 %v486_v60, 0.0 }
 0x155   : > { %v513_v2 = vsub.f32 1.5, %v512_v62 }
 0x156   : > { %v769_v63 = vpop.eup %768  ;;  %v547_v0 = vpack.c.bf16 %v543_v61, %v543_v61  ;;  %v498_v4 = vadd.f32 1e-05, %v490_v47 }
 0x157   : > { %v520_v3 = vmul.f32 %v769_v63, %v497_v46  ;;  %v514_v5 = vmul.f32 %v767_v48, %v513_v2  ;;  %vm526_vm9 = vweird.f32 %v769_v63 }
 0x158   : > { %552 = vst.msk [vmem:[%s922_s28] sm:$0xf] %vm551_vm5, %v547_v0  ;;  %770 = vrsqrt.f32 %v498_v4  ;;  %vm527_vm11 = vmor %vm525_vm10, %vm526_vm9  ;;  %vm535_vm13 = vweird.f32 %v498_v4 }
 0x159   : > { %v521_v7 = vmul.f32 %v769_v63, %v520_v3  ;;  %v518_v8 = vsel %vm517_vm8, %v767_v48, %v514_v5 }
 0x15a   : > { %v540_v10 = vmul.f32 %v518_v8, %v492_v6 }
 0x15b   : > { %v522_v11 = vmul.f32 0.5, %v521_v7 }
 0x15c   : > { %v544_v12 = vmax.f32 %v540_v10, 0.0 }
 0x15d   : > { %v523_v13 = vsub.f32 1.5, %v522_v11 }
 0x15e   : > { %v771_v14 = vpop.eup %770  ;;  %v548_v15 = vpack.c.bf16 %v544_v12, %v544_v12 }
 0x15f   : > { %v524_v16 = vmul.f32 %v769_v63, %v523_v13  ;;  %v530_v57 = vmul.f32 %v771_v14, %v498_v4  ;;  %vm536_vm12 = vweird.f32 %v771_v14 }
 0x160   : > { %553 = vst.msk [vmem:[%s922_s28 + $0x4] sm:$0xf] %vm551_vm5, %v548_v15  ;;  %vm537_vm14 = vmor %vm535_vm13, %vm536_vm12 }
 0x161   : > { %v528_v18 = vsel %vm527_vm11, %v769_v63, %v524_v16  ;;  %v531_v20 = vmul.f32 %v771_v14, %v530_v57 }
 0x162   : > { %v541_v19 = vmul.f32 %v528_v18, %v493_v17 }
 0x163   : > { %v532_v22 = vmul.f32 0.5, %v531_v20 }
 0x164   : > { %v545_v21 = vmax.f32 %v541_v19, 0.0 }
 0x165   : > { %v533_v24 = vsub.f32 1.5, %v532_v22 }
 0x166   : > { %v549_v23 = vpack.c.bf16 %v545_v21, %v545_v21 }
 0x167   : > { %v534_v25 = vmul.f32 %v771_v14, %v533_v24 }
 0x168   : > { %554 = vst.msk [vmem:[%s922_s28 + $0x8] sm:$0xf] %vm551_vm5, %v549_v23 }
 0x169   : > { %v538_v1 = vsel %vm537_vm14, %v771_v14, %v534_v25 }
 0x16a   : > { %v542_v27 = vmul.f32 %v538_v1, %v494_v26 }
 0x16c   : > { %v546_v28 = vmax.f32 %v542_v27, 0.0 }
 0x16e   : > { %v550_v29 = vpack.c.bf16 %v546_v28, %v546_v28 }
 0x170   : > { %555 = vst.msk [vmem:[%s922_s28 + $0xc] sm:$0xf] %vm551_vm5, %v550_v29 }
 0x171 PF: > { %s13_s12 = sadd.s32 1, %s778_s12  }
 0x172   : > { %p10_p4 = scmp.ge.s32.totalorder %s13_s12, 4  }
 0x174   :  { %12 = sbr.rel (!%p10_p4) target bundleno = 1 (0x1), region = 62 }

// kernel: resnet_generator_forward.17
= control target key start
LH: loop header
LB: loop body
LE: loop exit
PB: predicated region body
PF: predicated region fallthrough
CT: control target
= control target key end

     0   :  { %s707_s12 = smov 0   ;;  %s846_s0 = inlined_call_operand.vmem [shape: bf16[2,128,16], index: 0, kind: input, shape index: {}]   ;;  %s847_s1 = inlined_call_operand.vmem [shape: bf16[64,128], index: 1, kind: input, shape index: {}]   ;;  %s848_s2 = inlined_call_operand.vmem [shape: f32[64,1], index: 2, kind: input, shape index: {}]   ;;  %s849_s3 = inlined_call_operand.vmem [shape: bf16[2,64,16], index: 3, kind: output, shape index: {}]  }
   0x1 LB: > { %s565_s13 = sadd.s32 4294967295, %s684_s12   ;;  %p569_p0 = scmp.ge.s32.totalorder %s684_s12, 1  ;;  %s684_s12 = sphi %s707_s12, %s13_s12  }
   0x2   : > { %p137_p1 = scmp.lt.s32.totalorder %s684_s12, 3 }
   0x4   : > { %p138_p2 = pnand %p569_p0, %p137_p1 }
   0x5   : > { %p161_p3 = scmp.lt.s32.totalorder (!%p138_p2), %s565_s13, 1 }
   0x6   : > { %141 = sbr.rel (%p138_p2) target bundleno = 486 (0x1e6), region = 32 }
   0xb   : > { %v195_v0 = vld [vmem:[%s848_s2] sm:$0xff]  ;;  %s851_s13 = smov (!%p161_p3, %s565_s13), 1  ;;  %v686_v1 = vmov 0   ;;  %v197_v4 = vld [vmem:[%s848_s2 + $0x10] sm:$0xff]  ;;  %v196_v5 = vld [vmem:[%s848_s2 + $0x8] sm:$0xff]  ;;  %vm344_vm0 = vcmask 130048  }
   0xc   : > { %671 = vset.pattern.permute.xlu0 %v686_v1  ;;  %672 = vset.pattern.permute.xlu1 %v686_v1  ;;  %s624_s16 = sshll.u32 %s851_s13, 6  ;;  %v199_v6 = vld [vmem:[%s848_s2 + $0x20] sm:$0xff]  ;;  %v198_v8 = vld [vmem:[%s848_s2 + $0x18] sm:$0xff]  ;;  %v201_v10 = vld [vmem:[%s848_s2 + $0x30] sm:$0xff]  ;;  %s625_s17 = sshll.u32 %s851_s13, 5  ;;  %vm501_vm7 = vcmask 125952  }
   0xd   : > { %205 = vperm.xlu0 %671, %v195_v0   ;;  %673 = vset.pattern.permute.xlu2 %v686_v1  ;;  %s724_s19 = scalar_lea.vmem %s846_s0, %s624_s16  ;;  %v200_v11 = vld [vmem:[%s848_s2 + $0x28] sm:$0xff]  ;;  %v202_v13 = vld [vmem:[%s848_s2 + $0x38] sm:$0xff]  ;;  %v626_v17 = vld [vmem:[%s847_s1] sm:$0xff]  ;;  %s170_s20 = scalar_lea.vmem %s849_s3, %s625_s17 }
   0xe   : > { %v637_v2 = vld [vmem:[%s724_s19 + $0x38] sm:$0xff]  ;;  %v636_v3 = vld [vmem:[%s724_s19 + $0x30] sm:$0xff]  ;;  %215 = vperm.xlu1 %672, %v197_v4   ;;  %v635_v7 = vld [vmem:[%s724_s19 + $0x28] sm:$0xff]  ;;  %225 = vperm.xlu2 %673, %v199_v6  }
   0xf   : > { %315 = vmatpush.bf16.msra.mxu0 %v637_v2  ;;  %638 = vmatpush.bf16.msra.mxu1 %v637_v2  ;;  %v634_v9 = vld [vmem:[%s724_s19 + $0x20] sm:$0xff]  ;;  %v633_v12 = vld [vmem:[%s724_s19 + $0x18] sm:$0xff]  ;;  %v632_v14 = vld [vmem:[%s724_s19 + $0x10] sm:$0xff] }
  0x10   : > { %639 = vmatpush.bf16.msra.mxu2 %v637_v2  ;;  %640 = vmatpush.bf16.msra.mxu3 %v637_v2  ;;  %v631_v15 = vld [vmem:[%s724_s19 + $0x8] sm:$0xff]  ;;  %v630_v16 = vld [vmem:[%s724_s19] sm:$0xff]  ;;  %v628_v19 = vld [vmem:[%s847_s1 + $0x10] sm:$0xff] }
  0x11   : > { %v627_v18 = vld [vmem:[%s847_s1 + $0x8] sm:$0xff]  ;;  %v629_v20 = vld [vmem:[%s847_s1 + $0x18] sm:$0xff] }
  0x13   : > { %316 = vmatpush.bf16.msra.mxu0 %v636_v3  ;;  %641 = vmatpush.bf16.msra.mxu1 %v636_v3 }
  0x14   : > { %642 = vmatpush.bf16.msra.mxu2 %v636_v3  ;;  %643 = vmatpush.bf16.msra.mxu3 %v636_v3 }
  0x15   : > { %210 = vperm.xlu0 %671, %v196_v5  }
  0x16   : > { %220 = vperm.xlu1 %672, %v198_v8   ;;  %230 = vperm.xlu2 %673, %v200_v11  }
  0x17   : > { %317 = vmatpush.bf16.msra.mxu0 %v635_v7  ;;  %644 = vmatpush.bf16.msra.mxu1 %v635_v7 }
  0x18   : > { %645 = vmatpush.bf16.msra.mxu2 %v635_v7  ;;  %646 = vmatpush.bf16.msra.mxu3 %v635_v7 }
  0x1b   : > { %318 = vmatpush.bf16.msra.mxu0 %v634_v9  ;;  %647 = vmatpush.bf16.msra.mxu1 %v634_v9 }
  0x1c   : > { %648 = vmatpush.bf16.msra.mxu2 %v634_v9  ;;  %649 = vmatpush.bf16.msra.mxu3 %v634_v9 }
  0x1d   : > { %235 = vperm.xlu0 %671, %v201_v10  }
  0x1e   : > { %240 = vperm.xlu1 %672, %v202_v13  }
  0x1f   : > { %319 = vmatpush.bf16.msra.mxu0 %v633_v12  ;;  %650 = vmatpush.bf16.msra.mxu1 %v633_v12 }
  0x20   : > { %651 = vmatpush.bf16.msra.mxu2 %v633_v12  ;;  %652 = vmatpush.bf16.msra.mxu3 %v633_v12 }
  0x23   : > { %320 = vmatpush.bf16.msra.mxu0 %v632_v14  ;;  %653 = vmatpush.bf16.msra.mxu1 %v632_v14 }
  0x24   : > { %654 = vmatpush.bf16.msra.mxu2 %v632_v14  ;;  %655 = vmatpush.bf16.msra.mxu3 %v632_v14 }
  0x27   : > { %321 = vmatpush.bf16.msra.mxu0 %v631_v15  ;;  %656 = vmatpush.bf16.msra.mxu1 %v631_v15 }
  0x28   : > { %657 = vmatpush.bf16.msra.mxu2 %v631_v15  ;;  %658 = vmatpush.bf16.msra.mxu3 %v631_v15 }
  0x2b   : > { %322 = vmatpush.bf16.msra.mxu0 %v630_v16  ;;  %659 = vmatpush.bf16.msra.mxu1 %v630_v16 }
  0x2c   : > { %660 = vmatpush.bf16.msra.mxu2 %v630_v16  ;;  %661 = vmatpush.bf16.msra.mxu3 %v630_v16 }
  0x2e   : > { %323 = vmatmul.bf16.vlgmr.msra.gmra.mxu0 %v626_v17  ;;  %328 = vmatmul.bf16.vlgmr.msra.gmra.mxu1 %v627_v18 }
  0x2f   : > { %333 = vmatmul.bf16.vlgmr.msra.gmra.mxu2 %v628_v19  ;;  %338 = vmatmul.bf16.vlgmr.msra.gmra.mxu3 %v629_v20 }
  0x68   : > { %v226_v32 = vpop.permute.xlu2 %225 }
  0x70   : > { %v231_v47 = vpop.permute.xlu2 %230 }
  0x7f   : > { %v206_v21 = vpop.permute.xlu0 %205 }
  0x80   : > { %v216_v22 = vpop.permute.xlu1 %215 }
  0x87   : > { %v211_v30 = vpop.permute.xlu0 %210 }
  0x88   : > { %v221_v42 = vpop.permute.xlu1 %220 }
  0x8f   : > { %v236_v43 = vpop.permute.xlu0 %235 }
  0x90   : > { %v241_v56 = vpop.permute.xlu1 %240 }
  0xab   : > { %v324_v23 = vpop.f32.mrf.mxu0  ;;  %v329_v24 = vpop.f32.mrf.mxu1 }
  0xac   : > { %v767_v25 = vadd.f32 %v324_v23, %v206_v21  ;;  %v769_v26 = vadd.f32 %v329_v24, %v216_v22 }
  0xae   : > { %v351_v27 = vsel %vm344_vm0, %v769_v26, 0.0  ;;  %v345_v28 = vsel %vm344_vm0, %v767_v25, 0.0  ;;  %v371_v29 = vmul.f32 %v769_v26, %v769_v26  ;;  %v369_v34 = vmul.f32 %v767_v25, %v767_v25 }
  0xaf   : > { %352 = vadd.xlane.f32.xlu1 %v351_v27  ;;  %346 = vadd.xlane.f32.xlu2 %v345_v28 }
  0xb0   : > { %v383_v31 = vsel %vm344_vm0, %v371_v29, 0.0  ;;  %v377_v39 = vsel %vm344_vm0, %v369_v34, 0.0 }
  0xb1   : > { %384 = vadd.xlane.f32.xlu0 %v383_v31 }
  0xb2   : > { %v334_v33 = vpop.f32.mrf.mxu2  ;;  %v339_v40 = vpop.f32.mrf.mxu3 }
  0xb3   : > { %v780_v35 = vadd.f32 %v334_v33, %v226_v32  ;;  %v326_v36 = vpop.f32.mrf.mxu0  ;;  %v789_v44 = vadd.f32 %v339_v40, %v236_v43  ;;  %v331_v48 = vpop.f32.mrf.mxu1 }
  0xb4   : > { %v782_v37 = vadd.f32 %v326_v36, %v211_v30  ;;  %v795_v50 = vadd.f32 %v331_v48, %v221_v42 }
  0xb5   : > { %v357_v38 = vsel %vm344_vm0, %v780_v35, 0.0  ;;  %v373_v46 = vmul.f32 %v780_v35, %v780_v35  ;;  %v363_v52 = vsel %vm344_vm0, %v789_v44, 0.0  ;;  %v375_v63 = vmul.f32 %v789_v44, %v789_v44 }
  0xb6   : > { %v348_v41 = vsel %vm344_vm0, %v782_v37, 0.0  ;;  %v372_v55 = vmul.f32 %v795_v50, %v795_v50  ;;  %v354_v59 = vsel %vm344_vm0, %v795_v50, 0.0  ;;  %v370_v62 = vmul.f32 %v782_v37, %v782_v37 }
  0xb7   : > { %378 = vadd.xlane.f32.xlu1 %v377_v39  ;;  %358 = vadd.xlane.f32.xlu2 %v357_v38  ;;  %v389_v51 = vsel %vm344_vm0, %v373_v46, 0.0  ;;  %v395_v2 = vsel %vm344_vm0, %v375_v63, 0.0 }
  0xb8   : > { %v386_v58 = vsel %vm344_vm0, %v372_v55, 0.0  ;;  %v380_v1 = vsel %vm344_vm0, %v370_v62, 0.0 }
  0xb9   : > { %349 = vadd.xlane.f32.xlu0 %v348_v41 }
  0xba   : > { %v336_v45 = vpop.f32.mrf.mxu2  ;;  %v341_v54 = vpop.f32.mrf.mxu3 }
  0xbb   : > { %v793_v49 = vadd.f32 %v336_v45, %v231_v47  ;;  %v804_v57 = vadd.f32 %v341_v54, %v241_v56 }
  0xbd   : > { %v360_v53 = vsel %vm344_vm0, %v793_v49, 0.0  ;;  %v366_v60 = vsel %vm344_vm0, %v804_v57, 0.0  ;;  %v376_v61 = vmul.f32 %v804_v57, %v804_v57  ;;  %v374_v3 = vmul.f32 %v793_v49, %v793_v49 }
  0xbf   : > { %390 = vadd.xlane.f32.xlu1 %v389_v51  ;;  %364 = vadd.xlane.f32.xlu2 %v363_v52  ;;  %v398_v0 = vsel %vm344_vm0, %v376_v61, 0.0  ;;  %v392_v4 = vsel %vm344_vm0, %v374_v3, 0.0 }
  0xc1   : > { %361 = vadd.xlane.f32.xlu0 %v360_v53 }
  0xc7   : > { %387 = vadd.xlane.f32.xlu1 %v386_v58  ;;  %355 = vadd.xlane.f32.xlu2 %v354_v59 }
  0xc9   : > { %367 = vadd.xlane.f32.xlu0 %v366_v60 }
  0xcf   : > { %399 = vadd.xlane.f32.xlu1 %v398_v0  ;;  %381 = vadd.xlane.f32.xlu2 %v380_v1 }
  0xd1   : > { %396 = vadd.xlane.f32.xlu0 %v395_v2 }
  0xd7   : > { %393 = vadd.xlane.f32.xlu2 %v392_v4 }
 0x122   : > { %v347_v5 = vpop.xlane.xlu2 %346  ;;  %v353_v6 = vpop.xlane.xlu1 %352 }
 0x123   : > { %v403_v11 = vadd.f32 %v353_v6, %v347_v5 }
 0x124   : > { %v385_v7 = vpop.xlane.xlu0 %384 }
 0x12a   : > { %v359_v8 = vpop.xlane.xlu2 %358  ;;  %v379_v10 = vpop.xlane.xlu1 %378 }
 0x12b   : > { %v405_v12 = vadd.f32 %v403_v11, %v359_v8  ;;  %v411_v23 = vadd.f32 %v385_v7, %v379_v10 }
 0x12c   : > { %v350_v9 = vpop.xlane.xlu0 %349 }
 0x132   : > { %v365_v13 = vpop.xlane.xlu2 %364  ;;  %v391_v17 = vpop.xlane.xlu1 %390 }
 0x133   : > { %v407_v14 = vadd.f32 %v405_v12, %v365_v13  ;;  %v413_v29 = vadd.f32 %v411_v23, %v391_v17 }
 0x134   : > { %v362_v15 = vpop.xlane.xlu0 %361 }
 0x135   : > { %v417_v16 = vmul.f32 0.015625, %v407_v14 }
 0x137   : > { %429 = vperm.xlu2 %673, %v417_v16   ;;  %v421_v32 = vmul.f32 %v417_v16, %v417_v16 }
 0x13a   : > { %v356_v18 = vpop.xlane.xlu2 %355  ;;  %v388_v27 = vpop.xlane.xlu1 %387 }
 0x13b   : > { %v404_v19 = vadd.f32 %v356_v18, %v350_v9 }
 0x13c   : > { %v368_v20 = vpop.xlane.xlu0 %367 }
 0x13d   : > { %v406_v21 = vadd.f32 %v404_v19, %v362_v15 }
 0x13f   : > { %v408_v22 = vadd.f32 %v406_v21, %v368_v20 }
 0x141   : > { %v418_v24 = vmul.f32 0.015625, %v408_v22 }
 0x142   : > { %v382_v28 = vpop.xlane.xlu2 %381  ;;  %v400_v41 = vpop.xlane.xlu1 %399 }
 0x143   : > { %434 = vperm.xlu0 %671, %v418_v24   ;;  %v412_v34 = vadd.f32 %v388_v27, %v382_v28  ;;  %v422_v45 = vmul.f32 %v418_v24, %v418_v24 }
 0x144   : > { %v397_v30 = vpop.xlane.xlu0 %396 }
 0x145   : > { %v415_v31 = vadd.f32 %v413_v29, %v397_v30 }
 0x147   : > { %v419_v33 = vmul.f32 0.015625, %v415_v31 }
 0x149   : > { %v423_v36 = vsub.f32 %v419_v33, %v421_v32 }
 0x14a   : > { %v394_v38 = vpop.xlane.xlu2 %393 }
 0x14b   : > { %v425_v39 = vmax.f32 %v423_v36, 0.0  ;;  %v414_v40 = vadd.f32 %v412_v34, %v394_v38 }
 0x14d   : > { %v445_v42 = vadd.f32 1e-05, %v425_v39  ;;  %v416_v43 = vadd.f32 %v414_v40, %v400_v41 }
 0x14f   : > { %674 = vrsqrt.f32 %v445_v42  ;;  %v420_v46 = vmul.f32 0.015625, %v416_v43  ;;  %vm453_vm2 = vweird.f32 %v445_v42 }
 0x151   : > { %v424_v47 = vsub.f32 %v420_v46, %v422_v45 }
 0x153   : > { %v426_v48 = vmax.f32 %v424_v47, 0.0 }
 0x155   : > { %v675_v51 = vpop.eup %674  ;;  %v446_v52 = vadd.f32 1e-05, %v426_v48 }
 0x156   : > { %v448_v53 = vmul.f32 %v675_v51, %v445_v42  ;;  %vm454_vm1 = vweird.f32 %v675_v51 }
 0x157   : > { %676 = vrsqrt.f32 %v446_v52  ;;  %vm455_vm3 = vmor %vm453_vm2, %vm454_vm1  ;;  %vm463_vm5 = vweird.f32 %v446_v52 }
 0x158   : > { %v449_v54 = vmul.f32 %v675_v51, %v448_v53 }
 0x15a   : > { %v450_v55 = vmul.f32 0.5, %v449_v54 }
 0x15c   : > { %v451_v56 = vsub.f32 1.5, %v450_v55 }
 0x15d   : > { %v677_v58 = vpop.eup %676 }
 0x15e   : > { %v458_v59 = vmul.f32 %v677_v58, %v446_v52  ;;  %v452_v60 = vmul.f32 %v675_v51, %v451_v56  ;;  %vm464_vm4 = vweird.f32 %v677_v58 }
 0x15f   : > { %vm465_vm6 = vmor %vm463_vm5, %vm464_vm4 }
 0x160   : > { %v456_v61 = vsel %vm455_vm3, %v675_v51, %v452_v60  ;;  %v459_v62 = vmul.f32 %v677_v58, %v458_v59 }
 0x161   : > { %469 = vperm.xlu1 %672, %v456_v61  }
 0x162   : > { %v460_v63 = vmul.f32 0.5, %v459_v62 }
 0x164   : > { %v461_v0 = vsub.f32 1.5, %v460_v63 }
 0x166   : > { %v462_v1 = vmul.f32 %v677_v58, %v461_v0 }
 0x168   : > { %v466_v2 = vsel %vm465_vm6, %v677_v58, %v462_v1 }
 0x169   : > { %474 = vperm.xlu0 %671, %v466_v2  }
 0x191   : > { %v430_v3 = vpop.permute.xlu2 %429 }
 0x192   : > { %v437_v4 = vsub.f32 %v767_v25, %v430_v3  ;;  %v439_v5 = vsub.f32 %v769_v26, %v430_v3  ;;  %v441_v6 = vsub.f32 %v780_v35, %v430_v3  ;;  %v443_v7 = vsub.f32 %v789_v44, %v430_v3 }
 0x1b5   : > { %v435_v8 = vpop.permute.xlu0 %434 }
 0x1b6   : > { %v438_v18 = vsub.f32 %v782_v37, %v435_v8  ;;  %v440_v19 = vsub.f32 %v795_v50, %v435_v8  ;;  %v442_v20 = vsub.f32 %v793_v49, %v435_v8  ;;  %v444_v21 = vsub.f32 %v804_v57, %v435_v8 }
 0x1d3   : > { %v470_v9 = vpop.permute.xlu1 %469 }
 0x1d4   : > { %v477_v10 = vmul.f32 %v470_v9, %v437_v4  ;;  %v479_v11 = vmul.f32 %v470_v9, %v439_v5  ;;  %v481_v12 = vmul.f32 %v470_v9, %v441_v6  ;;  %v483_v13 = vmul.f32 %v470_v9, %v443_v7 }
 0x1d6   : > { %v485_v14 = vmax.f32 %v477_v10, 0.0  ;;  %v487_v15 = vmax.f32 %v479_v11, 0.0  ;;  %v489_v16 = vmax.f32 %v481_v12, 0.0  ;;  %v491_v17 = vmax.f32 %v483_v13, 0.0 }
 0x1d8   : > { %v493_v25 = vpack.c.bf16 %v485_v14, %v485_v14  ;;  %v495_v26 = vpack.c.bf16 %v487_v15, %v487_v15  ;;  %v497_v35 = vpack.c.bf16 %v489_v16, %v489_v16  ;;  %v499_v44 = vpack.c.bf16 %v491_v17, %v491_v17 }
 0x1da   : > { %502 = vst.msk [vmem:[%s170_s20] sm:$0xf] %vm501_vm7, %v493_v25 }
 0x1db   : > { %504 = vst.msk [vmem:[%s170_s20 + $0x8] sm:$0xf] %vm501_vm7, %v495_v26  ;;  %v475_v22 = vpop.permute.xlu0 %474 }
 0x1dc   : > { %506 = vst.msk [vmem:[%s170_s20 + $0x10] sm:$0xf] %vm501_vm7, %v497_v35  ;;  %v478_v23 = vmul.f32 %v475_v22, %v438_v18  ;;  %v480_v24 = vmul.f32 %v475_v22, %v440_v19  ;;  %v482_v27 = vmul.f32 %v475_v22, %v442_v20  ;;  %v484_v28 = vmul.f32 %v475_v22, %v444_v21 }
 0x1dd   : > { %508 = vst.msk [vmem:[%s170_s20 + $0x18] sm:$0xf] %vm501_vm7, %v499_v44 }
 0x1de   : > { %v486_v29 = vmax.f32 %v478_v23, 0.0  ;;  %v488_v30 = vmax.f32 %v480_v24, 0.0  ;;  %v490_v37 = vmax.f32 %v482_v27, 0.0  ;;  %v492_v31 = vmax.f32 %v484_v28, 0.0 }
 0x1e0   : > { %v494_v50 = vpack.c.bf16 %v486_v29, %v486_v29  ;;  %v496_v32 = vpack.c.bf16 %v488_v30, %v488_v30  ;;  %v498_v49 = vpack.c.bf16 %v490_v37, %v490_v37  ;;  %v500_v33 = vpack.c.bf16 %v492_v31, %v492_v31 }
 0x1e2   : > { %503 = vst.msk [vmem:[%s170_s20 + $0x4] sm:$0xf] %vm501_vm7, %v494_v50 }
 0x1e3   : > { %505 = vst.msk [vmem:[%s170_s20 + $0xc] sm:$0xf] %vm501_vm7, %v496_v32 }
 0x1e4   : > { %507 = vst.msk [vmem:[%s170_s20 + $0x14] sm:$0xf] %vm501_vm7, %v498_v49 }
 0x1e5   : > { %509 = vst.msk [vmem:[%s170_s20 + $0x1c] sm:$0xf] %vm501_vm7, %v500_v33 }
 0x1e6 PF: > { %s13_s12 = sadd.s32 1, %s684_s12  }
 0x1e7   : > { %p10_p4 = scmp.ge.s32.totalorder %s13_s12, 4  }
 0x1e9   :  { %12 = sbr.rel (!%p10_p4) target bundleno = 1 (0x1), region = 62 }

// kernel: resnet_generator_forward.14
= control target key start
LH: loop header
LB: loop body
LE: loop exit
PB: predicated region body
PF: predicated region fallthrough
CT: control target
= control target key end

     0   :  { %s885_s15 = smov 0   ;;  %s1044_s0 = inlined_call_operand.vmem [shape: bf16[2,288,16], index: 0, kind: input, shape index: {}]   ;;  %s1045_s1 = inlined_call_operand.vmem [shape: bf16[32,288], index: 1, kind: input, shape index: {}]   ;;  %s1046_s2 = inlined_call_operand.vmem [shape: f32[32,1], index: 2, kind: input, shape index: {}]   ;;  %s1047_s3 = inlined_call_operand.vmem [shape: bf16[2,32,16], index: 3, kind: input, shape index: {}]   ;;  %s1048_s4 = inlined_call_operand.vmem [shape: bf16[2,32,16], index: 4, kind: output, shape index: {}]  }
   0x1 LB: > { %s678_s16 = sadd.s32 4294967295, %s857_s15   ;;  %p682_p0 = scmp.ge.s32.totalorder %s857_s15, 1  ;;  %s857_s15 = sphi %s885_s15, %s14_s15  }
   0x2   : > { %p172_p1 = scmp.lt.s32.totalorder %s857_s15, 3 }
   0x4   : > { %p173_p2 = pnand %p682_p0, %p172_p1 }
   0x5   : > { %p203_p3 = scmp.lt.s32.totalorder (!%p173_p2), %s678_s16, 1 }
   0x6   : > { %176 = sbr.rel (%p173_p2) target bundleno = 369 (0x171), region = 36 }
   0xb   : > { %s1050_s16 = smov (!%p203_p3, %s678_s16), 1  ;;  %v859_v5 = vmov 0   ;;  %v698_v7 = vld [vmem:[%s1045_s1 + $0x8] sm:$0xf]  ;;  %v792_v8 = vld [vmem:[%s1045_s1 + $0x10] sm:$0xf0] }
   0xc   : > { %s831_s17 = smul.u32 144, %s1050_s16  ;;  %841 = vset.pattern.permute.xlu0 %v859_v5  ;;  %842 = vset.pattern.permute.xlu1 %v859_v5  ;;  %v263_v11 = vld [vmem:[%s1046_s2] sm:$0xff]  ;;  %v699_v12 = vor.u32 %v792_v8, %v698_v7  ;;  %vm425_vm0 = vcmask 261120   ;;  %v264_v15 = vld [vmem:[%s1046_s2 + $0x8] sm:$0xff]  ;;  %v265_v18 = vld [vmem:[%s1046_s2 + $0x10] sm:$0xff]  ;;  %vm489_vm1 = vcmask 130048  }
   0xd   : > { %269 = vperm.xlu0 %841, %v263_v11   ;;  %279 = vperm.xlu1 %842, %v265_v18   ;;  %v710_v21 = vld [vmem:[%s1045_s1 + $0x20] sm:$0xf]  ;;  %v795_v22 = vld [vmem:[%s1045_s1 + $0x28] sm:$0xf0]  ;;  %v790_v28 = vld [vmem:[%s1045_s1 + $0x4] sm:$0xf] }
   0xe   : > { %s899_s20 = scalar_lea.vmem %s1044_s0, %s831_s17  ;;  %v711_v25 = vor.u32 %v795_v22, %v710_v21  ;;  %v690_v26 = vld [vmem:[%s1045_s1] sm:$0xf]  ;;  %v791_v27 = vld [vmem:[%s1045_s1 + $0x8] sm:$0xf0]  ;;  %v266_v29 = vld [vmem:[%s1046_s2 + $0x18] sm:$0xff]  ;;  %s788_s29 = sshll.u32 %s1050_s16, 4 }
   0xf   : > { %v803_v0 = vld [vmem:[%s899_s20 + $0x38] sm:$0xff]  ;;  %v802_v2 = vld [vmem:[%s899_s20 + $0x30] sm:$0xff]  ;;  %v813_v4 = vld [vmem:[%s899_s20 + $0x88] sm:$0xff]  ;;  %v691_v35 = vor.u32 %v791_v27, %v690_v26  ;;  %s1011_s6 = scalar_lea.vmem %s1047_s3, %s788_s29  ;;  %s1024_s9 = scalar_lea.vmem %s1048_s4, %s788_s29  ;;  %vm606_vm5 = vcmask 125952  }
  0x10   : > { %v811_v1 = vld [vmem:[%s899_s20 + $0x78] sm:$0xff]  ;;  %432 = vmatpush.bf16.msra.mxu0 %v803_v0  ;;  %v810_v3 = vld [vmem:[%s899_s20 + $0x70] sm:$0xff]  ;;  %823 = vmatpush.bf16.msra.mxu3 %v803_v0  ;;  %v812_v6 = vld [vmem:[%s899_s20 + $0x80] sm:$0xff] }
  0x11   : > { %451 = vmatpush.bf16.msra.mxu1 %v811_v1  ;;  %476 = vmatpush.bf16.msra.mxu2 %v813_v4  ;;  %v801_v9 = vld [vmem:[%s899_s20 + $0x28] sm:$0xff]  ;;  %v800_v13 = vld [vmem:[%s899_s20 + $0x20] sm:$0xff]  ;;  %v799_v16 = vld [vmem:[%s899_s20 + $0x18] sm:$0xff] }
  0x12   : > { %v809_v10 = vld [vmem:[%s899_s20 + $0x68] sm:$0xff]  ;;  %v808_v14 = vld [vmem:[%s899_s20 + $0x60] sm:$0xff]  ;;  %v807_v17 = vld [vmem:[%s899_s20 + $0x58] sm:$0xff] }
  0x13   : > { %v798_v19 = vld [vmem:[%s899_s20 + $0x10] sm:$0xff]  ;;  %v797_v23 = vld [vmem:[%s899_s20 + $0x8] sm:$0xff]  ;;  %v796_v30 = vld [vmem:[%s899_s20] sm:$0xff] }
  0x14   : > { %433 = vmatpush.bf16.msra.mxu0 %v802_v2  ;;  %824 = vmatpush.bf16.msra.mxu3 %v802_v2  ;;  %v806_v20 = vld [vmem:[%s899_s20 + $0x50] sm:$0xff]  ;;  %v805_v24 = vld [vmem:[%s899_s20 + $0x48] sm:$0xff]  ;;  %v804_v31 = vld [vmem:[%s899_s20 + $0x40] sm:$0xff] }
  0x15   : > { %452 = vmatpush.bf16.msra.mxu1 %v810_v3  ;;  %477 = vmatpush.bf16.msra.mxu2 %v812_v6  ;;  %v692_v32 = vld [vmem:[%s1045_s1 + $0xc] sm:$0xf0]  ;;  %v702_v33 = vld [vmem:[%s1045_s1 + $0x18] sm:$0xf]  ;;  %v794_v34 = vld [vmem:[%s1045_s1 + $0x20] sm:$0xf0] }
  0x16   : > { %274 = vperm.xlu0 %841, %v264_v15   ;;  %284 = vperm.xlu1 %842, %v266_v29   ;;  %v695_v36 = vor.u32 %v790_v28, %v692_v32  ;;  %v703_v37 = vor.u32 %v794_v34, %v702_v33  ;;  %v793_v38 = vld [vmem:[%s1045_s1 + $0x1c] sm:$0xf]  ;;  %v704_v39 = vld [vmem:[%s1045_s1 + $0x24] sm:$0xf0] }
  0x17   : > { %v707_v40 = vor.u32 %v793_v38, %v704_v39 }
  0x18   : > { %434 = vmatpush.bf16.msra.mxu0 %v801_v9  ;;  %825 = vmatpush.bf16.msra.mxu3 %v801_v9 }
  0x19   : > { %453 = vmatpush.bf16.msra.mxu1 %v809_v10  ;;  %784 = vmatmul.msk.bf16.vlgmr.msra.gmra.mxu2 %vm425_vm0, %v699_v12 }
  0x1c   : > { %435 = vmatpush.bf16.msra.mxu0 %v800_v13  ;;  %826 = vmatpush.bf16.msra.mxu3 %v800_v13 }
  0x1d   : > { %454 = vmatpush.bf16.msra.mxu1 %v808_v14 }
  0x20   : > { %436 = vmatpush.bf16.msra.mxu0 %v799_v16  ;;  %827 = vmatpush.bf16.msra.mxu3 %v799_v16 }
  0x21   : > { %455 = vmatpush.bf16.msra.mxu1 %v807_v17 }
  0x24   : > { %437 = vmatpush.bf16.msra.mxu0 %v798_v19  ;;  %828 = vmatpush.bf16.msra.mxu3 %v798_v19 }
  0x25   : > { %456 = vmatpush.bf16.msra.mxu1 %v806_v20 }
  0x28   : > { %438 = vmatpush.bf16.msra.mxu0 %v797_v23  ;;  %829 = vmatpush.bf16.msra.mxu3 %v797_v23 }
  0x29   : > { %457 = vmatpush.bf16.msra.mxu1 %v805_v24  ;;  %785 = vmatmul.msk.bf16.gmra.mxu2 %vm425_vm0, %v711_v25 }
  0x2c   : > { %439 = vmatpush.bf16.msra.mxu0 %v796_v30  ;;  %830 = vmatpush.bf16.msra.mxu3 %v796_v30 }
  0x2d   : > { %458 = vmatpush.bf16.msra.mxu1 %v804_v31 }
  0x2f   : > { %440 = vmatmul.bf16.vlgmr.msra.gmra.mxu0 %v691_v35  ;;  %445 = vmatmul.bf16.vlgmr.msra.gmra.mxu3 %v703_v37 }
  0x30   : > { %459 = vmatmul.bf16.vlgmr.msra.gmra.mxu1 %v695_v36 }
  0x40   : > { %464 = vmatmul.bf16.gmra.mxu1 %v707_v40 }
  0x7f   : > { %v270_v41 = vpop.permute.xlu0 %269  ;;  %v280_v51 = vpop.permute.xlu1 %279 }
  0x88   : > { %v275_v48 = vpop.permute.xlu0 %274  ;;  %v285_v63 = vpop.permute.xlu1 %284 }
  0x9c   : > { %v479_v42 = vpop.f32.mrf.mxu2 }
  0xa4   : > { %v481_v49 = vpop.f32.mrf.mxu2 }
  0xac   : > { %v441_v43 = vpop.f32.mrf.mxu0  ;;  %v484_v59 = vpop.f32.mrf.mxu2 }
  0xad   : > { %v460_v44 = vpop.f32.mrf.mxu1  ;;  %v442_v45 = vadd.f32 %v441_v43, %v270_v41 }
  0xaf   : > { %v461_v46 = vadd.f32 %v460_v44, %v442_v45  ;;  %v815_v45 = vld [vmem:[%s1011_s6] sm:$0xff]  }
  0xb1   : > { %v969_v47 = vadd.f32 %v479_v42, %v461_v46 }
  0xb2   : > { %v446_v52 = vpop.f32.mrf.mxu3 }
  0xb3   : > { %v490_v50 = vsel %vm489_vm1, %v969_v47, 0.0  ;;  %v447_v58 = vadd.f32 %v446_v52, %v280_v51  ;;  %v502_v2 = vmul.f32 %v969_v47, %v969_v47 }
  0xb4   : > { %v443_v53 = vpop.f32.mrf.mxu0  ;;  %491 = vadd.xlane.f32.xlu2 %v490_v50  ;;  %v486_v7 = vpop.f32.mrf.mxu2 }
  0xb5   : > { %v462_v54 = vpop.f32.mrf.mxu1  ;;  %v444_v55 = vadd.f32 %v443_v53, %v275_v48  ;;  %v506_v5 = vsel %vm489_vm1, %v502_v2, 0.0 }
  0xb7   : > { %v463_v56 = vadd.f32 %v462_v54, %v444_v55  ;;  %v816_v54 = vunpack.c.l.bf16 %v815_v45 }
  0xb9   : > { %v973_v57 = vadd.f32 %v481_v49, %v463_v56 }
  0xba   : > { %v448_v0 = vpop.f32.mrf.mxu3 }
  0xbb   : > { %v493_v60 = vsel %vm489_vm1, %v973_v57, 0.0  ;;  %v449_v3 = vadd.f32 %v448_v0, %v285_v63  ;;  %v503_v10 = vmul.f32 %v973_v57, %v973_v57 }
  0xbc   : > { %494 = vadd.xlane.f32.xlu2 %v493_v60 }
  0xbd   : > { %v465_v61 = vpop.f32.mrf.mxu1  ;;  %v509_v12 = vsel %vm489_vm1, %v503_v10, 0.0  ;;  %v817_v10 = vunpack.c.h.bf16 %v815_v45 }
  0xbe   : > { %v466_v62 = vadd.f32 %v465_v61, %v447_v58 }
  0xc0   : > { %v977_v1 = vadd.f32 %v484_v59, %v466_v62 }
  0xc2   : > { %v496_v4 = vsel %vm489_vm1, %v977_v1, 0.0  ;;  %v504_v13 = vmul.f32 %v977_v1, %v977_v1 }
  0xc3   : > { %497 = vadd.xlane.f32.xlu0 %v496_v4 }
  0xc4   : > { %507 = vadd.xlane.f32.xlu2 %v506_v5  ;;  %v512_v14 = vsel %vm489_vm1, %v504_v13, 0.0 }
  0xc5   : > { %v467_v6 = vpop.f32.mrf.mxu1 }
  0xc6   : > { %v468_v8 = vadd.f32 %v467_v6, %v449_v3 }
  0xc8   : > { %v984_v9 = vadd.f32 %v486_v7, %v468_v8 }
  0xca   : > { %v499_v11 = vsel %vm489_vm1, %v984_v9, 0.0  ;;  %v505_v15 = vmul.f32 %v984_v9, %v984_v9 }
  0xcb   : > { %500 = vadd.xlane.f32.xlu1 %v499_v11 }
  0xcc   : > { %510 = vadd.xlane.f32.xlu2 %v509_v12  ;;  %v515_v16 = vsel %vm489_vm1, %v505_v15, 0.0 }
  0xd4   : > { %513 = vadd.xlane.f32.xlu2 %v512_v14 }
  0xdc   : > { %516 = vadd.xlane.f32.xlu2 %v515_v16  ;;  %v822_v16 = vld [vmem:[%s1011_s6 + $0x8] sm:$0xff]  }
 0x127   : > { %v492_v17 = vpop.xlane.xlu2 %491 }
 0x128   : > { %v518_v19 = vmul.f32 0.0625, %v492_v17 }
 0x12a   : > { %v526_v21 = vmul.f32 %v518_v19, %v518_v19  ;;  %v538_v53 = vsub.f32 %v969_v47, %v518_v19 }
 0x12f   : > { %v495_v18 = vpop.xlane.xlu2 %494 }
 0x130   : > { %v997_v25 = vmul.f32 0.0625, %v495_v18 }
 0x132   : > { %v527_v28 = vmul.f32 %v997_v25, %v997_v25  ;;  %v539_v8 = vsub.f32 %v973_v57, %v997_v25 }
 0x136   : > { %v498_v29 = vpop.xlane.xlu0 %497 }
 0x137   : > { %v508_v20 = vpop.xlane.xlu2 %507  ;;  %v1001_v32 = vmul.f32 0.0625, %v498_v29 }
 0x138   : > { %v522_v22 = vmul.f32 0.0625, %v508_v20 }
 0x139   : > { %v528_v35 = vmul.f32 %v1001_v32, %v1001_v32  ;;  %v540_v57 = vsub.f32 %v977_v1, %v1001_v32 }
 0x13a   : > { %v530_v23 = vsub.f32 %v522_v22, %v526_v21  ;;  %v820_v21 = vunpack.c.l.bf16 %v822_v16 }
 0x13c   : > { %v534_v24 = vmax.f32 %v530_v23, 0.0 }
 0x13e   : > { %v542_v26 = vadd.f32 1e-05, %v534_v24  ;;  %v501_v43 = vpop.xlane.xlu1 %500 }
 0x13f   : > { %v511_v27 = vpop.xlane.xlu2 %510  ;;  %v1014_v51 = vmul.f32 0.0625, %v501_v43 }
 0x140   : > { %843 = vrsqrt.f32 %v542_v26  ;;  %v523_v30 = vmul.f32 0.0625, %v511_v27  ;;  %vm552_vm3 = vweird.f32 %v542_v26 }
 0x141   : > { %v529_v58 = vmul.f32 %v1014_v51, %v1014_v51  ;;  %v541_v1 = vsub.f32 %v984_v9, %v1014_v51 }
 0x142   : > { %v531_v31 = vsub.f32 %v523_v30, %v527_v28 }
 0x144   : > { %v535_v33 = vmax.f32 %v531_v31, 0.0  ;;  %v821_v31 = vunpack.c.h.bf16 %v822_v16 }
 0x146   : > { %v844_v34 = vpop.eup %843  ;;  %v543_v37 = vadd.f32 1e-05, %v535_v33 }
 0x147   : > { %v547_v36 = vmul.f32 %v844_v34, %v542_v26  ;;  %v514_v38 = vpop.xlane.xlu2 %513  ;;  %vm553_vm2 = vweird.f32 %v844_v34 }
 0x148   : > { %v524_v39 = vmul.f32 0.0625, %v514_v38  ;;  %845 = vrsqrt.f32 %v543_v37  ;;  %vm554_vm4 = vmor %vm552_vm3, %vm553_vm2  ;;  %vm562_vm7 = vweird.f32 %v543_v37 }
 0x149   : > { %v548_v40 = vmul.f32 %v844_v34, %v547_v36 }
 0x14a   : > { %v532_v41 = vsub.f32 %v524_v39, %v528_v35 }
 0x14b   : > { %v549_v42 = vmul.f32 0.5, %v548_v40 }
 0x14c   : > { %v536_v44 = vmax.f32 %v532_v41, 0.0 }
 0x14d   : > { %v550_v46 = vsub.f32 1.5, %v549_v42 }
 0x14e   : > { %v544_v48 = vadd.f32 1e-05, %v536_v44  ;;  %v846_v49 = vpop.eup %845 }
 0x14f   : > { %v551_v50 = vmul.f32 %v844_v34, %v550_v46  ;;  %v517_v52 = vpop.xlane.xlu2 %516  ;;  %v557_v55 = vmul.f32 %v846_v49, %v543_v37  ;;  %vm563_vm6 = vweird.f32 %v846_v49 }
 0x150   : > { %847 = vrsqrt.f32 %v544_v48  ;;  %v525_v59 = vmul.f32 0.0625, %v517_v52  ;;  %vm564_vm8 = vmor %vm562_vm7, %vm563_vm6  ;;  %vm572_vm10 = vweird.f32 %v544_v48 }
 0x151   : > { %v555_v56 = vsel %vm554_vm4, %v844_v34, %v551_v50  ;;  %v558_v61 = vmul.f32 %v846_v49, %v557_v55 }
 0x152   : > { %v586_v60 = vmul.f32 %v555_v56, %v538_v53  ;;  %v533_v62 = vsub.f32 %v525_v59, %v529_v58 }
 0x153   : > { %v559_v0 = vmul.f32 0.5, %v558_v61 }
 0x154   : > { %v598_v63 = vadd.f32 %v816_v54, %v586_v60  ;;  %v537_v47 = vmax.f32 %v533_v62, 0.0 }
 0x155   : > { %v560_v4 = vsub.f32 1.5, %v559_v0 }
 0x156   : > { %v848_v2 = vpop.eup %847  ;;  %v602_v3 = vpack.c.bf16 %v598_v63, %v598_v63  ;;  %v545_v6 = vadd.f32 1e-05, %v537_v47 }
 0x157   : > { %v567_v5 = vmul.f32 %v848_v2, %v544_v48  ;;  %v561_v7 = vmul.f32 %v846_v49, %v560_v4  ;;  %vm573_vm9 = vweird.f32 %v848_v2 }
 0x158   : > { %607 = vst.msk [vmem:[%s1024_s9] sm:$0xf] %vm606_vm5, %v602_v3  ;;  %849 = vrsqrt.f32 %v545_v6  ;;  %vm574_vm11 = vmor %vm572_vm10, %vm573_vm9  ;;  %vm582_vm13 = vweird.f32 %v545_v6 }
 0x159   : > { %v568_v11 = vmul.f32 %v848_v2, %v567_v5  ;;  %v565_v12 = vsel %vm564_vm8, %v846_v49, %v561_v7 }
 0x15a   : > { %v587_v13 = vmul.f32 %v565_v12, %v539_v8 }
 0x15b   : > { %v569_v14 = vmul.f32 0.5, %v568_v11 }
 0x15c   : > { %v599_v15 = vadd.f32 %v817_v10, %v587_v13 }
 0x15d   : > { %v570_v17 = vsub.f32 1.5, %v569_v14 }
 0x15e   : > { %v850_v18 = vpop.eup %849  ;;  %v603_v19 = vpack.c.bf16 %v599_v15, %v599_v15 }
 0x15f   : > { %v571_v20 = vmul.f32 %v848_v2, %v570_v17  ;;  %v577_v22 = vmul.f32 %v850_v18, %v545_v6  ;;  %vm583_vm12 = vweird.f32 %v850_v18 }
 0x160   : > { %608 = vst.msk [vmem:[%s1024_s9 + $0x4] sm:$0xf] %vm606_vm5, %v603_v19  ;;  %vm584_vm14 = vmor %vm582_vm13, %vm583_vm12 }
 0x161   : > { %v575_v23 = vsel %vm574_vm11, %v848_v2, %v571_v20  ;;  %v578_v25 = vmul.f32 %v850_v18, %v577_v22 }
 0x162   : > { %v588_v24 = vmul.f32 %v575_v23, %v540_v57 }
 0x163   : > { %v579_v27 = vmul.f32 0.5, %v578_v25 }
 0x164   : > { %v600_v26 = vadd.f32 %v820_v21, %v588_v24 }
 0x165   : > { %v580_v29 = vsub.f32 1.5, %v579_v27 }
 0x166   : > { %v604_v28 = vpack.c.bf16 %v600_v26, %v600_v26 }
 0x167   : > { %v581_v30 = vmul.f32 %v850_v18, %v580_v29 }
 0x168   : > { %609 = vst.msk [vmem:[%s1024_s9 + $0x8] sm:$0xf] %vm606_vm5, %v604_v28 }
 0x169   : > { %v585_v32 = vsel %vm584_vm14, %v850_v18, %v581_v30 }
 0x16a   : > { %v589_v33 = vmul.f32 %v585_v32, %v541_v1 }
 0x16c   : > { %v601_v34 = vadd.f32 %v821_v31, %v589_v33 }
 0x16e   : > { %v605_v35 = vpack.c.bf16 %v601_v34, %v601_v34 }
 0x170   : > { %610 = vst.msk [vmem:[%s1024_s9 + $0xc] sm:$0xf] %vm606_vm5, %v605_v35 }
 0x171 PF: > { %s14_s15 = sadd.s32 1, %s857_s15  }
 0x172   : > { %p11_p4 = scmp.ge.s32.totalorder %s14_s15, 4  }
 0x174   :  { %13 = sbr.rel (!%p11_p4) target bundleno = 1 (0x1), region = 69 }

// kernel: resnet_generator_forward.18
= control target key start
LH: loop header
LB: loop body
LE: loop exit
PB: predicated region body
PF: predicated region fallthrough
CT: control target
= control target key end

     0   :  { %s498_s12 = smov 0   ;;  %s559_s0 = inlined_call_operand.vmem [shape: bf16[2,64,64], index: 0, kind: input, shape index: {}]   ;;  %s560_s1 = inlined_call_operand.vmem [shape: bf16[32,64], index: 1, kind: input, shape index: {}]   ;;  %s561_s2 = inlined_call_operand.vmem [shape: f32[32,1], index: 2, kind: input, shape index: {}]   ;;  %s562_s3 = inlined_call_operand.vmem [shape: bf16[2,32,64], index: 3, kind: output, shape index: {}]  }
   0x1 LB: > { %s406_s13 = sadd.s32 4294967295, %s475_s12   ;;  %p410_p0 = scmp.ge.s32.totalorder %s475_s12, 1  ;;  %s475_s12 = sphi %s498_s12, %s13_s12  }
   0x2   : > { %p137_p1 = scmp.lt.s32.totalorder %s475_s12, 3 }
   0x4   : > { %p138_p2 = pnand %p410_p0, %p137_p1 }
   0x5   : > { %p161_p3 = scmp.lt.s32.totalorder (!%p138_p2), %s406_s13, 1 }
   0x6   : > { %141 = sbr.rel (%p138_p2) target bundleno = 468 (0x1d4), region = 32 }
   0xb   : > { %v184_v0 = vld [vmem:[%s561_s2] sm:$0xff]  ;;  %v477_v1 = vmov 0   ;;  %v186_v2 = vld [vmem:[%s561_s2 + $0x10] sm:$0xff]  ;;  %s564_s13 = smov (!%p161_p3, %s406_s13), 1  ;;  %v185_v4 = vld [vmem:[%s561_s2 + $0x8] sm:$0xff]  ;;  %vm242_vm0 = vcmask 523264  }
   0xc   : > { %464 = vset.pattern.permute.xlu0 %v477_v1  ;;  %465 = vset.pattern.permute.xlu1 %v477_v1  ;;  %s443_s18 = sshll.u32 %s564_s13, 5  ;;  %v187_v5 = vld [vmem:[%s561_s2 + $0x18] sm:$0xff]  ;;  %v445_v9 = vld [vmem:[%s560_s1] sm:$0xff]  ;;  %v446_v10 = vld [vmem:[%s560_s1 + $0x8] sm:$0xff]  ;;  %s444_s30 = sshll.u32 %s564_s13, 4  ;;  %vm346_vm4 = vcmask 519168  }
   0xd   : > { %190 = vperm.xlu0 %464, %v184_v0   ;;  %200 = vperm.xlu1 %465, %v186_v2   ;;  %s165_s21 = scalar_lea.vmem %s559_s0, %s443_s18  ;;  %s170_s6 = scalar_lea.vmem %s562_s3, %s444_s30 }
   0xe   : > { %466 = vset.pattern.permute.xlu2 %v477_v1  ;;  %v450_v3 = vld [vmem:[%s165_s21 + $0x18] sm:$0xff]  ;;  %v449_v6 = vld [vmem:[%s165_s21 + $0x10] sm:$0xff]  ;;  %v448_v7 = vld [vmem:[%s165_s21 + $0x8] sm:$0xff] }
   0xf   : > { %253 = vmatpush.bf16.msra.mxu0 %v450_v3  ;;  %451 = vmatpush.bf16.msra.mxu1 %v450_v3  ;;  %v447_v8 = vld [vmem:[%s165_s21] sm:$0xff] }
  0x13   : > { %254 = vmatpush.bf16.msra.mxu0 %v449_v6  ;;  %452 = vmatpush.bf16.msra.mxu1 %v449_v6 }
  0x15   : > { %195 = vperm.xlu0 %464, %v185_v4   ;;  %205 = vperm.xlu1 %465, %v187_v5  }
  0x17   : > { %255 = vmatpush.bf16.msra.mxu0 %v448_v7  ;;  %453 = vmatpush.bf16.msra.mxu1 %v448_v7 }
  0x1b   : > { %256 = vmatpush.bf16.msra.mxu0 %v447_v8  ;;  %454 = vmatpush.bf16.msra.mxu1 %v447_v8 }
  0x1e   : > { %439 = vmatmul.msk.bf16.vlgmr.msra.gmra.mxu0 %vm242_vm0, %v445_v9  ;;  %440 = vmatmul.msk.bf16.vlgmr.msra.gmra.mxu1 %vm242_vm0, %v446_v10 }
  0x7f   : > { %v191_v11 = vpop.permute.xlu0 %190  ;;  %v201_v12 = vpop.permute.xlu1 %200 }
  0x87   : > { %v196_v24 = vpop.permute.xlu0 %195  ;;  %v206_v28 = vpop.permute.xlu1 %205 }
  0x9b   : > { %v258_v13 = vpop.f32.mrf.mxu0  ;;  %v263_v14 = vpop.f32.mrf.mxu1 }
  0x9c   : > { %v532_v15 = vadd.f32 %v258_v13, %v191_v11  ;;  %v534_v16 = vadd.f32 %v263_v14, %v201_v12 }
  0x9e   : > { %v268_v17 = vsel %vm242_vm0, %v532_v15, 0.0  ;;  %v280_v18 = vmul.f32 %v532_v15, %v532_v15  ;;  %v274_v19 = vsel %vm242_vm0, %v534_v16, 0.0  ;;  %v282_v21 = vmul.f32 %v534_v16, %v534_v16 }
  0x9f   : > { %269 = vadd.xlane.f32.xlu2 %v268_v17  ;;  %275 = vadd.xlane.f32.xlu0 %v274_v19 }
  0xa0   : > { %v284_v20 = vsel %vm242_vm0, %v280_v18, 0.0  ;;  %v290_v22 = vsel %vm242_vm0, %v282_v21, 0.0 }
  0xa1   : > { %285 = vadd.xlane.f32.xlu1 %v284_v20 }
  0xa3   : > { %v260_v23 = vpop.f32.mrf.mxu0  ;;  %v265_v27 = vpop.f32.mrf.mxu1 }
  0xa4   : > { %v261_v25 = vadd.f32 %v260_v23, %v196_v24  ;;  %v266_v29 = vadd.f32 %v265_v27, %v206_v28 }
  0xa6   : > { %v271_v26 = vsel %vm242_vm0, %v261_v25, 0.0  ;;  %v277_v30 = vsel %vm242_vm0, %v266_v29, 0.0  ;;  %v281_v31 = vmul.f32 %v261_v25, %v261_v25  ;;  %v283_v33 = vmul.f32 %v266_v29, %v266_v29 }
  0xa7   : > { %291 = vadd.xlane.f32.xlu2 %v290_v22 }
  0xa8   : > { %v287_v32 = vsel %vm242_vm0, %v281_v31, 0.0  ;;  %v293_v34 = vsel %vm242_vm0, %v283_v33, 0.0 }
  0xaf   : > { %272 = vadd.xlane.f32.xlu2 %v271_v26 }
  0xb7   : > { %278 = vadd.xlane.f32.xlu2 %v277_v30 }
  0xbf   : > { %288 = vadd.xlane.f32.xlu2 %v287_v32 }
  0xc7   : > { %294 = vadd.xlane.f32.xlu2 %v293_v34 }
 0x112   : > { %v270_v35 = vpop.xlane.xlu2 %269  ;;  %v276_v39 = vpop.xlane.xlu0 %275 }
 0x114   : > { %v286_v45 = vpop.xlane.xlu1 %285 }
 0x11a   : > { %v292_v36 = vpop.xlane.xlu2 %291 }
 0x122   : > { %v273_v37 = vpop.xlane.xlu2 %272 }
 0x123   : > { %v297_v38 = vadd.f32 %v273_v37, %v270_v35 }
 0x125   : > { %v298_v40 = vadd.f32 %v297_v38, %v276_v39 }
 0x12a   : > { %v279_v41 = vpop.xlane.xlu2 %278 }
 0x12b   : > { %v299_v42 = vadd.f32 %v298_v40, %v279_v41 }
 0x12d   : > { %v304_v43 = vmul.f32 0.00390625, %v299_v42 }
 0x12f   : > { %311 = vperm.xlu2 %466, %v304_v43   ;;  %v306_v50 = vmul.f32 %v304_v43, %v304_v43 }
 0x132   : > { %v289_v44 = vpop.xlane.xlu2 %288 }
 0x133   : > { %v301_v46 = vadd.f32 %v289_v44, %v286_v45 }
 0x135   : > { %v302_v47 = vadd.f32 %v301_v46, %v292_v36 }
 0x13a   : > { %v295_v48 = vpop.xlane.xlu2 %294 }
 0x13b   : > { %v303_v49 = vadd.f32 %v302_v47, %v295_v48 }
 0x13d   : > { %v305_v51 = vmul.f32 0.00390625, %v303_v49 }
 0x13f   : > { %v307_v52 = vsub.f32 %v305_v51, %v306_v50 }
 0x141   : > { %v308_v53 = vmax.f32 %v307_v52, 0.0 }
 0x143   : > { %v318_v54 = vadd.f32 1e-05, %v308_v53 }
 0x145   : > { %467 = vrsqrt.f32 %v318_v54  ;;  %vm325_vm2 = vweird.f32 %v318_v54 }
 0x14b   : > { %v468_v55 = vpop.eup %467 }
 0x14c   : > { %v320_v56 = vmul.f32 %v468_v55, %v318_v54  ;;  %vm326_vm1 = vweird.f32 %v468_v55 }
 0x14d   : > { %vm327_vm3 = vmor %vm325_vm2, %vm326_vm1 }
 0x14e   : > { %v321_v57 = vmul.f32 %v468_v55, %v320_v56 }
 0x150   : > { %v322_v58 = vmul.f32 0.5, %v321_v57 }
 0x152   : > { %v323_v59 = vsub.f32 1.5, %v322_v58 }
 0x154   : > { %v324_v60 = vmul.f32 %v468_v55, %v323_v59 }
 0x156   : > { %v328_v61 = vsel %vm327_vm3, %v468_v55, %v324_v60 }
 0x157   : > { %331 = vperm.xlu0 %464, %v328_v61  }
 0x189   : > { %v312_v62 = vpop.permute.xlu2 %311 }
 0x18a   : > { %v314_v63 = vsub.f32 %v532_v15, %v312_v62  ;;  %v315_v0 = vsub.f32 %v261_v25, %v312_v62  ;;  %v316_v1 = vsub.f32 %v534_v16, %v312_v62  ;;  %v317_v2 = vsub.f32 %v266_v29, %v312_v62 }
 0x1c9   : > { %v332_v3 = vpop.permute.xlu0 %331 }
 0x1ca   : > { %v334_v4 = vmul.f32 %v332_v3, %v314_v63  ;;  %v335_v5 = vmul.f32 %v332_v3, %v315_v0  ;;  %v336_v6 = vmul.f32 %v332_v3, %v316_v1  ;;  %v337_v7 = vmul.f32 %v332_v3, %v317_v2 }
 0x1cc   : > { %v338_v8 = vmax.f32 %v334_v4, 0.0  ;;  %v339_v9 = vmax.f32 %v335_v5, 0.0  ;;  %v340_v10 = vmax.f32 %v336_v6, 0.0  ;;  %v341_v11 = vmax.f32 %v337_v7, 0.0 }
 0x1ce   : > { %v342_v12 = vpack.c.bf16 %v338_v8, %v338_v8  ;;  %v343_v13 = vpack.c.bf16 %v339_v9, %v339_v9  ;;  %v344_v14 = vpack.c.bf16 %v340_v10, %v340_v10  ;;  %v345_v15 = vpack.c.bf16 %v341_v11, %v341_v11 }
 0x1d0   : > { %347 = vst.msk [vmem:[%s170_s6] sm:$0xf] %vm346_vm4, %v342_v12 }
 0x1d1   : > { %348 = vst.msk [vmem:[%s170_s6 + $0x4] sm:$0xf] %vm346_vm4, %v343_v13 }
 0x1d2   : > { %349 = vst.msk [vmem:[%s170_s6 + $0x8] sm:$0xf] %vm346_vm4, %v344_v14 }
 0x1d3   : > { %350 = vst.msk [vmem:[%s170_s6 + $0xc] sm:$0xf] %vm346_vm4, %v345_v15 }
 0x1d4 PF: > { %s13_s12 = sadd.s32 1, %s475_s12  }
 0x1d5   : > { %p10_p4 = scmp.ge.s32.totalorder %s13_s12, 4  }
 0x1d7   :  { %12 = sbr.rel (!%p10_p4) target bundleno = 1 (0x1), region = 62 }

// kernel: resnet_generator_forward.19
= control target key start
LH: loop header
LB: loop body
LE: loop exit
PB: predicated region body
PF: predicated region fallthrough
CT: control target
= control target key end

     0   :  { %s961_s14 = smov 0   ;;  %s1104_s0 = inlined_call_operand.vmem [shape: bf16[2,392,256], index: 0, kind: input, shape index: {}]   ;;  %s1105_s1 = inlined_call_operand.vmem [shape: bf16[1,392], index: 1, kind: input, shape index: {}]   ;;  %s1106_s2 = inlined_call_operand.<no memory space> [shape: f32[1,1], index: 2, kind: input, shape index: {}]   ;;  %s1107_s3 = inlined_call_operand.vmem [shape: f32[2,1,256], index: 3, kind: output, shape index: {}]  }
   0x1   :  { %v8_v0 = vstv %s1106_s2 }
   0x2   :  { %9 = vst [vmem:[#allocation2] sm:$0x1] %v8_v0 }
   0x3 LB: > { %s663_s15 = sadd.s32 4294967295, %s935_s14   ;;  %p667_p0 = scmp.ge.s32.totalorder %s935_s14, 1  ;;  %s935_s14 = sphi %s961_s14, %s15_s14  }
   0x4   : > { %p139_p1 = scmp.lt.s32.totalorder %s935_s14, 3 }
   0x6   : > { %p140_p2 = pnand %p667_p0, %p139_p1 }
   0x7   : > { %p162_p3 = scmp.lt.s32.totalorder (!%p140_p2), %s663_s15, 1 }
   0x8   : > { %143 = sbr.rel (%p140_p2) target bundleno = 226 (0xe2), region = 32 }
   0xd   : > { %v172_v1 = vld [vmem:[%s1105_s1] sm:$0xf]  ;;  %s1109_s15 = smov (!%p162_p3, %s663_s15), 1  ;;  %vm486_vm0 = vcmask 1043456   ;;  %vm483_vm1 = vcmask 64512   ;;  %vm602_vm2 = vcmask 1040384  }
   0xe   : > { %230 = vst [vmem:[#allocation1] ss:$9 sm:$0xff] %v172_v1  ;;  %s914_s2 = smul.u32 392, %s1109_s15  ;;  %s669_s21 = sshll.u32 %s1109_s15, 1 }
   0xf   : > { %s170_s24 = scalar_lea.vmem %s1107_s3, %s669_s21 }
  0x10   : > { %s978_s20 = scalar_lea.vmem %s1104_s0, %s914_s2 }
  0x11   : > { %v728_v2 = vld [vmem:[%s978_s20 + $0x70] sm:$0xf]  ;;  %v881_v3 = vld [vmem:[%s978_s20 + $0x74] sm:$0xf0]  ;;  %v720_v11 = vld [vmem:[%s978_s20 + $0x60] sm:$0xf] }
  0x12   : > { %v792_v4 = vld [vmem:[%s978_s20 + $0xf0] sm:$0xf]  ;;  %v729_v5 = vor.u32 %v881_v3, %v728_v2  ;;  %v897_v6 = vld [vmem:[%s978_s20 + $0xf4] sm:$0xf0]  ;;  %v879_v12 = vld [vmem:[%s978_s20 + $0x64] sm:$0xf0] }
  0x13   : > { %v856_v7 = vld [vmem:[%s978_s20 + $0x170] sm:$0xf]  ;;  %v913_v8 = vld [vmem:[%s978_s20 + $0x174] sm:$0xf0]  ;;  %v793_v9 = vor.u32 %v897_v6, %v792_v4  ;;  %v784_v13 = vld [vmem:[%s978_s20 + $0xe0] sm:$0xf]  ;;  %v721_v14 = vor.u32 %v879_v12, %v720_v11 }
  0x14   : > { %v857_v10 = vor.u32 %v913_v8, %v856_v7  ;;  %493 = vmatpush.bf16.msra.mxu0 %v729_v5  ;;  %v895_v15 = vld [vmem:[%s978_s20 + $0xe4] sm:$0xf0]  ;;  %v848_v16 = vld [vmem:[%s978_s20 + $0x160] sm:$0xf]  ;;  %v712_v20 = vld [vmem:[%s978_s20 + $0x50] sm:$0xf] }
  0x15   : > { %v911_v17 = vld [vmem:[%s978_s20 + $0x164] sm:$0xf0]  ;;  %506 = vmatpush.bf16.msra.mxu1 %v793_v9  ;;  %v785_v18 = vor.u32 %v895_v15, %v784_v13  ;;  %v877_v21 = vld [vmem:[%s978_s20 + $0x54] sm:$0xf0]  ;;  %v776_v22 = vld [vmem:[%s978_s20 + $0xd0] sm:$0xf] }
  0x16   : > { %519 = vmatpush.bf16.msra.mxu2 %v857_v10  ;;  %v849_v19 = vor.u32 %v911_v17, %v848_v16  ;;  %v893_v23 = vld [vmem:[%s978_s20 + $0xd4] sm:$0xf0]  ;;  %v840_v24 = vld [vmem:[%s978_s20 + $0x150] sm:$0xf]  ;;  %v713_v26 = vor.u32 %v877_v21, %v712_v20  ;;  %v704_v27 = vld [vmem:[%s978_s20 + $0x40] sm:$0xf] }
  0x17   : > { %v909_v25 = vld [vmem:[%s978_s20 + $0x154] sm:$0xf0]  ;;  %v1000_v28 = vld [vmem:[%s978_s20 + $0x180] sm:$0xff]  ;;  %v880_v29 = vld [vmem:[%s978_s20 + $0x74] sm:$0xf]  ;;  %v777_v30 = vor.u32 %v893_v23, %v776_v22 }
  0x18   : > { %494 = vmatpush.bf16.msra.mxu0 %v721_v14  ;;  %v841_v31 = vor.u32 %v909_v25, %v840_v24  ;;  %v875_v32 = vld [vmem:[%s978_s20 + $0x44] sm:$0xf0]  ;;  %v768_v33 = vld [vmem:[%s978_s20 + $0xc0] sm:$0xf]  ;;  %v383_v34 = vunpack.c.l.b16 %v1000_v28  ;;  %v730_v35 = vld [vmem:[%s978_s20 + $0x78] sm:$0xf0]  ;;  %v384_v24 = vunpack.c.h.b16 %v1000_v28 }
  0x19   : > { %507 = vmatpush.bf16.msra.mxu1 %v785_v18  ;;  %v891_v36 = vld [vmem:[%s978_s20 + $0xc4] sm:$0xf0]  ;;  %v832_v37 = vld [vmem:[%s978_s20 + $0x140] sm:$0xf]  ;;  %v733_v40 = vor.u32 %v880_v29, %v730_v35  ;;  %v705_v41 = vor.u32 %v875_v32, %v704_v27  ;;  %v696_v42 = vld [vmem:[%s978_s20 + $0x30] sm:$0xf] }
  0x1a   : > { %520 = vmatpush.bf16.msra.mxu2 %v849_v19  ;;  %v907_v38 = vld [vmem:[%s978_s20 + $0x144] sm:$0xf0]  ;;  %v433_v39 = vpack.c.b16 %v383_v34, %v383_v34  ;;  %v878_v43 = vld [vmem:[%s978_s20 + $0x64] sm:$0xf]  ;;  %v722_v44 = vld [vmem:[%s978_s20 + $0x68] sm:$0xf0]  ;;  %v769_v45 = vor.u32 %v891_v36, %v768_v33 }
  0x1b   : > { %v833_v47 = vor.u32 %v907_v38, %v832_v37  ;;  %v873_v48 = vld [vmem:[%s978_s20 + $0x34] sm:$0xf0]  ;;  %v760_v49 = vld [vmem:[%s978_s20 + $0xb0] sm:$0xf]  ;;  %v725_v53 = vor.u32 %v878_v43, %v722_v44  ;;  %v876_v56 = vld [vmem:[%s978_s20 + $0x54] sm:$0xf]  ;;  %v434_v38 = vpack.c.b16 %v384_v24, %v384_v24 }
  0x1c   : > { %495 = vmatpush.bf16.msra.mxu0 %v713_v26  ;;  %v488_v46 = vsel %vm486_vm0, %v433_v39, 0  ;;  %v889_v50 = vld [vmem:[%s978_s20 + $0xb4] sm:$0xf0]  ;;  %v824_v51 = vld [vmem:[%s978_s20 + $0x130] sm:$0xf]  ;;  %v697_v55 = vor.u32 %v873_v48, %v696_v42  ;;  %v937_v29 = vmov 0  }
  0x1d   : > { %508 = vmatpush.bf16.msra.mxu1 %v777_v30  ;;  %539 = vmatpush.bf16.msra.mxu3 %v488_v46  ;;  %v905_v52 = vld [vmem:[%s978_s20 + $0x134] sm:$0xf0]  ;;  %v714_v57 = vld [vmem:[%s978_s20 + $0x58] sm:$0xf0]  ;;  %v761_v58 = vor.u32 %v889_v50, %v760_v49  ;;  %v688_v60 = vld [vmem:[%s978_s20 + $0x20] sm:$0xf] }
  0x1e   : > { %521 = vmatpush.bf16.msra.mxu2 %v841_v31  ;;  %v1019_v54 = vld [vmem:[#allocation1 + $0x1b] sm:$0xff]  ;;  %v825_v59 = vor.u32 %v905_v52, %v824_v51  ;;  %v871_v61 = vld [vmem:[%s978_s20 + $0x24] sm:$0xf0]  ;;  %v717_v2 = vor.u32 %v876_v56, %v714_v57  ;;  %v874_v4 = vld [vmem:[%s978_s20 + $0x44] sm:$0xf]  ;;  %924 = vset.pattern.permute.xlu0 %v937_v29  ;;  %v491_v52 = vsel %vm486_vm0, %v434_v38, 0 }
  0x1f   : > { %v752_v62 = vld [vmem:[%s978_s20 + $0xa0] sm:$0xf]  ;;  %v887_v63 = vld [vmem:[%s978_s20 + $0xa4] sm:$0xf0]  ;;  %v689_v3 = vor.u32 %v871_v61, %v688_v60  ;;  %v706_v5 = vld [vmem:[%s978_s20 + $0x48] sm:$0xf0] }
  0x20   : > { %496 = vmatpush.bf16.msra.mxu0 %v705_v41  ;;  %v816_v0 = vld [vmem:[%s978_s20 + $0x120] sm:$0xf]  ;;  %v903_v1 = vld [vmem:[%s978_s20 + $0x124] sm:$0xf0]  ;;  %862 = vmatmul.msk.bf16.vlgmr.msra.gmra.mxu3 %vm483_vm1, %v1019_v54  ;;  %v753_v6 = vor.u32 %v887_v63, %v752_v62  ;;  %v680_v8 = vld [vmem:[%s978_s20 + $0x10] sm:$0xf]  ;;  %v709_v14 = vor.u32 %v874_v4, %v706_v5 }
  0x21   : > { %545 = vmatpush.bf16.msrb.mxu3 %v733_v40  ;;  %509 = vmatpush.bf16.msra.mxu1 %v769_v45  ;;  %v817_v7 = vor.u32 %v903_v1, %v816_v0  ;;  %v869_v9 = vld [vmem:[%s978_s20 + $0x14] sm:$0xf0]  ;;  %v744_v10 = vld [vmem:[%s978_s20 + $0x90] sm:$0xf]  ;;  %v672_v15 = vld [vmem:[%s978_s20] sm:$0xf] }
  0x22   : > { %522 = vmatpush.bf16.msra.mxu2 %v833_v47  ;;  %v885_v11 = vld [vmem:[%s978_s20 + $0x94] sm:$0xf0]  ;;  %v808_v12 = vld [vmem:[%s978_s20 + $0x110] sm:$0xf]  ;;  %v681_v16 = vor.u32 %v869_v9, %v680_v8  ;;  %v872_v17 = vld [vmem:[%s978_s20 + $0x34] sm:$0xf] }
  0x23   : > { %v901_v13 = vld [vmem:[%s978_s20 + $0x114] sm:$0xf0]  ;;  %v698_v18 = vld [vmem:[%s978_s20 + $0x38] sm:$0xf0]  ;;  %v745_v19 = vor.u32 %v885_v11, %v744_v10  ;;  %v867_v21 = vld [vmem:[%s978_s20 + $0x4] sm:$0xf0] }
  0x24   : > { %497 = vmatpush.bf16.msra.mxu0 %v697_v55  ;;  %v809_v20 = vor.u32 %v901_v13, %v808_v12  ;;  %v736_v22 = vld [vmem:[%s978_s20 + $0x80] sm:$0xf]  ;;  %v883_v23 = vld [vmem:[%s978_s20 + $0x84] sm:$0xf0]  ;;  %v896_v25 = vld [vmem:[%s978_s20 + $0xf4] sm:$0xf]  ;;  %v701_v30 = vor.u32 %v872_v17, %v698_v18  ;;  %v673_v34 = vor.u32 %v867_v21, %v672_v15 }
  0x25   : > { %546 = vmatpush.bf16.msrb.mxu3 %v725_v53  ;;  %510 = vmatpush.bf16.msra.mxu1 %v761_v58  ;;  %v794_v26 = vld [vmem:[%s978_s20 + $0xf8] sm:$0xf0]  ;;  %v912_v27 = vld [vmem:[%s978_s20 + $0x174] sm:$0xf]  ;;  %v800_v32 = vld [vmem:[%s978_s20 + $0x100] sm:$0xf]  ;;  %v737_v28 = vor.u32 %v883_v23, %v736_v22 }
  0x26   : > { %523 = vmatpush.bf16.msra.mxu2 %v825_v59  ;;  %v858_v31 = vld [vmem:[%s978_s20 + $0x178] sm:$0xf0]  ;;  %v899_v33 = vld [vmem:[%s978_s20 + $0x104] sm:$0xf0]  ;;  %v870_v35 = vld [vmem:[%s978_s20 + $0x24] sm:$0xf]  ;;  %v797_v37 = vor.u32 %v896_v25, %v794_v26 }
  0x27   : > { %v690_v36 = vld [vmem:[%s978_s20 + $0x28] sm:$0xf0]  ;;  %v222_v39 = vld [vmem:[#allocation2] sm:$0x1]  ;;  %v861_v40 = vor.u32 %v912_v27, %v858_v31  ;;  %v801_v41 = vor.u32 %v899_v33, %v800_v32  ;;  %v894_v42 = vld [vmem:[%s978_s20 + $0xe4] sm:$0xf] }
  0x28   : > { %498 = vmatpush.bf16.msra.mxu0 %v689_v3  ;;  %v786_v43 = vld [vmem:[%s978_s20 + $0xe8] sm:$0xf0]  ;;  %225 = vperm.xlu0 %924, %v222_v39   ;;  %v693_v44 = vor.u32 %v870_v35, %v690_v36  ;;  %v910_v45 = vld [vmem:[%s978_s20 + $0x164] sm:$0xf]  ;;  %v868_v48 = vld [vmem:[%s978_s20 + $0x14] sm:$0xf] }
  0x29   : > { %547 = vmatpush.bf16.msrb.mxu3 %v717_v2  ;;  %511 = vmatpush.bf16.msra.mxu1 %v753_v6  ;;  %v850_v46 = vld [vmem:[%s978_s20 + $0x168] sm:$0xf0]  ;;  %v231_v47 = vld [vmem:[#allocation1] sm:$0xff]  ;;  %v682_v49 = vld [vmem:[%s978_s20 + $0x18] sm:$0xf0]  ;;  %v789_v50 = vor.u32 %v894_v42, %v786_v43 }
  0x2a   : > { %524 = vmatpush.bf16.msra.mxu2 %v817_v7  ;;  %v1060_v51 = vld [vmem:[#allocation1 + $0x9] sm:$0xff]  ;;  %v853_v53 = vor.u32 %v910_v45, %v850_v46  ;;  %v1063_v55 = vld [vmem:[#allocation1 + $0x12] sm:$0xff]  ;;  %v778_v57 = vld [vmem:[%s978_s20 + $0xd8] sm:$0xf0]  ;;  %v685_v58 = vor.u32 %v868_v48, %v682_v49 }
  0x2b   : > { %v892_v56 = vld [vmem:[%s978_s20 + $0xd4] sm:$0xf]  ;;  %v842_v60 = vld [vmem:[%s978_s20 + $0x158] sm:$0xf0]  ;;  %v866_v61 = vld [vmem:[%s978_s20 + $0x4] sm:$0xf] }
  0x2c   : > { %499 = vmatpush.bf16.msra.mxu0 %v681_v16  ;;  %v908_v59 = vld [vmem:[%s978_s20 + $0x154] sm:$0xf]  ;;  %v674_v62 = vld [vmem:[%s978_s20 + $0x8] sm:$0xf0]  ;;  %v781_v63 = vor.u32 %v892_v56, %v778_v57  ;;  %v890_v1 = vld [vmem:[%s978_s20 + $0xc4] sm:$0xf] }
  0x2d   : > { %548 = vmatpush.bf16.msrb.mxu3 %v709_v14  ;;  %512 = vmatpush.bf16.msra.mxu1 %v745_v19  ;;  %v845_v0 = vor.u32 %v908_v59, %v842_v60  ;;  %v770_v2 = vld [vmem:[%s978_s20 + $0xc8] sm:$0xf0]  ;;  %v677_v3 = vor.u32 %v866_v61, %v674_v62  ;;  %v906_v4 = vld [vmem:[%s978_s20 + $0x144] sm:$0xf]  ;;  %v888_v8 = vld [vmem:[%s978_s20 + $0xb4] sm:$0xf] }
  0x2e   : > { %525 = vmatpush.bf16.msra.mxu2 %v809_v20  ;;  %v834_v5 = vld [vmem:[%s978_s20 + $0x148] sm:$0xf0]  ;;  %v773_v6 = vor.u32 %v890_v1, %v770_v2  ;;  %v762_v9 = vld [vmem:[%s978_s20 + $0xb8] sm:$0xf0]  ;;  %v904_v10 = vld [vmem:[%s978_s20 + $0x134] sm:$0xf] }
  0x2f   : > { %v837_v7 = vor.u32 %v906_v4, %v834_v5  ;;  %v826_v11 = vld [vmem:[%s978_s20 + $0x138] sm:$0xf0]  ;;  %v765_v12 = vor.u32 %v888_v8, %v762_v9  ;;  %v886_v14 = vld [vmem:[%s978_s20 + $0xa4] sm:$0xf]  ;;  %v754_v15 = vld [vmem:[%s978_s20 + $0xa8] sm:$0xf0] }
  0x30   : > { %500 = vmatpush.bf16.msra.mxu0 %v673_v34  ;;  %v829_v13 = vor.u32 %v904_v10, %v826_v11  ;;  %v902_v16 = vld [vmem:[%s978_s20 + $0x124] sm:$0xf]  ;;  %v818_v17 = vld [vmem:[%s978_s20 + $0x128] sm:$0xf0]  ;;  %v757_v18 = vor.u32 %v886_v14, %v754_v15  ;;  %v884_v20 = vld [vmem:[%s978_s20 + $0x94] sm:$0xf] }
  0x31   : > { %549 = vmatpush.bf16.msrb.mxu3 %v701_v30  ;;  %513 = vmatpush.bf16.msra.mxu1 %v737_v28  ;;  %v821_v19 = vor.u32 %v902_v16, %v818_v17  ;;  %v746_v21 = vld [vmem:[%s978_s20 + $0x98] sm:$0xf0]  ;;  %v900_v22 = vld [vmem:[%s978_s20 + $0x114] sm:$0xf]  ;;  %v882_v26 = vld [vmem:[%s978_s20 + $0x84] sm:$0xf] }
  0x32   : > { %526 = vmatpush.bf16.msra.mxu2 %v801_v41  ;;  %v810_v23 = vld [vmem:[%s978_s20 + $0x118] sm:$0xf0]  ;;  %v749_v24 = vor.u32 %v884_v20, %v746_v21  ;;  %v738_v27 = vld [vmem:[%s978_s20 + $0x88] sm:$0xf0]  ;;  %v898_v29 = vld [vmem:[%s978_s20 + $0x104] sm:$0xf] }
  0x33   : > { %501 = vmatmul.bf16.vlgmr.msra.gmra.mxu0 %v231_v47  ;;  %v813_v25 = vor.u32 %v900_v22, %v810_v23  ;;  %v802_v30 = vld [vmem:[%s978_s20 + $0x108] sm:$0xf0]  ;;  %v741_v31 = vor.u32 %v882_v26, %v738_v27 }
  0x34   : > { %558 = vmatpush.bf16.msrb.mxu0 %v797_v37  ;;  %514 = vmatmul.bf16.vlgmr.msra.gmra.mxu1 %v1060_v51  ;;  %v805_v32 = vor.u32 %v898_v29, %v802_v30 }
  0x35   : > { %571 = vmatpush.bf16.msrb.mxu1 %v861_v40  ;;  %550 = vmatpush.bf16.msrb.mxu3 %v693_v44 }
  0x36   : > { %591 = vmatpush.bf16.msrb.mxu2 %v491_v52 }
  0x37   : > { %527 = vmatmul.bf16.vlgmr.msra.gmra.mxu2 %v1063_v55 }
  0x38   : > { %559 = vmatpush.bf16.msrb.mxu0 %v789_v50 }
  0x39   : > { %572 = vmatpush.bf16.msrb.mxu1 %v853_v53  ;;  %551 = vmatpush.bf16.msrb.mxu3 %v685_v58  ;;  %v605_v58 = vlaneseq }
  0x3b   : > { %vm607_vm3 = vcmp.lt.s32.totalorder %v605_v58, 256 }
  0x3c   : > { %560 = vmatpush.bf16.msrb.mxu0 %v781_v63 }
  0x3d   : > { %573 = vmatpush.bf16.msrb.mxu1 %v845_v0  ;;  %552 = vmatpush.bf16.msrb.mxu3 %v677_v3 }
  0x40   : > { %561 = vmatpush.bf16.msrb.mxu0 %v773_v6  ;;  %553 = vmatmul.bf16.vlgmr.msrb.gmra.mxu3 %v231_v47 }
  0x41   : > { %574 = vmatpush.bf16.msrb.mxu1 %v837_v7 }
  0x44   : > { %562 = vmatpush.bf16.msrb.mxu0 %v765_v12 }
  0x45   : > { %575 = vmatpush.bf16.msrb.mxu1 %v829_v13 }
  0x47   : > { %863 = vmatmul.msk.bf16.vlgmr.msrb.gmra.mxu2 %vm483_vm1, %v1019_v54 }
  0x48   : > { %563 = vmatpush.bf16.msrb.mxu0 %v757_v18 }
  0x49   : > { %576 = vmatpush.bf16.msrb.mxu1 %v821_v19 }
  0x4c   : > { %564 = vmatpush.bf16.msrb.mxu0 %v749_v24 }
  0x4d   : > { %577 = vmatpush.bf16.msrb.mxu1 %v813_v25 }
  0x50   : > { %565 = vmatpush.bf16.msrb.mxu0 %v741_v31 }
  0x51   : > { %578 = vmatpush.bf16.msrb.mxu1 %v805_v32 }
  0x53   : > { %566 = vmatmul.bf16.vlgmr.msrb.gmra.mxu0 %v1060_v51 }
  0x54   : > { %579 = vmatmul.bf16.vlgmr.msrb.gmra.mxu1 %v1063_v55 }
  0x9a   : > { %v226_v38 = vpop.permute.xlu0 %225 }
  0x9b   : > { %v228_v41 = vperm.slane %v226_v38, 0 }
  0xa3   : > { %v541_v33 = vpop.f32.mrf.mxu3 }
  0xab   : > { %v543_v34 = vpop.f32.mrf.mxu3 }
  0xb0   : > { %v502_v54 = vpop.f32.mrf.mxu0 }
  0xb1   : > { %v515_v35 = vpop.f32.mrf.mxu1  ;;  %v503_v42 = vadd.f32 %v502_v54, %v228_v41 }
  0xb3   : > { %v516_v45 = vadd.f32 %v515_v35, %v503_v42 }
  0xb8   : > { %v504_v28 = vpop.f32.mrf.mxu0 }
  0xb9   : > { %v517_v37 = vpop.f32.mrf.mxu1 }
  0xba   : > { %v528_v36 = vpop.f32.mrf.mxu2 }
  0xbb   : > { %v529_v48 = vadd.f32 %v528_v36, %v516_v45 }
  0xbd   : > { %v542_v53 = vadd.f32 %v541_v33, %v529_v48 }
  0xc2   : > { %v530_v39 = vpop.f32.mrf.mxu2 }
  0xc3   : > { %v554_v40 = vpop.f32.mrf.mxu3 }
  0xc4   : > { %v555_v46 = vadd.f32 %v554_v40, %v228_v41 }
  0xca   : > { %v593_v43 = vpop.f32.mrf.mxu2 }
  0xcb   : > { %v556_v44 = vpop.f32.mrf.mxu3 }
  0xd0   : > { %v567_v47 = vpop.f32.mrf.mxu0 }
  0xd1   : > { %v568_v49 = vadd.f32 %v567_v47, %v555_v46  ;;  %v580_v50 = vpop.f32.mrf.mxu1 }
  0xd2   : > { %v595_v52 = vpop.f32.mrf.mxu2 }
  0xd3   : > { %v581_v51 = vadd.f32 %v580_v50, %v568_v49 }
  0xd5   : > { %v594_v55 = vadd.f32 %v593_v43, %v581_v51 }
  0xd7   : > { %925 = vtanh.f32 %v594_v55 }
  0xd8   : > { %v569_v56 = vpop.f32.mrf.mxu0  ;;  %927 = vtanh.f32 %v542_v53 }
  0xd9   : > { %v582_v57 = vpop.f32.mrf.mxu1 }
  0xdd   : > { %v926_v59 = vpop.eup %925 }
  0xde   : > { %v601_v60 = vrot.slane %v926_v59, 7  ;;  %v928_v61 = vpop.eup %927 }
  0xe0   : > { %v603_v62 = vsel %vm602_vm2, %v928_v61, %v601_v60 }
  0xe1   : > { %609 = vst.msk [vmem:[%s170_s24] sm:$0x3] %vm607_vm3, %v603_v62 }
  0xe2 PF: > { %s15_s14 = sadd.s32 1, %s935_s14  }
  0xe3   : > { %p12_p4 = scmp.ge.s32.totalorder %s15_s14, 4  }
  0xe5   :  { %14 = sbr.rel (!%p12_p4) target bundleno = 3 (0x3), region = 62 }

</bundles_post_ra>
